<compile_context>
chip_gen: v5e
topology: v5e:2x2
jax: 0.10.0
libtpu: 0.0.40
codegen_flags: <defaults>
</compile_context>

<pallas_src>
import functools

import numpy as np
import jax
import jax.numpy as jnp
from jax.experimental import pallas as pl
from jax.experimental.pallas import tpu as pltpu


# ----------------------------------------------------------------------------
# Haar downsampling
#   PyTorch: grouped stride-2 conv with fixed +-1 weights, /4, then reshape/transpose so that
#   output channel index = band * C + c  (band in {LL, b1, b2, b3}).
#   The wrapper passes a free row-major view (B, H/2, 2, W/2, 2C); the even/odd row selection is
#   an integer index on a major dim, the even/odd column selection is a static lane slice.
# ----------------------------------------------------------------------------
def _haar_kernel(x_ref, o_ref):
    C = x_ref.shape[4] // 2
    top = x_ref[0, :, 0, :, :]        # rows 2i   -> (h, w, 2C): lanes = [even-w chans | odd-w chans]
    bot = x_ref[0, :, 1, :, :]        # rows 2i+1 -> (h, w, 2C)
    x00 = top[:, :, :C]
    x01 = top[:, :, C:]
    x10 = bot[:, :, :C]
    x11 = bot[:, :, C:]
    ll = (x00 + x01 + x10 + x11) * 0.25                    # weights [[ 1, 1],[ 1, 1]]
    b1 = (x00 - x01 + x10 - x11) * 0.25                    # weights [[ 1,-1],[ 1,-1]]
    b2 = (x00 + x01 - x10 - x11) * 0.25                    # weights [[ 1, 1],[-1,-1]]
    b3 = (x00 - x01 - x10 + x11) * 0.25                    # weights [[ 1,-1],[-1, 1]]
    o_ref[0] = jnp.concatenate([ll, b1, b2, b3], axis=-1).astype(o_ref.dtype)


def haar_downsample(x_nhwc):
    B, H, W, C = x_nhwc.shape
    assert H % 2 == 0 and W % 2 == 0, "Haar downsampling requires even H and W"
    h, w = H // 2, W // 2
    xv = x_nhwc.reshape(B, h, 2, w, 2 * C)   # pure row-major view: no data movement
    return pl.pallas_call(
        _haar_kernel,
        out_shape=jax.ShapeDtypeStruct((B, h, w, 4 * C), x_nhwc.dtype),
        grid=(B,),
        in_specs=[pl.BlockSpec((1, h, 2, w, 2 * C), lambda b: (b, 0, 0, 0, 0))],
        out_specs=pl.BlockSpec((1, h, w, 4 * C), lambda b: (b, 0, 0, 0)),
        compiler_params=pltpu.CompilerParams(dimension_semantics=("parallel",)),
    )(xv)


# ----------------------------------------------------------------------------
# Fused InvZipBlock forward kernel (one pallas_call per block):
#   F(x2)  : 3x3 SAME conv as ONE im2col matmul (padding into VMEM scratch)
#   y1     = alpha1 * beta2 * (x1 + F(x2))
#   u      = y1 / beta2 = alpha1 * (x1 + F(x2))            (kept in registers)
#   G(u)   : 3x3 SAME conv as ONE im2col matmul
#   y2     = beta1 * x2 + alpha2 * G(u)
#   out    = concat([y1, y2], channel)  -> single store
# ----------------------------------------------------------------------------
def _block_kernel(x_ref, wf_ref, bf_ref, wg_ref, bg_ref, o_ref, xpad_ref, upad_ref,
                  *, c1, alpha1, alpha2, beta1, beta2):
    _, H, W, Ct = o_ref.shape
    c2 = Ct - c1
    x = x_ref[0]                                    # (H, W, Ct)
    x1 = x[:, :, :c1].reshape(H * W, c1)
    x2 = x[:, :, c1:]                               # (H, W, c2)

    # --- F(x2): pad into VMEM, im2col, one (H*W, 9*c2) x (9*c2, c1) matmul ---
    xpad_ref[...] = jnp.zeros_like(xpad_ref)
    xpad_ref[1:H + 1, 1:W + 1, :] = x2
    xpad = xpad_ref[...]
    pf = jnp.concatenate(
        [xpad[dh:dh + H, dw:dw + W, :].reshape(H * W, c2)
         for dh in range(3) for dw in range(3)], axis=-1)
    f = jnp.dot(pf, wf_ref[...], preferred_element_type=jnp.float32) + bf_ref[...]

    # --- coupling: y1 and u never leave VMEM ---
    t = x1.astype(jnp.float32) + f
    y1 = (alpha1 * beta2) * t
    u = (alpha1 * t).astype(x.dtype)                # = y1 / beta2

    # --- G(u): pad into VMEM, im2col, one (H*W, 9*c1) x (9*c1, c2) matmul ---
    upad_ref[...] = jnp.zeros_like(upad_ref)
    upad_ref[1:H + 1, 1:W + 1, :] = u.reshape(H, W, c1)
    upad = upad_ref[...]
    pg = jnp.concatenate(
        [upad[dh:dh + H, dw:dw + W, :].reshape(H * W, c1)
         for dh in range(3) for dw in range(3)], axis=-1)
    g = jnp.dot(pg, wg_ref[...], preferred_element_type=jnp.float32) + bg_ref[...]

    # --- y2 and fused channel concat: single store of the full output block ---
    y2 = beta1 * x2.reshape(H * W, c2).astype(jnp.float32) + alpha2 * g
    out = jnp.concatenate([y1, y2], axis=-1).reshape(H, W, Ct)
    o_ref[0] = out.astype(o_ref.dtype)


def inv_zip_block_forward(x_nhwc, p):
    B, H, W, Ct = x_nhwc.shape
    c1 = p["split_len1"]
    c2 = Ct - c1
    # (3,3,Cin,Cout) -> (9*Cin, Cout): tap-major / cin-minor, matches the in-kernel im2col order.
    wf = p["WF"].reshape(9 * c2, c1)
    wg = p["WG"].reshape(9 * c1, c2)
    kernel = functools.partial(
        _block_kernel, c1=c1,
        alpha1=float(p["alpha1"]), alpha2=float(p["alpha2"]),
        beta1=float(p["beta1"]), beta2=float(p["beta2"]))

    def full(*s):
        return pl.BlockSpec(s, lambda b, _s=s: (0,) * len(_s))

    blk = pl.BlockSpec((1, H, W, Ct), lambda b: (b, 0, 0, 0))
    return pl.pallas_call(
        kernel,
        out_shape=jax.ShapeDtypeStruct((B, H, W, Ct), x_nhwc.dtype),
        grid=(B,),
        in_specs=[blk,
                  full(9 * c2, c1), full(1, c1),
                  full(9 * c1, c2), full(1, c2)],
        out_specs=blk,
        scratch_shapes=[pltpu.VMEM((H + 2, W + 2, c2), x_nhwc.dtype),
                        pltpu.VMEM((H + 2, W + 2, c1), x_nhwc.dtype)],
        compiler_params=pltpu.CompilerParams(dimension_semantics=("parallel",)),
    )(x_nhwc, wf, p["bF"], wg, p["bG"])


# ----------------------------------------------------------------------------
# InvZipNet parameters + forward (rev=False)
# ----------------------------------------------------------------------------
def init_inv_zip_net(channel_in=3, channel_out=3, block_num=(2,), down_num=1, seed=0):
    """Deterministic synthetic parameters mirroring InvZipNet.__init__."""
    key = jax.random.PRNGKey(seed)
    ops = []
    current = channel_in
    for i in range(down_num):
        ops.append(("haar", None))
        current *= 4
        for _ in range(block_num[i]):
            split1 = channel_out
            split2 = current - channel_out
            key, k1, k2, k3, k4 = jax.random.split(key, 5)
            ops.append(("block", dict(
                split_len1=split1,
                WF=0.1 * jax.random.normal(k1, (3, 3, split2, split1), jnp.float32),
                bF=0.05 * jax.random.normal(k2, (1, split1), jnp.float32),
                WG=0.1 * jax.random.normal(k3, (3, 3, split1, split2), jnp.float32),
                bG=0.05 * jax.random.normal(k4, (1, split2), jnp.float32),
                # nn.Parameters initialized to 1.0 in the PyTorch module:
                alpha1=1.0, alpha2=1.0, beta1=1.0, beta2=1.0,
            )))
    return ops


def inv_zip_net_forward(x_nchw, ops):
    x = jnp.transpose(x_nchw, (0, 2, 3, 1))   # NCHW -> NHWC (glue)
    for name, p in ops:
        if name == "haar":
            x = haar_downsample(x)
        else:
            x = inv_zip_block_forward(x, p)
    return jnp.transpose(x, (0, 3, 1, 2))     # NHWC -> NCHW (glue)


# ----------------------------------------------------------------------------
# Pure-JAX reference (correctness check)
# ----------------------------------------------------------------------------
def _ref_conv3x3(x, w, b):
    y = jax.lax.conv_general_dilated(
        x, w, window_strides=(1, 1), padding="SAME",
        dimension_numbers=("NHWC", "HWIO", "NHWC"),
        precision=jax.lax.Precision.HIGHEST)
    return y + b[0]


def _ref_forward(x_nchw, ops):
    x = jnp.transpose(x_nchw, (0, 2, 3, 1))
    for name, p in ops:
        if name == "haar":
            x00 = x[:, 0::2, 0::2, :]; x01 = x[:, 0::2, 1::2, :]
            x10 = x[:, 1::2, 0::2, :]; x11 = x[:, 1::2, 1::2, :]
            x = jnp.concatenate(
                [(x00 + x01 + x10 + x11), (x00 - x01 + x10 - x11),
                 (x00 + x01 - x10 - x11), (x00 - x01 - x10 + x11)], axis=-1) * 0.25
        else:
            c1 = p["split_len1"]
            x1, x2 = x[..., :c1], x[..., c1:]
            y1 = p["alpha1"] * p["beta2"] * (x1 + _ref_conv3x3(x2, p["WF"], p["bF"]))
            y2 = p["beta1"] * x2 + p["alpha2"] * _ref_conv3x3(y1 / p["beta2"], p["WG"], p["bG"])
            x = jnp.concatenate([y1, y2], axis=-1)
    return jnp.transpose(x, (0, 3, 1, 2))


if __name__ == "__main__":
    B, C, H, W = 2, 3, 16, 16                 # NCHW input, matches the PyTorch convention
    key = jax.random.PRNGKey(0)
    x = jax.random.normal(key, (B, C, H, W), jnp.float32)

    # channel_in=3, channel_out=3, down_num=1, block_num=[2], preprocess_op='Haar'
    ops = init_inv_zip_net(channel_in=C, channel_out=3, block_num=(2,), down_num=1)

    fwd = jax.jit(lambda inp: inv_zip_net_forward(inp, ops))
    out = jax.block_until_ready(fwd(x))

    assert out.shape == (B, 4 * C, H // 2, W // 2), out.shape
    ref = _ref_forward(x, ops)
    np.testing.assert_allclose(np.asarray(out), np.asarray(ref), rtol=1e-2, atol=1e-2)
    print("KERNEL_OK")
</pallas_src>

<mosaic_0001>
module attributes {stable_mosaic.version = 11 : i64} {
  func.func @_haar_kernel(%arg0: i32, %arg1: memref<1x8x2x8x6xf32, #tpu.memory_space<vmem>>, %arg2: memref<1x8x8x12xf32, #tpu.memory_space<vmem>>) attributes {dimension_semantics = [#tpu.dimension_semantics<parallel>], iteration_bounds = array<i64: 2>, scalar_prefetch = 0 : i64, scratch_operands = 0 : i64, tpu.core_type = #tpu.core_type<tc>, window_params = [{transform_indices = @transform_0, window_bounds = array<i64: 1, 8, 2, 8, 6>}, {transform_indices = @transform_1, window_bounds = array<i64: 1, 8, 8, 12>}]} {
    %c0 = arith.constant 0 : index
    %c0_0 = arith.constant 0 : index
    %c0_1 = arith.constant 0 : index
    %c0_2 = arith.constant 0 : index
    %c0_3 = arith.constant 0 : index
    %0 = vector.load %arg1[%c0, %c0_0, %c0_1, %c0_2, %c0_3] : memref<1x8x2x8x6xf32, #tpu.memory_space<vmem>>, vector<1x8x1x8x6xf32>
    %1 = vector.shape_cast %0 : vector<1x8x1x8x6xf32> to vector<8x8x6xf32>
    %c0_4 = arith.constant 0 : index
    %c0_5 = arith.constant 0 : index
    %c1 = arith.constant 1 : index
    %c0_6 = arith.constant 0 : index
    %c0_7 = arith.constant 0 : index
    %2 = vector.load %arg1[%c0_4, %c0_5, %c1, %c0_6, %c0_7] : memref<1x8x2x8x6xf32, #tpu.memory_space<vmem>>, vector<1x8x1x8x6xf32>
    %3 = vector.shape_cast %2 : vector<1x8x1x8x6xf32> to vector<8x8x6xf32>
    %4 = vector.extract_strided_slice %1 {offsets = [0, 0, 0], sizes = [8, 8, 3], strides = [1, 1, 1]} : vector<8x8x6xf32> to vector<8x8x3xf32>
    %5 = vector.extract_strided_slice %1 {offsets = [0, 0, 3], sizes = [8, 8, 3], strides = [1, 1, 1]} : vector<8x8x6xf32> to vector<8x8x3xf32>
    %6 = vector.extract_strided_slice %3 {offsets = [0, 0, 0], sizes = [8, 8, 3], strides = [1, 1, 1]} : vector<8x8x6xf32> to vector<8x8x3xf32>
    %7 = vector.extract_strided_slice %3 {offsets = [0, 0, 3], sizes = [8, 8, 3], strides = [1, 1, 1]} : vector<8x8x6xf32> to vector<8x8x3xf32>
    %8 = arith.addf %4, %5 : vector<8x8x3xf32>
    %9 = arith.addf %8, %6 : vector<8x8x3xf32>
    %10 = arith.addf %9, %7 : vector<8x8x3xf32>
    %cst = arith.constant 2.500000e-01 : f32
    %11 = vector.broadcast %cst : f32 to vector<8x8x3xf32>
    %12 = arith.mulf %10, %11 : vector<8x8x3xf32>
    %13 = arith.subf %4, %5 : vector<8x8x3xf32>
    %14 = arith.addf %13, %6 : vector<8x8x3xf32>
    %15 = arith.subf %14, %7 : vector<8x8x3xf32>
    %cst_8 = arith.constant 2.500000e-01 : f32
    %16 = vector.broadcast %cst_8 : f32 to vector<8x8x3xf32>
    %17 = arith.mulf %15, %16 : vector<8x8x3xf32>
    %18 = arith.addf %4, %5 : vector<8x8x3xf32>
    %19 = arith.subf %18, %6 : vector<8x8x3xf32>
    %20 = arith.subf %19, %7 : vector<8x8x3xf32>
    %cst_9 = arith.constant 2.500000e-01 : f32
    %21 = vector.broadcast %cst_9 : f32 to vector<8x8x3xf32>
    %22 = arith.mulf %20, %21 : vector<8x8x3xf32>
    %23 = arith.subf %4, %5 : vector<8x8x3xf32>
    %24 = arith.subf %23, %6 : vector<8x8x3xf32>
    %25 = arith.addf %24, %7 : vector<8x8x3xf32>
    %cst_10 = arith.constant 2.500000e-01 : f32
    %26 = vector.broadcast %cst_10 : f32 to vector<8x8x3xf32>
    %27 = arith.mulf %25, %26 : vector<8x8x3xf32>
    %28 = tpu.concatenate %12, %17, %22, %27 in 2 : vector<8x8x3xf32>, vector<8x8x3xf32>, vector<8x8x3xf32>, vector<8x8x3xf32> -> vector<8x8x12xf32>
    %c0_11 = arith.constant 0 : index
    %c0_12 = arith.constant 0 : index
    %c0_13 = arith.constant 0 : index
    %c0_14 = arith.constant 0 : index
    %29 = vector.load %arg2[%c0_11, %c0_12, %c0_13, %c0_14] : memref<1x8x8x12xf32, #tpu.memory_space<vmem>>, vector<1x8x8x12xf32>
    %30 = vector.shape_cast %29 : vector<1x8x8x12xf32> to vector<8x8x12xf32>
    %31 = vector.shape_cast %28 : vector<8x8x12xf32> to vector<1x8x8x12xf32>
    tpu.vector_store %arg2[%c0_11, %c0_12, %c0_13, %c0_14], %31 {strides = array<i32>} : memref<1x8x8x12xf32, #tpu.memory_space<vmem>>, vector<1x8x8x12xf32>,
    return
  }
  func.func @transform_0(%arg0: i32) -> (i32, i32, i32, i32, i32) {
    %c0_i32 = arith.constant 0 : i32
    %c0_i32_0 = arith.constant 0 : i32
    %c0_i32_1 = arith.constant 0 : i32
    %c0_i32_2 = arith.constant 0 : i32
    %c0_i32_3 = arith.constant 0 : i32
    return %arg0, %c0_i32, %c0_i32_0, %c0_i32_1, %c0_i32_2 : i32, i32, i32, i32, i32
  }
  func.func @transform_1(%arg0: i32) -> (i32, i32, i32, i32) {
    %c0_i32 = arith.constant 0 : i32
    %c0_i32_0 = arith.constant 0 : i32
    %c0_i32_1 = arith.constant 0 : i32
    %c0_i32_2 = arith.constant 0 : i32
    return %arg0, %c0_i32, %c0_i32_0, %c0_i32_1 : i32, i32, i32, i32
  }
}

module attributes {stable_mosaic.version = 11 : i64} {
  func.func @_block_kernel(%arg0: i32, %arg1: memref<1x8x8x12xf32, #tpu.memory_space<vmem>>, %arg2: memref<81x3xf32, #tpu.memory_space<vmem>>, %arg3: memref<1x3xf32, #tpu.memory_space<vmem>>, %arg4: memref<27x9xf32, #tpu.memory_space<vmem>>, %arg5: memref<1x9xf32, #tpu.memory_space<vmem>>, %arg6: memref<1x8x8x12xf32, #tpu.memory_space<vmem>>, %arg7: memref<10x10x9xf32, #tpu.memory_space<vmem>>, %arg8: memref<10x10x3xf32, #tpu.memory_space<vmem>>) attributes {dimension_semantics = [#tpu.dimension_semantics<parallel>], iteration_bounds = array<i64: 2>, scalar_prefetch = 0 : i64, scratch_operands = 2 : i64, tpu.core_type = #tpu.core_type<tc>, window_params = [{transform_indices = @transform_0, window_bounds = array<i64: 1, 8, 8, 12>}, {pipeline_mode = #tpu.pipeline_mode<synchronous>, transform_indices = @transform_1, window_bounds = array<i64: 81, 3>}, {pipeline_mode = #tpu.pipeline_mode<synchronous>, transform_indices = @transform_2, window_bounds = array<i64: 1, 3>}, {pipeline_mode = #tpu.pipeline_mode<synchronous>, transform_indices = @transform_3, window_bounds = array<i64: 27, 9>}, {pipeline_mode = #tpu.pipeline_mode<synchronous>, transform_indices = @transform_4, window_bounds = array<i64: 1, 9>}, {transform_indices = @transform_5, window_bounds = array<i64: 1, 8, 8, 12>}]} {
    %c0 = arith.constant 0 : index
    %c0_0 = arith.constant 0 : index
    %c0_1 = arith.constant 0 : index
    %c0_2 = arith.constant 0 : index
    %0 = vector.load %arg1[%c0, %c0_0, %c0_1, %c0_2] : memref<1x8x8x12xf32, #tpu.memory_space<vmem>>, vector<1x8x8x12xf32>
    %1 = vector.shape_cast %0 : vector<1x8x8x12xf32> to vector<8x8x12xf32>
    %2 = vector.extract_strided_slice %1 {offsets = [0, 0, 0], sizes = [8, 8, 3], strides = [1, 1, 1]} : vector<8x8x12xf32> to vector<8x8x3xf32>
    %3 = vector.shape_cast %2 : vector<8x8x3xf32> to vector<64x3xf32>
    %4 = vector.extract_strided_slice %1 {offsets = [0, 0, 3], sizes = [8, 8, 9], strides = [1, 1, 1]} : vector<8x8x12xf32> to vector<8x8x9xf32>
    %cst = arith.constant 0.000000e+00 : f32
    %5 = vector.broadcast %cst : f32 to vector<10x10x9xf32>
    %c0_3 = arith.constant 0 : index
    %c0_4 = arith.constant 0 : index
    %c0_5 = arith.constant 0 : index
    %6 = vector.load %arg7[%c0_3, %c0_4, %c0_5] : memref<10x10x9xf32, #tpu.memory_space<vmem>>, vector<10x10x9xf32>
    tpu.vector_store %arg7[%c0_3, %c0_4, %c0_5], %5 {strides = array<i32>} : memref<10x10x9xf32, #tpu.memory_space<vmem>>, vector<10x10x9xf32>,
    %c1 = arith.constant 1 : index
    %c1_6 = arith.constant 1 : index
    %c0_7 = arith.constant 0 : index
    %7 = vector.load %arg7[%c1, %c1_6, %c0_7] : memref<10x10x9xf32, #tpu.memory_space<vmem>>, vector<8x8x9xf32>
    tpu.vector_store %arg7[%c1, %c1_6, %c0_7], %4 {strides = array<i32>} : memref<10x10x9xf32, #tpu.memory_space<vmem>>, vector<8x8x9xf32>,
    %c0_8 = arith.constant 0 : index
    %c0_9 = arith.constant 0 : index
    %c0_10 = arith.constant 0 : index
    %8 = vector.load %arg7[%c0_8, %c0_9, %c0_10] : memref<10x10x9xf32, #tpu.memory_space<vmem>>, vector<10x10x9xf32>
    %9 = vector.extract_strided_slice %8 {offsets = [0, 0, 0], sizes = [8, 8, 9], strides = [1, 1, 1]} : vector<10x10x9xf32> to vector<8x8x9xf32>
    %10 = vector.shape_cast %9 : vector<8x8x9xf32> to vector<64x9xf32>
    %11 = vector.extract_strided_slice %8 {offsets = [0, 1, 0], sizes = [8, 8, 9], strides = [1, 1, 1]} : vector<10x10x9xf32> to vector<8x8x9xf32>
    %12 = vector.shape_cast %11 : vector<8x8x9xf32> to vector<64x9xf32>
    %13 = vector.extract_strided_slice %8 {offsets = [0, 2, 0], sizes = [8, 8, 9], strides = [1, 1, 1]} : vector<10x10x9xf32> to vector<8x8x9xf32>
    %14 = vector.shape_cast %13 : vector<8x8x9xf32> to vector<64x9xf32>
    %15 = vector.extract_strided_slice %8 {offsets = [1, 0, 0], sizes = [8, 8, 9], strides = [1, 1, 1]} : vector<10x10x9xf32> to vector<8x8x9xf32>
    %16 = vector.shape_cast %15 : vector<8x8x9xf32> to vector<64x9xf32>
    %17 = vector.extract_strided_slice %8 {offsets = [1, 1, 0], sizes = [8, 8, 9], strides = [1, 1, 1]} : vector<10x10x9xf32> to vector<8x8x9xf32>
    %18 = vector.shape_cast %17 : vector<8x8x9xf32> to vector<64x9xf32>
    %19 = vector.extract_strided_slice %8 {offsets = [1, 2, 0], sizes = [8, 8, 9], strides = [1, 1, 1]} : vector<10x10x9xf32> to vector<8x8x9xf32>
    %20 = vector.shape_cast %19 : vector<8x8x9xf32> to vector<64x9xf32>
    %21 = vector.extract_strided_slice %8 {offsets = [2, 0, 0], sizes = [8, 8, 9], strides = [1, 1, 1]} : vector<10x10x9xf32> to vector<8x8x9xf32>
    %22 = vector.shape_cast %21 : vector<8x8x9xf32> to vector<64x9xf32>
    %23 = vector.extract_strided_slice %8 {offsets = [2, 1, 0], sizes = [8, 8, 9], strides = [1, 1, 1]} : vector<10x10x9xf32> to vector<8x8x9xf32>
    %24 = vector.shape_cast %23 : vector<8x8x9xf32> to vector<64x9xf32>
    %25 = vector.extract_strided_slice %8 {offsets = [2, 2, 0], sizes = [8, 8, 9], strides = [1, 1, 1]} : vector<10x10x9xf32> to vector<8x8x9xf32>
    %26 = vector.shape_cast %25 : vector<8x8x9xf32> to vector<64x9xf32>
    %27 = tpu.concatenate %10, %12, %14, %16, %18, %20, %22, %24, %26 in 1 : vector<64x9xf32>, vector<64x9xf32>, vector<64x9xf32>, vector<64x9xf32>, vector<64x9xf32>, vector<64x9xf32>, vector<64x9xf32>, vector<64x9xf32>, vector<64x9xf32> -> vector<64x81xf32>
    %c0_11 = arith.constant 0 : index
    %c0_12 = arith.constant 0 : index
    %28 = vector.load %arg2[%c0_11, %c0_12] : memref<81x3xf32, #tpu.memory_space<vmem>>, vector<81x3xf32>
    %cst_13 = arith.constant dense<0.000000e+00> : vector<64x3xf32>
    %29 = tpu.matmul %27, %28, %cst_13 {dimension_numbers = #tpu.dot_dimension_numbers<[1], [0], [0], [1], [0, 0, 1, 1], [], []>} : vector<64x81xf32>, vector<81x3xf32>, vector<64x3xf32> -> vector<64x3xf32>
    %c0_14 = arith.constant 0 : index
    %c0_15 = arith.constant 0 : index
    %30 = vector.load %arg3[%c0_14, %c0_15] : memref<1x3xf32, #tpu.memory_space<vmem>>, vector<1x3xf32>
    %31 = vector.broadcast %30 : vector<1x3xf32> to vector<64x3xf32>
    %32 = arith.addf %29, %31 : vector<64x3xf32>
    %33 = arith.addf %3, %32 : vector<64x3xf32>
    %cst_16 = arith.constant 1.000000e+00 : f32
    %34 = vector.broadcast %cst_16 : f32 to vector<64x3xf32>
    %35 = arith.mulf %34, %33 : vector<64x3xf32>
    %cst_17 = arith.constant 1.000000e+00 : f32
    %36 = vector.broadcast %cst_17 : f32 to vector<64x3xf32>
    %37 = arith.mulf %36, %33 : vector<64x3xf32>
    %cst_18 = arith.constant 0.000000e+00 : f32
    %38 = vector.broadcast %cst_18 : f32 to vector<10x10x3xf32>
    %c0_19 = arith.constant 0 : index
    %c0_20 = arith.constant 0 : index
    %c0_21 = arith.constant 0 : index
    %39 = vector.load %arg8[%c0_19, %c0_20, %c0_21] : memref<10x10x3xf32, #tpu.memory_space<vmem>>, vector<10x10x3xf32>
    tpu.vector_store %arg8[%c0_19, %c0_20, %c0_21], %38 {strides = array<i32>} : memref<10x10x3xf32, #tpu.memory_space<vmem>>, vector<10x10x3xf32>,
    %40 = vector.shape_cast %37 : vector<64x3xf32> to vector<8x8x3xf32>
    %c1_22 = arith.constant 1 : index
    %c1_23 = arith.constant 1 : index
    %c0_24 = arith.constant 0 : index
    %41 = vector.load %arg8[%c1_22, %c1_23, %c0_24] : memref<10x10x3xf32, #tpu.memory_space<vmem>>, vector<8x8x3xf32>
    tpu.vector_store %arg8[%c1_22, %c1_23, %c0_24], %40 {strides = array<i32>} : memref<10x10x3xf32, #tpu.memory_space<vmem>>, vector<8x8x3xf32>,
    %c0_25 = arith.constant 0 : index
    %c0_26 = arith.constant 0 : index
    %c0_27 = arith.constant 0 : index
    %42 = vector.load %arg8[%c0_25, %c0_26, %c0_27] : memref<10x10x3xf32, #tpu.memory_space<vmem>>, vector<10x10x3xf32>
    %43 = vector.extract_strided_slice %42 {offsets = [0, 0, 0], sizes = [8, 8, 3], strides = [1, 1, 1]} : vector<10x10x3xf32> to vector<8x8x3xf32>
    %44 = vector.shape_cast %43 : vector<8x8x3xf32> to vector<64x3xf32>
    %45 = vector.extract_strided_slice %42 {offsets = [0, 1, 0], sizes = [8, 8, 3], strides = [1, 1, 1]} : vector<10x10x3xf32> to vector<8x8x3xf32>
    %46 = vector.shape_cast %45 : vector<8x8x3xf32> to vector<64x3xf32>
    %47 = vector.extract_strided_slice %42 {offsets = [0, 2, 0], sizes = [8, 8, 3], strides = [1, 1, 1]} : vector<10x10x3xf32> to vector<8x8x3xf32>
    %48 = vector.shape_cast %47 : vector<8x8x3xf32> to vector<64x3xf32>
    %49 = vector.extract_strided_slice %42 {offsets = [1, 0, 0], sizes = [8, 8, 3], strides = [1, 1, 1]} : vector<10x10x3xf32> to vector<8x8x3xf32>
    %50 = vector.shape_cast %49 : vector<8x8x3xf32> to vector<64x3xf32>
    %51 = vector.extract_strided_slice %42 {offsets = [1, 1, 0], sizes = [8, 8, 3], strides = [1, 1, 1]} : vector<10x10x3xf32> to vector<8x8x3xf32>
    %52 = vector.shape_cast %51 : vector<8x8x3xf32> to vector<64x3xf32>
    %53 = vector.extract_strided_slice %42 {offsets = [1, 2, 0], sizes = [8, 8, 3], strides = [1, 1, 1]} : vector<10x10x3xf32> to vector<8x8x3xf32>
    %54 = vector.shape_cast %53 : vector<8x8x3xf32> to vector<64x3xf32>
    %55 = vector.extract_strided_slice %42 {offsets = [2, 0, 0], sizes = [8, 8, 3], strides = [1, 1, 1]} : vector<10x10x3xf32> to vector<8x8x3xf32>
    %56 = vector.shape_cast %55 : vector<8x8x3xf32> to vector<64x3xf32>
    %57 = vector.extract_strided_slice %42 {offsets = [2, 1, 0], sizes = [8, 8, 3], strides = [1, 1, 1]} : vector<10x10x3xf32> to vector<8x8x3xf32>
    %58 = vector.shape_cast %57 : vector<8x8x3xf32> to vector<64x3xf32>
    %59 = vector.extract_strided_slice %42 {offsets = [2, 2, 0], sizes = [8, 8, 3], strides = [1, 1, 1]} : vector<10x10x3xf32> to vector<8x8x3xf32>
    %60 = vector.shape_cast %59 : vector<8x8x3xf32> to vector<64x3xf32>
    %61 = tpu.concatenate %44, %46, %48, %50, %52, %54, %56, %58, %60 in 1 : vector<64x3xf32>, vector<64x3xf32>, vector<64x3xf32>, vector<64x3xf32>, vector<64x3xf32>, vector<64x3xf32>, vector<64x3xf32>, vector<64x3xf32>, vector<64x3xf32> -> vector<64x27xf32>
    %c0_28 = arith.constant 0 : index
    %c0_29 = arith.constant 0 : index
    %62 = vector.load %arg4[%c0_28, %c0_29] : memref<27x9xf32, #tpu.memory_space<vmem>>, vector<27x9xf32>
    %cst_30 = arith.constant dense<0.000000e+00> : vector<64x9xf32>
    %63 = tpu.matmul %61, %62, %cst_30 {dimension_numbers = #tpu.dot_dimension_numbers<[1], [0], [0], [1], [0, 0, 1, 1], [], []>} : vector<64x27xf32>, vector<27x9xf32>, vector<64x9xf32> -> vector<64x9xf32>
    %c0_31 = arith.constant 0 : index
    %c0_32 = arith.constant 0 : index
    %64 = vector.load %arg5[%c0_31, %c0_32] : memref<1x9xf32, #tpu.memory_space<vmem>>, vector<1x9xf32>
    %65 = vector.broadcast %64 : vector<1x9xf32> to vector<64x9xf32>
    %66 = arith.addf %63, %65 : vector<64x9xf32>
    %67 = vector.shape_cast %4 : vector<8x8x9xf32> to vector<64x9xf32>
    %cst_33 = arith.constant 1.000000e+00 : f32
    %68 = vector.broadcast %cst_33 : f32 to vector<64x9xf32>
    %69 = arith.mulf %68, %67 : vector<64x9xf32>
    %cst_34 = arith.constant 1.000000e+00 : f32
    %70 = vector.broadcast %cst_34 : f32 to vector<64x9xf32>
    %71 = arith.mulf %70, %66 : vector<64x9xf32>
    %72 = arith.addf %69, %71 : vector<64x9xf32>
    %73 = tpu.concatenate %35, %72 in 1 : vector<64x3xf32>, vector<64x9xf32> -> vector<64x12xf32>
    %74 = vector.shape_cast %73 : vector<64x12xf32> to vector<8x8x12xf32>
    %c0_35 = arith.constant 0 : index
    %c0_36 = arith.constant 0 : index
    %c0_37 = arith.constant 0 : index
    %c0_38 = arith.constant 0 : index
    %75 = vector.load %arg6[%c0_35, %c0_36, %c0_37, %c0_38] : memref<1x8x8x12xf32, #tpu.memory_space<vmem>>, vector<1x8x8x12xf32>
    %76 = vector.shape_cast %75 : vector<1x8x8x12xf32> to vector<8x8x12xf32>
    %77 = vector.shape_cast %74 : vector<8x8x12xf32> to vector<1x8x8x12xf32>
    tpu.vector_store %arg6[%c0_35, %c0_36, %c0_37, %c0_38], %77 {strides = array<i32>} : memref<1x8x8x12xf32, #tpu.memory_space<vmem>>, vector<1x8x8x12xf32>,
    return
  }
  func.func @transform_0(%arg0: i32) -> (i32, i32, i32, i32) {
    %c0_i32 = arith.constant 0 : i32
    %c0_i32_0 = arith.constant 0 : i32
    %c0_i32_1 = arith.constant 0 : i32
    %c0_i32_2 = arith.constant 0 : i32
    return %arg0, %c0_i32, %c0_i32_0, %c0_i32_1 : i32, i32, i32, i32
  }
  func.func @transform_1(%arg0: i32) -> (i32, i32) {
    %c0_i32 = arith.constant 0 : i32
    %c0_i32_0 = arith.constant 0 : i32
    %c0_i32_1 = arith.constant 0 : i32
    return %c0_i32, %c0_i32_0 : i32, i32
  }
  func.func @transform_2(%arg0: i32) -> (i32, i32) {
    %c0_i32 = arith.constant 0 : i32
    %c0_i32_0 = arith.constant 0 : i32
    %c0_i32_1 = arith.constant 0 : i32
    return %c0_i32, %c0_i32_0 : i32, i32
  }
  func.func @transform_3(%arg0: i32) -> (i32, i32) {
    %c0_i32 = arith.constant 0 : i32
    %c0_i32_0 = arith.constant 0 : i32
    %c0_i32_1 = arith.constant 0 : i32
    return %c0_i32, %c0_i32_0 : i32, i32
  }
  func.func @transform_4(%arg0: i32) -> (i32, i32) {
    %c0_i32 = arith.constant 0 : i32
    %c0_i32_0 = arith.constant 0 : i32
    %c0_i32_1 = arith.constant 0 : i32
    return %c0_i32, %c0_i32_0 : i32, i32
  }
  func.func @transform_5(%arg0: i32) -> (i32, i32, i32, i32) {
    %c0_i32 = arith.constant 0 : i32
    %c0_i32_0 = arith.constant 0 : i32
    %c0_i32_1 = arith.constant 0 : i32
    %c0_i32_2 = arith.constant 0 : i32
    return %arg0, %c0_i32, %c0_i32_0, %c0_i32_1 : i32, i32, i32, i32
  }
}

module attributes {stable_mosaic.version = 11 : i64} {
  func.func @_block_kernel(%arg0: i32, %arg1: memref<1x8x8x12xf32, #tpu.memory_space<vmem>>, %arg2: memref<81x3xf32, #tpu.memory_space<vmem>>, %arg3: memref<1x3xf32, #tpu.memory_space<vmem>>, %arg4: memref<27x9xf32, #tpu.memory_space<vmem>>, %arg5: memref<1x9xf32, #tpu.memory_space<vmem>>, %arg6: memref<1x8x8x12xf32, #tpu.memory_space<vmem>>, %arg7: memref<10x10x9xf32, #tpu.memory_space<vmem>>, %arg8: memref<10x10x3xf32, #tpu.memory_space<vmem>>) attributes {dimension_semantics = [#tpu.dimension_semantics<parallel>], iteration_bounds = array<i64: 2>, scalar_prefetch = 0 : i64, scratch_operands = 2 : i64, tpu.core_type = #tpu.core_type<tc>, window_params = [{transform_indices = @transform_0, window_bounds = array<i64: 1, 8, 8, 12>}, {pipeline_mode = #tpu.pipeline_mode<synchronous>, transform_indices = @transform_1, window_bounds = array<i64: 81, 3>}, {pipeline_mode = #tpu.pipeline_mode<synchronous>, transform_indices = @transform_2, window_bounds = array<i64: 1, 3>}, {pipeline_mode = #tpu.pipeline_mode<synchronous>, transform_indices = @transform_3, window_bounds = array<i64: 27, 9>}, {pipeline_mode = #tpu.pipeline_mode<synchronous>, transform_indices = @transform_4, window_bounds = array<i64: 1, 9>}, {transform_indices = @transform_5, window_bounds = array<i64: 1, 8, 8, 12>}]} {
    %c0 = arith.constant 0 : index
    %c0_0 = arith.constant 0 : index
    %c0_1 = arith.constant 0 : index
    %c0_2 = arith.constant 0 : index
    %0 = vector.load %arg1[%c0, %c0_0, %c0_1, %c0_2] : memref<1x8x8x12xf32, #tpu.memory_space<vmem>>, vector<1x8x8x12xf32>
    %1 = vector.shape_cast %0 : vector<1x8x8x12xf32> to vector<8x8x12xf32>
    %2 = vector.extract_strided_slice %1 {offsets = [0, 0, 0], sizes = [8, 8, 3], strides = [1, 1, 1]} : vector<8x8x12xf32> to vector<8x8x3xf32>
    %3 = vector.shape_cast %2 : vector<8x8x3xf32> to vector<64x3xf32>
    %4 = vector.extract_strided_slice %1 {offsets = [0, 0, 3], sizes = [8, 8, 9], strides = [1, 1, 1]} : vector<8x8x12xf32> to vector<8x8x9xf32>
    %cst = arith.constant 0.000000e+00 : f32
    %5 = vector.broadcast %cst : f32 to vector<10x10x9xf32>
    %c0_3 = arith.constant 0 : index
    %c0_4 = arith.constant 0 : index
    %c0_5 = arith.constant 0 : index
    %6 = vector.load %arg7[%c0_3, %c0_4, %c0_5] : memref<10x10x9xf32, #tpu.memory_space<vmem>>, vector<10x10x9xf32>
    tpu.vector_store %arg7[%c0_3, %c0_4, %c0_5], %5 {strides = array<i32>} : memref<10x10x9xf32, #tpu.memory_space<vmem>>, vector<10x10x9xf32>,
    %c1 = arith.constant 1 : index
    %c1_6 = arith.constant 1 : index
    %c0_7 = arith.constant 0 : index
    %7 = vector.load %arg7[%c1, %c1_6, %c0_7] : memref<10x10x9xf32, #tpu.memory_space<vmem>>, vector<8x8x9xf32>
    tpu.vector_store %arg7[%c1, %c1_6, %c0_7], %4 {strides = array<i32>} : memref<10x10x9xf32, #tpu.memory_space<vmem>>, vector<8x8x9xf32>,
    %c0_8 = arith.constant 0 : index
    %c0_9 = arith.constant 0 : index
    %c0_10 = arith.constant 0 : index
    %8 = vector.load %arg7[%c0_8, %c0_9, %c0_10] : memref<10x10x9xf32, #tpu.memory_space<vmem>>, vector<10x10x9xf32>
    %9 = vector.extract_strided_slice %8 {offsets = [0, 0, 0], sizes = [8, 8, 9], strides = [1, 1, 1]} : vector<10x10x9xf32> to vector<8x8x9xf32>
    %10 = vector.shape_cast %9 : vector<8x8x9xf32> to vector<64x9xf32>
    %11 = vector.extract_strided_slice %8 {offsets = [0, 1, 0], sizes = [8, 8, 9], strides = [1, 1, 1]} : vector<10x10x9xf32> to vector<8x8x9xf32>
    %12 = vector.shape_cast %11 : vector<8x8x9xf32> to vector<64x9xf32>
    %13 = vector.extract_strided_slice %8 {offsets = [0, 2, 0], sizes = [8, 8, 9], strides = [1, 1, 1]} : vector<10x10x9xf32> to vector<8x8x9xf32>
    %14 = vector.shape_cast %13 : vector<8x8x9xf32> to vector<64x9xf32>
    %15 = vector.extract_strided_slice %8 {offsets = [1, 0, 0], sizes = [8, 8, 9], strides = [1, 1, 1]} : vector<10x10x9xf32> to vector<8x8x9xf32>
    %16 = vector.shape_cast %15 : vector<8x8x9xf32> to vector<64x9xf32>
    %17 = vector.extract_strided_slice %8 {offsets = [1, 1, 0], sizes = [8, 8, 9], strides = [1, 1, 1]} : vector<10x10x9xf32> to vector<8x8x9xf32>
    %18 = vector.shape_cast %17 : vector<8x8x9xf32> to vector<64x9xf32>
    %19 = vector.extract_strided_slice %8 {offsets = [1, 2, 0], sizes = [8, 8, 9], strides = [1, 1, 1]} : vector<10x10x9xf32> to vector<8x8x9xf32>
    %20 = vector.shape_cast %19 : vector<8x8x9xf32> to vector<64x9xf32>
    %21 = vector.extract_strided_slice %8 {offsets = [2, 0, 0], sizes = [8, 8, 9], strides = [1, 1, 1]} : vector<10x10x9xf32> to vector<8x8x9xf32>
    %22 = vector.shape_cast %21 : vector<8x8x9xf32> to vector<64x9xf32>
    %23 = vector.extract_strided_slice %8 {offsets = [2, 1, 0], sizes = [8, 8, 9], strides = [1, 1, 1]} : vector<10x10x9xf32> to vector<8x8x9xf32>
    %24 = vector.shape_cast %23 : vector<8x8x9xf32> to vector<64x9xf32>
    %25 = vector.extract_strided_slice %8 {offsets = [2, 2, 0], sizes = [8, 8, 9], strides = [1, 1, 1]} : vector<10x10x9xf32> to vector<8x8x9xf32>
    %26 = vector.shape_cast %25 : vector<8x8x9xf32> to vector<64x9xf32>
    %27 = tpu.concatenate %10, %12, %14, %16, %18, %20, %22, %24, %26 in 1 : vector<64x9xf32>, vector<64x9xf32>, vector<64x9xf32>, vector<64x9xf32>, vector<64x9xf32>, vector<64x9xf32>, vector<64x9xf32>, vector<64x9xf32>, vector<64x9xf32> -> vector<64x81xf32>
    %c0_11 = arith.constant 0 : index
    %c0_12 = arith.constant 0 : index
    %28 = vector.load %arg2[%c0_11, %c0_12] : memref<81x3xf32, #tpu.memory_space<vmem>>, vector<81x3xf32>
    %cst_13 = arith.constant dense<0.000000e+00> : vector<64x3xf32>
    %29 = tpu.matmul %27, %28, %cst_13 {dimension_numbers = #tpu.dot_dimension_numbers<[1], [0], [0], [1], [0, 0, 1, 1], [], []>} : vector<64x81xf32>, vector<81x3xf32>, vector<64x3xf32> -> vector<64x3xf32>
    %c0_14 = arith.constant 0 : index
    %c0_15 = arith.constant 0 : index
    %30 = vector.load %arg3[%c0_14, %c0_15] : memref<1x3xf32, #tpu.memory_space<vmem>>, vector<1x3xf32>
    %31 = vector.broadcast %30 : vector<1x3xf32> to vector<64x3xf32>
    %32 = arith.addf %29, %31 : vector<64x3xf32>
    %33 = arith.addf %3, %32 : vector<64x3xf32>
    %cst_16 = arith.constant 1.000000e+00 : f32
    %34 = vector.broadcast %cst_16 : f32 to vector<64x3xf32>
    %35 = arith.mulf %34, %33 : vector<64x3xf32>
    %cst_17 = arith.constant 1.000000e+00 : f32
    %36 = vector.broadcast %cst_17 : f32 to vector<64x3xf32>
    %37 = arith.mulf %36, %33 : vector<64x3xf32>
    %cst_18 = arith.constant 0.000000e+00 : f32
    %38 = vector.broadcast %cst_18 : f32 to vector<10x10x3xf32>
    %c0_19 = arith.constant 0 : index
    %c0_20 = arith.constant 0 : index
    %c0_21 = arith.constant 0 : index
    %39 = vector.load %arg8[%c0_19, %c0_20, %c0_21] : memref<10x10x3xf32, #tpu.memory_space<vmem>>, vector<10x10x3xf32>
    tpu.vector_store %arg8[%c0_19, %c0_20, %c0_21], %38 {strides = array<i32>} : memref<10x10x3xf32, #tpu.memory_space<vmem>>, vector<10x10x3xf32>,
    %40 = vector.shape_cast %37 : vector<64x3xf32> to vector<8x8x3xf32>
    %c1_22 = arith.constant 1 : index
    %c1_23 = arith.constant 1 : index
    %c0_24 = arith.constant 0 : index
    %41 = vector.load %arg8[%c1_22, %c1_23, %c0_24] : memref<10x10x3xf32, #tpu.memory_space<vmem>>, vector<8x8x3xf32>
    tpu.vector_store %arg8[%c1_22, %c1_23, %c0_24], %40 {strides = array<i32>} : memref<10x10x3xf32, #tpu.memory_space<vmem>>, vector<8x8x3xf32>,
    %c0_25 = arith.constant 0 : index
    %c0_26 = arith.constant 0 : index
    %c0_27 = arith.constant 0 : index
    %42 = vector.load %arg8[%c0_25, %c0_26, %c0_27] : memref<10x10x3xf32, #tpu.memory_space<vmem>>, vector<10x10x3xf32>
    %43 = vector.extract_strided_slice %42 {offsets = [0, 0, 0], sizes = [8, 8, 3], strides = [1, 1, 1]} : vector<10x10x3xf32> to vector<8x8x3xf32>
    %44 = vector.shape_cast %43 : vector<8x8x3xf32> to vector<64x3xf32>
    %45 = vector.extract_strided_slice %42 {offsets = [0, 1, 0], sizes = [8, 8, 3], strides = [1, 1, 1]} : vector<10x10x3xf32> to vector<8x8x3xf32>
    %46 = vector.shape_cast %45 : vector<8x8x3xf32> to vector<64x3xf32>
    %47 = vector.extract_strided_slice %42 {offsets = [0, 2, 0], sizes = [8, 8, 3], strides = [1, 1, 1]} : vector<10x10x3xf32> to vector<8x8x3xf32>
    %48 = vector.shape_cast %47 : vector<8x8x3xf32> to vector<64x3xf32>
    %49 = vector.extract_strided_slice %42 {offsets = [1, 0, 0], sizes = [8, 8, 3], strides = [1, 1, 1]} : vector<10x10x3xf32> to vector<8x8x3xf32>
    %50 = vector.shape_cast %49 : vector<8x8x3xf32> to vector<64x3xf32>
    %51 = vector.extract_strided_slice %42 {offsets = [1, 1, 0], sizes = [8, 8, 3], strides = [1, 1, 1]} : vector<10x10x3xf32> to vector<8x8x3xf32>
    %52 = vector.shape_cast %51 : vector<8x8x3xf32> to vector<64x3xf32>
    %53 = vector.extract_strided_slice %42 {offsets = [1, 2, 0], sizes = [8, 8, 3], strides = [1, 1, 1]} : vector<10x10x3xf32> to vector<8x8x3xf32>
    %54 = vector.shape_cast %53 : vector<8x8x3xf32> to vector<64x3xf32>
    %55 = vector.extract_strided_slice %42 {offsets = [2, 0, 0], sizes = [8, 8, 3], strides = [1, 1, 1]} : vector<10x10x3xf32> to vector<8x8x3xf32>
    %56 = vector.shape_cast %55 : vector<8x8x3xf32> to vector<64x3xf32>
    %57 = vector.extract_strided_slice %42 {offsets = [2, 1, 0], sizes = [8, 8, 3], strides = [1, 1, 1]} : vector<10x10x3xf32> to vector<8x8x3xf32>
    %58 = vector.shape_cast %57 : vector<8x8x3xf32> to vector<64x3xf32>
    %59 = vector.extract_strided_slice %42 {offsets = [2, 2, 0], sizes = [8, 8, 3], strides = [1, 1, 1]} : vector<10x10x3xf32> to vector<8x8x3xf32>
    %60 = vector.shape_cast %59 : vector<8x8x3xf32> to vector<64x3xf32>
    %61 = tpu.concatenate %44, %46, %48, %50, %52, %54, %56, %58, %60 in 1 : vector<64x3xf32>, vector<64x3xf32>, vector<64x3xf32>, vector<64x3xf32>, vector<64x3xf32>, vector<64x3xf32>, vector<64x3xf32>, vector<64x3xf32>, vector<64x3xf32> -> vector<64x27xf32>
    %c0_28 = arith.constant 0 : index
    %c0_29 = arith.constant 0 : index
    %62 = vector.load %arg4[%c0_28, %c0_29] : memref<27x9xf32, #tpu.memory_space<vmem>>, vector<27x9xf32>
    %cst_30 = arith.constant dense<0.000000e+00> : vector<64x9xf32>
    %63 = tpu.matmul %61, %62, %cst_30 {dimension_numbers = #tpu.dot_dimension_numbers<[1], [0], [0], [1], [0, 0, 1, 1], [], []>} : vector<64x27xf32>, vector<27x9xf32>, vector<64x9xf32> -> vector<64x9xf32>
    %c0_31 = arith.constant 0 : index
    %c0_32 = arith.constant 0 : index
    %64 = vector.load %arg5[%c0_31, %c0_32] : memref<1x9xf32, #tpu.memory_space<vmem>>, vector<1x9xf32>
    %65 = vector.broadcast %64 : vector<1x9xf32> to vector<64x9xf32>
    %66 = arith.addf %63, %65 : vector<64x9xf32>
    %67 = vector.shape_cast %4 : vector<8x8x9xf32> to vector<64x9xf32>
    %cst_33 = arith.constant 1.000000e+00 : f32
    %68 = vector.broadcast %cst_33 : f32 to vector<64x9xf32>
    %69 = arith.mulf %68, %67 : vector<64x9xf32>
    %cst_34 = arith.constant 1.000000e+00 : f32
    %70 = vector.broadcast %cst_34 : f32 to vector<64x9xf32>
    %71 = arith.mulf %70, %66 : vector<64x9xf32>
    %72 = arith.addf %69, %71 : vector<64x9xf32>
    %73 = tpu.concatenate %35, %72 in 1 : vector<64x3xf32>, vector<64x9xf32> -> vector<64x12xf32>
    %74 = vector.shape_cast %73 : vector<64x12xf32> to vector<8x8x12xf32>
    %c0_35 = arith.constant 0 : index
    %c0_36 = arith.constant 0 : index
    %c0_37 = arith.constant 0 : index
    %c0_38 = arith.constant 0 : index
    %75 = vector.load %arg6[%c0_35, %c0_36, %c0_37, %c0_38] : memref<1x8x8x12xf32, #tpu.memory_space<vmem>>, vector<1x8x8x12xf32>
    %76 = vector.shape_cast %75 : vector<1x8x8x12xf32> to vector<8x8x12xf32>
    %77 = vector.shape_cast %74 : vector<8x8x12xf32> to vector<1x8x8x12xf32>
    tpu.vector_store %arg6[%c0_35, %c0_36, %c0_37, %c0_38], %77 {strides = array<i32>} : memref<1x8x8x12xf32, #tpu.memory_space<vmem>>, vector<1x8x8x12xf32>,
    return
  }
  func.func @transform_0(%arg0: i32) -> (i32, i32, i32, i32) {
    %c0_i32 = arith.constant 0 : i32
    %c0_i32_0 = arith.constant 0 : i32
    %c0_i32_1 = arith.constant 0 : i32
    %c0_i32_2 = arith.constant 0 : i32
    return %arg0, %c0_i32, %c0_i32_0, %c0_i32_1 : i32, i32, i32, i32
  }
  func.func @transform_1(%arg0: i32) -> (i32, i32) {
    %c0_i32 = arith.constant 0 : i32
    %c0_i32_0 = arith.constant 0 : i32
    %c0_i32_1 = arith.constant 0 : i32
    return %c0_i32, %c0_i32_0 : i32, i32
  }
  func.func @transform_2(%arg0: i32) -> (i32, i32) {
    %c0_i32 = arith.constant 0 : i32
    %c0_i32_0 = arith.constant 0 : i32
    %c0_i32_1 = arith.constant 0 : i32
    return %c0_i32, %c0_i32_0 : i32, i32
  }
  func.func @transform_3(%arg0: i32) -> (i32, i32) {
    %c0_i32 = arith.constant 0 : i32
    %c0_i32_0 = arith.constant 0 : i32
    %c0_i32_1 = arith.constant 0 : i32
    return %c0_i32, %c0_i32_0 : i32, i32
  }
  func.func @transform_4(%arg0: i32) -> (i32, i32) {
    %c0_i32 = arith.constant 0 : i32
    %c0_i32_0 = arith.constant 0 : i32
    %c0_i32_1 = arith.constant 0 : i32
    return %c0_i32, %c0_i32_0 : i32, i32
  }
  func.func @transform_5(%arg0: i32) -> (i32, i32, i32, i32) {
    %c0_i32 = arith.constant 0 : i32
    %c0_i32_0 = arith.constant 0 : i32
    %c0_i32_1 = arith.constant 0 : i32
    %c0_i32_2 = arith.constant 0 : i32
    return %arg0, %c0_i32, %c0_i32_0, %c0_i32_1 : i32, i32, i32, i32
  }
}

</mosaic_0001>

<bundles_post_ra>
// kernel: _lambda_.3
= control target key start
LH: loop header
LB: loop body
LE: loop exit
PB: predicated region body
PF: predicated region fallthrough
CT: control target
= control target key end

     0   :  { %s552_s6 = smov 0   ;;  %s881_s0 = inlined_call_operand.vmem [shape: f32[2,8,2,8,6], index: 0, kind: input, shape index: {}]   ;;  %s882_s1 = inlined_call_operand.vmem [shape: f32[2,8,8,12], index: 1, kind: output, shape index: {}]  }
   0x1 LB: > { %s497_s7 = sadd.s32 4294967295, %s536_s6   ;;  %p501_p0 = scmp.ge.s32.totalorder %s536_s6, 1  ;;  %s536_s6 = sphi %s552_s6, %s11_s6  }
   0x2   : > { %p87_p1 = scmp.lt.s32.totalorder %s536_s6, 3 }
   0x4   : > { %p88_p2 = pnand %p501_p0, %p87_p1 }
   0x5   : > { %p107_p3 = scmp.lt.s32.totalorder (!%p88_p2), %s497_s7, 1  ;;  %s538_s12 = smov (!%p88_p2), 125  }
   0x6   : > { %91 = sbr.rel (%p88_p2) target bundleno = 331 (0x14b), region = 24  ;;  %s539_s13 = smov (!%p88_p2), 3  }
   0x7   : > { %s540_s14 = smov (!%p88_p2), 6   ;;  %s541_s15 = smov (!%p88_p2), 9  }
   0xb   : > { %s884_s7 = smov (!%p107_p3, %s497_s7), 1  ;;  %vm406_vm0 = vcmask 23552   ;;  %vm424_vm1 = vcmask 72704   ;;  %vm415_vm2 = vcmask 48128   ;;  %vm433_vm3 = vcmask 97280  }
   0xc   : > { %s516_s8 = sshll.u32 %s884_s7, 7  ;;  %s517_s16 = sshll.u32 %s884_s7, 6 }
   0xd   : > { %s566_s11 = scalar_lea.vmem %s881_s0, %s516_s8  ;;  %s822_s19 = scalar_lea.vmem %s882_s1, %s517_s16 }
   0xe   : > { %v569_v0 = vld [vmem:[%s566_s11 + $0x20] sm:$0xff]  ;;  %v120_v3 = vld [vmem:[%s566_s11 + $0x30] sm:$0xff]  ;;  %v596_v8 = vld [vmem:[%s566_s11 + $0x8] sm:$0xff] }
   0xf   : > { %v117_v1 = vld [vmem:[%s566_s11] sm:$0xff]  ;;  %146 = vrot.lane.b32.xlu1 %v569_v0, %s538_s12  ;;  %v118_v4 = vld [vmem:[%s566_s11 + $0x10] sm:$0xff]  ;;  %v605_v9 = vld [vmem:[%s566_s11 + $0x28] sm:$0xff] }
  0x10   : > { %142 = vrot.lane.b32.xlu0 %v117_v1, %s538_s12  ;;  %v576_v2 = vld [vmem:[%s566_s11 + $0x40] sm:$0xff]  ;;  %v583_v5 = vld [vmem:[%s566_s11 + $0x50] sm:$0xff]  ;;  %v608_v10 = vld [vmem:[%s566_s11 + $0x18] sm:$0xff] }
  0x11   : > { %150 = vrot.lane.b32.xlu2 %v576_v2, %s538_s12  ;;  %v590_v6 = vld [vmem:[%s566_s11 + $0x70] sm:$0xff]  ;;  %v593_v7 = vld [vmem:[%s566_s11 + $0x60] sm:$0xff]  ;;  %v611_v11 = vld [vmem:[%s566_s11 + $0x38] sm:$0xff] }
  0x12   : > { %v620_v12 = vld [vmem:[%s566_s11 + $0x58] sm:$0xff]  ;;  %v623_v13 = vld [vmem:[%s566_s11 + $0x48] sm:$0xff] }
  0x13   : > { %v626_v14 = vld [vmem:[%s566_s11 + $0x68] sm:$0xff]  ;;  %v635_v15 = vld [vmem:[%s566_s11 + $0x78] sm:$0xff] }
  0x17   : > { %148 = vrot.lane.b32.xlu1 %v120_v3, %s538_s12 }
  0x18   : > { %144 = vrot.lane.b32.xlu0 %v118_v4, %s538_s12 }
  0x19   : > { %152 = vrot.lane.b32.xlu2 %v583_v5, %s538_s12 }
  0x1f   : > { %156 = vrot.lane.b32.xlu1 %v590_v6, %s538_s12 }
  0x20   : > { %154 = vrot.lane.b32.xlu0 %v593_v7, %s538_s12 }
  0x21   : > { %190 = vrot.lane.b32.xlu2 %v596_v8, %s538_s12 }
  0x27   : > { %194 = vrot.lane.b32.xlu1 %v605_v9, %s538_s12 }
  0x28   : > { %192 = vrot.lane.b32.xlu0 %v608_v10, %s538_s12 }
  0x29   : > { %196 = vrot.lane.b32.xlu2 %v611_v11, %s538_s12 }
  0x2f   : > { %200 = vrot.lane.b32.xlu1 %v620_v12, %s538_s12 }
  0x30   : > { %198 = vrot.lane.b32.xlu0 %v623_v13, %s538_s12 }
  0x31   : > { %202 = vrot.lane.b32.xlu2 %v626_v14, %s538_s12 }
  0x38   : > { %204 = vrot.lane.b32.xlu0 %v635_v15, %s538_s12 }
  0x6b   : > { %v151_v16 = vpop.permute.xlu2 %150 }
  0x6c   : > { %v640_v17 = vadd.f32 %v151_v16, %v576_v2  ;;  %v711_v63 = vsub.f32 %v576_v2, %v151_v16 }
  0x6e   : > { %v178_v18 = vadd.f32 %v623_v13, %v640_v17 }
  0x73   : > { %v644_v19 = vpop.permute.xlu2 %152 }
  0x7b   : > { %v646_v20 = vpop.permute.xlu2 %190 }
  0x81   : > { %v147_v21 = vpop.permute.xlu1 %146 }
  0x82   : > { %v143_v22 = vpop.permute.xlu0 %142  ;;  %v168_v45 = vadd.f32 %v147_v21, %v569_v0  ;;  %v686_v46 = vsub.f32 %v569_v0, %v147_v21  ;;  %v715_v0 = vsub.f32 %v583_v5, %v644_v19  ;;  %v242_v21 = vadd.f32 %v623_v13, %v711_v63 }
  0x83   : > { %v648_v23 = vadd.f32 %v143_v22, %v117_v1  ;;  %v650_v24 = vsub.f32 %v117_v1, %v143_v22  ;;  %v664_v34 = vpop.permute.xlu2 %196 }
  0x84   : > { %v176_v53 = vadd.f32 %v605_v9, %v168_v45  ;;  %v240_v54 = vadd.f32 %v605_v9, %v686_v46  ;;  %v243_v22 = vadd.f32 %v620_v12, %v715_v0 }
  0x85   : > { %v174_v25 = vadd.f32 %v596_v8, %v648_v23  ;;  %v238_v26 = vadd.f32 %v596_v8, %v650_v24 }
  0x87   : > { %v657_v27 = vadd.f32 %v646_v20, %v174_v25  ;;  %v246_v28 = vsub.f32 %v238_v26, %v646_v20 }
  0x89   : > { %v149_v29 = vpop.permute.xlu1 %148  ;;  %v254_v31 = vmul.f32 0.25, %v246_v28 }
  0x8a   : > { %v145_v30 = vpop.permute.xlu0 %144  ;;  %v660_v32 = vadd.f32 %v149_v29, %v120_v3  ;;  %v662_v33 = vsub.f32 %v120_v3, %v149_v29  ;;  %v266_v29 = vsub.f32 %v640_v17, %v623_v13 }
  0x8b   : > { %318 = vrot.lane.b32.xlu1 %v254_v31, %s539_s13  ;;  %v677_v42 = vsub.f32 %v118_v4, %v145_v30  ;;  %v167_v44 = vadd.f32 %v145_v30, %v118_v4  ;;  %v688_v47 = vpop.permute.xlu2 %202  ;;  %v262_v30 = vsub.f32 %v648_v23, %v596_v8 }
  0x8c   : > { %v177_v35 = vadd.f32 %v611_v11, %v660_v32  ;;  %v241_v36 = vadd.f32 %v611_v11, %v662_v33 }
  0x8d   : > { %v175_v49 = vadd.f32 %v608_v10, %v167_v44  ;;  %v239_v50 = vadd.f32 %v608_v10, %v677_v42  ;;  %v263_v51 = vsub.f32 %v167_v44, %v608_v10 }
  0x8e   : > { %v672_v37 = vadd.f32 %v664_v34, %v177_v35  ;;  %v249_v38 = vsub.f32 %v241_v36, %v664_v34 }
  0x90   : > { %v257_v39 = vmul.f32 0.25, %v249_v38 }
  0x91   : > { %v157_v40 = vpop.permute.xlu1 %156 }
  0x92   : > { %v675_v41 = vpop.permute.xlu0 %154  ;;  %v738_v31 = vsub.f32 %v590_v6, %v157_v40  ;;  %v744_v38 = vadd.f32 %v157_v40, %v590_v6 }
  0x93   : > { %v681_v43 = vsub.f32 %v593_v7, %v675_v41  ;;  %324 = vrot.lane.b32.xlu1 %v257_v39, %s539_s13  ;;  %v270_v39 = vsub.f32 %v262_v30, %v646_v20 }
  0x94   : > { %v245_v17 = vadd.f32 %v635_v15, %v738_v31 }
  0x95   : > { %v244_v48 = vadd.f32 %v626_v14, %v681_v43  ;;  %v278_v6 = vmul.f32 0.25, %v270_v39 }
  0x97   : > { %v252_v52 = vsub.f32 %v244_v48, %v688_v47 }
  0x99   : > { %v195_v55 = vpop.permute.xlu1 %194  ;;  %v260_v57 = vmul.f32 0.25, %v252_v52  ;;  %v264_v52 = vsub.f32 %v168_v45, %v605_v9 }
  0x9a   : > { %v700_v56 = vpop.permute.xlu0 %192  ;;  %v702_v58 = vadd.f32 %v195_v55, %v176_v53  ;;  %v248_v60 = vsub.f32 %v240_v54, %v195_v55  ;;  %v763_v53 = vadd.f32 %v675_v41, %v593_v7 }
  0x9b   : > { %v705_v59 = vadd.f32 %v700_v56, %v175_v49  ;;  %v247_v61 = vsub.f32 %v239_v50, %v700_v56  ;;  %330 = vrot.lane.b32.xlu1 %v260_v57, %s539_s13  ;;  %v271_v62 = vsub.f32 %v263_v51, %v700_v56  ;;  %v269_v49 = vsub.f32 %v744_v38, %v635_v15 }
  0x9c   : > { %v256_v1 = vmul.f32 0.25, %v248_v60  ;;  %v265_v50 = vsub.f32 %v660_v32, %v611_v11  ;;  %v272_v57 = vsub.f32 %v264_v52, %v195_v55  ;;  %v768_v32 = vadd.f32 %v644_v19, %v583_v5 }
  0x9d   : > { %v255_v3 = vmul.f32 0.25, %v247_v61  ;;  %v279_v4 = vmul.f32 0.25, %v271_v62  ;;  %v288_v61 = vsub.f32 %v686_v46, %v605_v9  ;;  %v268_v45 = vsub.f32 %v763_v53, %v626_v14 }
  0x9e   : > { %322 = vrot.lane.b32.xlu0 %v256_v1, %s539_s13  ;;  %v273_v54 = vsub.f32 %v265_v50, %v664_v34  ;;  %v280_v1 = vmul.f32 0.25, %v272_v57  ;;  %v267_v41 = vsub.f32 %v768_v32, %v620_v12  ;;  %v291_v46 = vsub.f32 %v715_v0, %v620_v12 }
  0x9f   : > { %320 = vrot.lane.b32.xlu2 %v255_v3, %s539_s13  ;;  %v296_v7 = vadd.f32 %v288_v61, %v195_v55  ;;  %v276_v5 = vsub.f32 %v268_v45, %v688_v47  ;;  %v286_v55 = vsub.f32 %v650_v24, %v596_v8  ;;  %v287_v3 = vsub.f32 %v677_v42, %v608_v10 }
  0xa0   : > { %v281_v62 = vmul.f32 0.25, %v273_v54  ;;  %v289_v8 = vsub.f32 %v662_v33, %v611_v11  ;;  %v290_v42 = vsub.f32 %v711_v63, %v623_v13  ;;  %v293_v11 = vsub.f32 %v738_v31, %v635_v15 }
  0xa1   : > { %v723_v25 = vpop.permute.xlu1 %200  ;;  %v304_v9 = vmul.f32 0.25, %v296_v7  ;;  %v294_v0 = vadd.f32 %v286_v55, %v646_v20  ;;  %v292_v20 = vsub.f32 %v681_v43, %v626_v14  ;;  %v180_v61 = vadd.f32 %v626_v14, %v763_v53 }
  0xa2   : > { %v725_v2 = vpop.permute.xlu0 %198  ;;  %v251_v26 = vsub.f32 %v243_v22, %v723_v25  ;;  %v275_v19 = vsub.f32 %v267_v41, %v723_v25  ;;  %v299_v22 = vadd.f32 %v291_v46, %v723_v25  ;;  %v225_v45 = vmul.f32 0.25, %v672_v37 }
  0xa3   : > { %v728_v16 = vadd.f32 %v725_v2, %v178_v18  ;;  %v250_v28 = vsub.f32 %v242_v21, %v725_v2  ;;  %352 = vrot.lane.b32.xlu1 %v279_v4, %s540_s14  ;;  %v274_v18 = vsub.f32 %v266_v29, %v725_v2  ;;  %v284_v4 = vmul.f32 0.25, %v276_v5 }
  0xa4   : > { %v259_v35 = vmul.f32 0.25, %v251_v26  ;;  %v283_v21 = vmul.f32 0.25, %v275_v19  ;;  %v295_v26 = vadd.f32 %v287_v3, %v700_v56  ;;  %v302_v10 = vmul.f32 0.25, %v294_v0 }
  0xa5   : > { %v258_v36 = vmul.f32 0.25, %v250_v28  ;;  %v282_v44 = vmul.f32 0.25, %v274_v18  ;;  %v307_v28 = vmul.f32 0.25, %v299_v22  ;;  %v298_v29 = vadd.f32 %v290_v42, %v725_v2 }
  0xa6   : > { %328 = vrot.lane.b32.xlu0 %v259_v35, %s539_s13  ;;  %v303_v24 = vmul.f32 0.25, %v295_v26  ;;  %v297_v56 = vadd.f32 %v289_v8, %v664_v34  ;;  %v300_v33 = vadd.f32 %v292_v20, %v688_v47  ;;  %v179_v19 = vadd.f32 %v620_v12, %v768_v32 }
  0xa7   : > { %326 = vrot.lane.b32.xlu2 %v258_v36, %s539_s13  ;;  %v306_v30 = vmul.f32 0.25, %v298_v29  ;;  %v223_v26 = vmul.f32 0.25, %v705_v59  ;;  %v226_v59 = vmul.f32 0.25, %v728_v16 }
  0xa8   : > { %v305_v35 = vmul.f32 0.25, %v297_v56  ;;  %v308_v2 = vmul.f32 0.25, %v300_v33  ;;  %v219_v37 = vadd.f32 %v723_v25, %v179_v19  ;;  %v181_v56 = vadd.f32 %v635_v15, %v744_v38 }
  0xaa   : > { %v749_v23 = vpop.permute.xlu0 %204 }
  0xab   : > { %v253_v48 = vsub.f32 %v245_v17, %v749_v23  ;;  %358 = vrot.lane.b32.xlu1 %v282_v44, %s540_s14  ;;  %v277_v51 = vsub.f32 %v269_v49, %v749_v23  ;;  %v301_v13 = vadd.f32 %v293_v11, %v749_v23  ;;  %v221_v11 = vadd.f32 %v749_v23, %v181_v56 }
  0xad   : > { %v261_v40 = vmul.f32 0.25, %v253_v48  ;;  %v285_v60 = vmul.f32 0.25, %v277_v51  ;;  %v309_v63 = vmul.f32 0.25, %v301_v13  ;;  %v229_v33 = vmul.f32 0.25, %v221_v11 }
  0xae   : > { %350 = vrot.lane.b32.xlu0 %v278_v6, %s540_s14 }
  0xaf   : > { %332 = vrot.lane.b32.xlu2 %v261_v40, %s539_s13  ;;  %v222_v40 = vmul.f32 0.25, %v657_v27 }
  0xb3   : > { %364 = vrot.lane.b32.xlu1 %v285_v60, %s540_s14 }
  0xb6   : > { %356 = vrot.lane.b32.xlu0 %v281_v62, %s540_s14 }
  0xb7   : > { %354 = vrot.lane.b32.xlu2 %v280_v1, %s540_s14  ;;  %v224_v1 = vmul.f32 0.25, %v702_v58 }
  0xbb   : > { %386 = vrot.lane.b32.xlu1 %v304_v9, %s541_s15  ;;  %v220_v9 = vadd.f32 %v688_v47, %v180_v61  ;;  %v227_v47 = vmul.f32 0.25, %v219_v37 }
  0xbd   : > { %v228_v55 = vmul.f32 0.25, %v220_v9 }
  0xbe   : > { %362 = vrot.lane.b32.xlu0 %v284_v4, %s540_s14 }
  0xbf   : > { %360 = vrot.lane.b32.xlu2 %v283_v21, %s540_s14 }
  0xc3   : > { %392 = vrot.lane.b32.xlu1 %v307_v28, %s541_s15 }
  0xc6   : > { %384 = vrot.lane.b32.xlu0 %v303_v24, %s541_s15 }
  0xc7   : > { %382 = vrot.lane.b32.xlu2 %v302_v10, %s541_s15 }
  0xce   : > { %390 = vrot.lane.b32.xlu0 %v306_v30, %s541_s15 }
  0xcf   : > { %388 = vrot.lane.b32.xlu2 %v305_v35, %s541_s15 }
  0xd6   : > { %396 = vrot.lane.b32.xlu0 %v309_v63, %s541_s15 }
  0xd7   : > { %394 = vrot.lane.b32.xlu2 %v308_v2, %s541_s15 }
  0xf9   : > { %v321_v34 = vpop.permute.xlu2 %320 }
  0xfa   : > { %v408_v24 = vsel %vm406_vm0, %v223_v26, %v321_v34 }
  0xfd   : > { %v319_v43 = vpop.permute.xlu1 %318 }
  0xfe   : > { %v407_v51 = vsel %vm406_vm0, %v222_v40, %v319_v43 }
 0x101   : > { %v812_v36 = vpop.permute.xlu2 %326 }
 0x102   : > { %v411_v20 = vsel %vm406_vm0, %v226_v59, %v812_v36 }
 0x105   : > { %v325_v31 = vpop.permute.xlu1 %324 }
 0x106   : > { %v410_v62 = vsel %vm406_vm0, %v225_v45, %v325_v31 }
 0x109   : > { %v814_v18 = vpop.permute.xlu2 %332 }
 0x10a   : > { %v414_v63 = vsel %vm406_vm0, %v229_v33, %v814_v18 }
 0x10d   : > { %v331_v17 = vpop.permute.xlu1 %330 }
 0x10e   : > { %v413_v12 = vsel %vm406_vm0, %v228_v55, %v331_v17 }
 0x110   : > { %v323_v44 = vpop.permute.xlu0 %322 }
 0x111   : > { %v355_v39 = vpop.permute.xlu2 %354  ;;  %v409_v46 = vsel %vm406_vm0, %v224_v1, %v323_v44 }
 0x112   : > { %v418_v58 = vsel %vm415_vm2, %v409_v46, %v355_v39 }
 0x115   : > { %v353_v48 = vpop.permute.xlu1 %352 }
 0x116   : > { %v417_v10 = vsel %vm415_vm2, %v408_v24, %v353_v48 }
 0x118   : > { %v329_v50 = vpop.permute.xlu0 %328 }
 0x119   : > { %v361_v49 = vpop.permute.xlu2 %360  ;;  %v412_v22 = vsel %vm406_vm0, %v227_v47, %v329_v50 }
 0x11a   : > { %v421_v28 = vsel %vm415_vm2, %v412_v22, %v361_v49 }
 0x11d   : > { %v359_v6 = vpop.permute.xlu1 %358 }
 0x11e   : > { %v420_v30 = vsel %vm415_vm2, %v411_v20, %v359_v6 }
 0x120   : > { %v351_v54 = vpop.permute.xlu0 %350 }
 0x121   : > { %v383_v52 = vpop.permute.xlu2 %382  ;;  %v416_v57 = vsel %vm415_vm2, %v407_v51, %v351_v54 }
 0x122   : > { %v425_v60 = vsel %vm424_vm1, %v416_v57, %v383_v52 }
 0x123   : > { %434 = vst.msk [vmem:[%s822_s19] sm:$0xff] %vm433_vm3, %v425_v60 }
 0x125   : > { %v365_v27 = vpop.permute.xlu1 %364 }
 0x126   : > { %v423_v16 = vsel %vm415_vm2, %v414_v63, %v365_v27 }
 0x128   : > { %v357_v41 = vpop.permute.xlu0 %356 }
 0x129   : > { %v389_v7 = vpop.permute.xlu2 %388  ;;  %v419_v5 = vsel %vm415_vm2, %v410_v62, %v357_v41 }
 0x12a   : > { %v428_v14 = vsel %vm424_vm1, %v419_v5, %v389_v7 }
 0x12b   : > { %437 = vst.msk [vmem:[%s822_s19 + $0x18] sm:$0xff] %vm433_vm3, %v428_v14 }
 0x12d   : > { %v387_v53 = vpop.permute.xlu1 %386 }
 0x12e   : > { %v427_v3 = vsel %vm424_vm1, %v418_v58, %v387_v53 }
 0x12f   : > { %436 = vst.msk [vmem:[%s822_s19 + $0x10] sm:$0xff] %vm433_vm3, %v427_v3 }
 0x130   : > { %v363_v4 = vpop.permute.xlu0 %362 }
 0x131   : > { %v395_v32 = vpop.permute.xlu2 %394  ;;  %v422_v21 = vsel %vm415_vm2, %v413_v12, %v363_v4 }
 0x132   : > { %v431_v25 = vsel %vm424_vm1, %v422_v21, %v395_v32 }
 0x133   : > { %440 = vst.msk [vmem:[%s822_s19 + $0x30] sm:$0xff] %vm433_vm3, %v431_v25 }
 0x135   : > { %v393_v0 = vpop.permute.xlu1 %392 }
 0x136   : > { %v430_v8 = vsel %vm424_vm1, %v421_v28, %v393_v0 }
 0x137   : > { %439 = vst.msk [vmem:[%s822_s19 + $0x28] sm:$0xff] %vm433_vm3, %v430_v8 }
 0x138   : > { %v385_v42 = vpop.permute.xlu0 %384 }
 0x139   : > { %v426_v29 = vsel %vm424_vm1, %v417_v10, %v385_v42 }
 0x13a   : > { %435 = vst.msk [vmem:[%s822_s19 + $0x8] sm:$0xff] %vm433_vm3, %v426_v29 }
 0x140   : > { %v391_v35 = vpop.permute.xlu0 %390 }
 0x141   : > { %v429_v13 = vsel %vm424_vm1, %v420_v30, %v391_v35 }
 0x142   : > { %438 = vst.msk [vmem:[%s822_s19 + $0x20] sm:$0xff] %vm433_vm3, %v429_v13 }
 0x148   : > { %v397_v2 = vpop.permute.xlu0 %396 }
 0x149   : > { %v432_v15 = vsel %vm424_vm1, %v423_v16, %v397_v2 }
 0x14a   : > { %441 = vst.msk [vmem:[%s822_s19 + $0x38] sm:$0xff] %vm433_vm3, %v432_v15 }
 0x14b PF: > { %s11_s6 = sadd.s32 1, %s536_s6  }
 0x14c   : > { %p8_p4 = scmp.ge.s32.totalorder %s11_s6, 4  }
 0x14e   :  { %10 = sbr.rel (!%p8_p4) target bundleno = 1 (0x1), region = 55 }

// kernel: _lambda_.4
= control target key start
LH: loop header
LB: loop body
LE: loop exit
PB: predicated region body
PF: predicated region fallthrough
CT: control target
= control target key end

     0   :  { %s1479_s18 = smov 0   ;;  %s2323_s0 = inlined_call_operand.vmem [shape: f32[2,8,8,12], index: 0, kind: input, shape index: {}]   ;;  %s2324_s1 = inlined_call_operand.vmem [shape: f32[81,3], index: 1, kind: input, shape index: {}]   ;;  %s2325_s2 = inlined_call_operand.vmem [shape: f32[1,3], index: 2, kind: input, shape index: {}]   ;;  %s2326_s3 = inlined_call_operand.vmem [shape: f32[27,9], index: 3, kind: input, shape index: {}]   ;;  %s2327_s4 = inlined_call_operand.vmem [shape: f32[1,9], index: 4, kind: input, shape index: {}]   ;;  %s2328_s5 = inlined_call_operand.vmem [shape: f32[2,8,8,12], index: 5, kind: output, shape index: {}]  }
   0x1 LB: > { %s1334_s19 = sadd.s32 4294967295, %s1431_s18   ;;  %p1338_p0 = scmp.ge.s32.totalorder %s1431_s18, 1  ;;  %s1431_s18 = sphi %s1479_s18, %s15_s18  }
   0x2   : > { %p187_p1 = scmp.lt.s32.totalorder %s1431_s18, 3 }
   0x4   : > { %p188_p2 = pnand %p1338_p0, %p187_p1 }
   0x5   : > { %p215_p3 = scmp.lt.s32.totalorder (!%p188_p2), %s1334_s19, 1  ;;  %s1434_s24 = smov (!%p188_p2), 125  }
   0x6   : > { %191 = sbr.rel (%p188_p2) target bundleno = 1038 (0x40e), region = 40  ;;  %s1435_s25 = smov (!%p188_p2), 18  }
   0x7   : > { %s1436_s26 = smov (!%p188_p2), 9   ;;  %s1437_s27 = smov (!%p188_p2), 27  }
   0x8   : > { %s1438_s28 = smov (!%p188_p2), 54   ;;  %s1439_s29 = smov (!%p188_p2), 36  }
   0x9   : > { %s1440_s30 = smov (!%p188_p2), 45   ;;  %s1441_s6 = smov (!%p188_p2), 63  }
   0xa   : > { %s1442_s7 = smov (!%p188_p2), 72   ;;  %s1447_s17 = smov (!%p188_p2), 15  }
   0xb   : > { %vm233_vm0 = vcmask 72704   ;;  %vm235_vm1 = vcmask 66560   ;;  %v1433_v0 = vmov 0.0   ;;  %s2330_s19 = smov (!%p215_p3, %s1334_s19), 1  ;;  %vm357_vm2 = vcmask 1045504   ;;  %s1448_s21 = smov 12  }
   0xc   : > { %245 = vst.msk [vmem:[#allocation2 + $0x50] sm:$0xff] %vm233_vm0, %v1433_v0  ;;  %s1363_s20 = sshll.u32 %s2330_s19, 6  ;;  %vm332_vm3 = vcmask 1046528   ;;  %vm598_vm4 = vcmask 146432   ;;  %vm701_vm5 = vcmask 1040384   ;;  %vm607_vm6 = vcmask 220160  }
   0xd   : > { %246 = vst.msk [vmem:[#allocation2 + $0x58] sm:$0x3] %vm235_vm1, %v1433_v0  ;;  %s1503_s23 = scalar_lea.vmem %s2323_s0, %s1363_s20  ;;  %vm616_vm7 = vcmask 293888   ;;  %vm625_vm8 = vcmask 367616   ;;  %vm634_vm9 = vcmask 441344   ;;  %vm643_vm10 = vcmask 515072   ;;  %s2276_s16 = scalar_lea.vmem %s2328_s5, %s1363_s20 }
   0xe   : > { %234 = vst.msk [vmem:[#allocation2] sm:$0xff] %vm233_vm0, %v1433_v0  ;;  %v1508_v1 = vld [vmem:[%s1503_s23 + $0x20] sm:$0xff]  ;;  %v1511_v2 = vld [vmem:[%s1503_s23 + $0x10] sm:$0xff]  ;;  %v1532_v4 = vld [vmem:[%s1503_s23 + $0x28] sm:$0xff]  ;;  %vm652_vm11 = vcmask 588800   ;;  %vm676_vm12 = vcmask 662528  }
   0xf   : > { %236 = vst.msk [vmem:[#allocation2 + $0x8] sm:$0x3] %vm235_vm1, %v1433_v0  ;;  %271 = vrot.lane.b32.xlu1 %v1508_v1, %s1434_s24  ;;  %267 = vrot.lane.b32.xlu0 %v1511_v2, %s1434_s24  ;;  %v1520_v3 = vld [vmem:[%s1503_s23] sm:$0xff]  ;;  %v1535_v5 = vld [vmem:[%s1503_s23 + $0x18] sm:$0xff]  ;;  %vm754_vm13 = vcmask 23552   ;;  %vm756_vm14 = vcmask 17408  }
  0x10   : > { %237 = vst.msk [vmem:[#allocation2 + $0x10] sm:$0xff] %vm233_vm0, %v1433_v0  ;;  %263 = vrot.lane.b32.xlu2 %v1520_v3, %s1434_s24  ;;  %v1542_v6 = vld [vmem:[%s1503_s23 + $0x8] sm:$0xff]  ;;  %v1560_v7 = vld [vmem:[%s1503_s23 + $0x30] sm:$0xff]  ;;  %v1563_v8 = vld [vmem:[%s1503_s23 + $0x38] sm:$0xff]  ;;  %vm1085_vm15 = vcmask 48128  }
  0x11   : > { %238 = vst.msk [vmem:[#allocation2 + $0x18] sm:$0x3] %vm235_vm1, %v1433_v0 }
  0x12   : > { %239 = vst.msk [vmem:[#allocation2 + $0x20] sm:$0xff] %vm233_vm0, %v1433_v0 }
  0x13   : > { %240 = vst.msk [vmem:[#allocation2 + $0x28] sm:$0x3] %vm235_vm1, %v1433_v0 }
  0x14   : > { %241 = vst.msk [vmem:[#allocation2 + $0x30] sm:$0xff] %vm233_vm0, %v1433_v0 }
  0x15   : > { %242 = vst.msk [vmem:[#allocation2 + $0x38] sm:$0x3] %vm235_vm1, %v1433_v0  ;;  %v1569_v9 = vld [vmem:[#allocation2] sm:$0xff] }
  0x16   : > { %243 = vst.msk [vmem:[#allocation2 + $0x40] sm:$0xff] %vm233_vm0, %v1433_v0  ;;  %v297_v10 = vld [vmem:[#allocation2 + $0x8] sm:$0x3]  ;;  %v358_v11 = vrot.slane %v1569_v9, 2  ;;  %v333_v14 = vrot.slane %v1569_v9, 1 }
  0x17   : > { %244 = vst.msk [vmem:[#allocation2 + $0x48] sm:$0x3] %vm235_vm1, %v1433_v0  ;;  %273 = vrot.lane.b32.xlu1 %v1532_v4, %s1434_s24  ;;  %269 = vrot.lane.b32.xlu0 %v1535_v5, %s1434_s24  ;;  %v359_v12 = vrot.slane %v297_v10, 2  ;;  %v334_v15 = vrot.slane %v297_v10, 1 }
  0x18   : > { %247 = vst.msk [vmem:[#allocation2 + $0x60] sm:$0xff] %vm233_vm0, %v1433_v0  ;;  %265 = vrot.lane.b32.xlu2 %v1542_v6, %s1434_s24 }
  0x19   : > { %248 = vst.msk [vmem:[#allocation2 + $0x68] sm:$0x3] %vm235_vm1, %v1433_v0  ;;  %v360_v13 = vsel %vm357_vm2, %v358_v11, %v359_v12  ;;  %v335_v16 = vsel %vm332_vm3, %v333_v14, %v334_v15 }
  0x1a   : > { %249 = vst.msk [vmem:[#allocation2 + $0x70] sm:$0xff] %vm233_vm0, %v1433_v0 }
  0x1b   : > { %250 = vst.msk [vmem:[#allocation2 + $0x78] sm:$0x3] %vm235_vm1, %v1433_v0 }
  0x1c   : > { %251 = vst.msk [vmem:[#allocation2 + $0x80] sm:$0xff] %vm233_vm0, %v1433_v0 }
  0x1d   : > { %252 = vst.msk [vmem:[#allocation2 + $0x88] sm:$0x3] %vm235_vm1, %v1433_v0 }
  0x1e   : > { %253 = vst.msk [vmem:[#allocation2 + $0x90] sm:$0xff] %vm233_vm0, %v1433_v0 }
  0x1f   : > { %254 = vst.msk [vmem:[#allocation2 + $0x98] sm:$0x3] %vm235_vm1, %v1433_v0  ;;  %275 = vrot.lane.b32.xlu0 %v1560_v7, %s1434_s24  ;;  %277 = vrot.lane.b32.xlu1 %v1563_v8, %s1434_s24  ;;  %vm1178_vm1 = vcmask 1042432  }
  0x20   : > { %398 = vrot.lane.b32.xlu2 %v335_v16, %s1436_s26  ;;  %764 = vst.msk [vmem:[#allocation3 + $0x40] sm:$0xff] %vm754_vm13, %v1433_v0 }
  0x21   : > { %765 = vst.msk [vmem:[#allocation3 + $0x48] sm:$0x3] %vm756_vm14, %v1433_v0 }
  0x22   : > { %755 = vst.msk [vmem:[#allocation3] sm:$0xff] %vm754_vm13, %v1433_v0 }
  0x23   : > { %757 = vst.msk [vmem:[#allocation3 + $0x8] sm:$0x3] %vm756_vm14, %v1433_v0 }
  0x24   : > { %758 = vst.msk [vmem:[#allocation3 + $0x10] sm:$0xff] %vm754_vm13, %v1433_v0 }
  0x25   : > { %759 = vst.msk [vmem:[#allocation3 + $0x18] sm:$0x3] %vm756_vm14, %v1433_v0 }
  0x26   : > { %760 = vst.msk [vmem:[#allocation3 + $0x20] sm:$0xff] %vm754_vm13, %v1433_v0 }
  0x27   : > { %422 = vrot.lane.b32.xlu1 %v360_v13, %s1435_s25  ;;  %761 = vst.msk [vmem:[#allocation3 + $0x28] sm:$0x3] %vm756_vm14, %v1433_v0 }
  0x28   : > { %762 = vst.msk [vmem:[#allocation3 + $0x30] sm:$0xff] %vm754_vm13, %v1433_v0 }
  0x29   : > { %763 = vst.msk [vmem:[#allocation3 + $0x38] sm:$0x3] %vm756_vm14, %v1433_v0 }
  0x2a   : > { %766 = vst.msk [vmem:[#allocation3 + $0x50] sm:$0xff] %vm754_vm13, %v1433_v0 }
  0x2b   : > { %767 = vst.msk [vmem:[#allocation3 + $0x58] sm:$0x3] %vm756_vm14, %v1433_v0 }
  0x2c   : > { %768 = vst.msk [vmem:[#allocation3 + $0x60] sm:$0xff] %vm754_vm13, %v1433_v0 }
  0x2d   : > { %769 = vst.msk [vmem:[#allocation3 + $0x68] sm:$0x3] %vm756_vm14, %v1433_v0 }
  0x2e   : > { %770 = vst.msk [vmem:[#allocation3 + $0x70] sm:$0xff] %vm754_vm13, %v1433_v0 }
  0x2f   : > { %771 = vst.msk [vmem:[#allocation3 + $0x78] sm:$0x3] %vm756_vm14, %v1433_v0 }
  0x30   : > { %772 = vst.msk [vmem:[#allocation3 + $0x80] sm:$0xff] %vm754_vm13, %v1433_v0 }
  0x31   : > { %773 = vst.msk [vmem:[#allocation3 + $0x88] sm:$0x3] %vm756_vm14, %v1433_v0 }
  0x32   : > { %774 = vst.msk [vmem:[#allocation3 + $0x90] sm:$0xff] %vm754_vm13, %v1433_v0 }
  0x33   : > { %775 = vst.msk [vmem:[#allocation3 + $0x98] sm:$0x3] %vm756_vm14, %v1433_v0 }
  0x6a   : > { %v264_v17 = vpop.permute.xlu2 %263 }
  0x6b   : > { %288 = vst.msk [vmem:[#allocation2 + $0x11] sm:$0xff] %vm233_vm0, %v264_v17 }
  0x72   : > { %v266_v18 = vpop.permute.xlu2 %265  ;;  %v1587_v24 = vld [vmem:[#allocation2 + $0x10] sm:$0xff]  ;;  %v299_v56 = vld [vmem:[#allocation2 + $0x18] sm:$0x3] }
  0x73   : > { %289 = vst.msk [vmem:[#allocation2 + $0x21] sm:$0xff] %vm233_vm0, %v266_v18  ;;  %v336_v59 = vrot.slane %v1587_v24, 1  ;;  %v337_v60 = vrot.slane %v299_v56, 1  ;;  %v361_v10 = vrot.slane %v1587_v24, 2  ;;  %v362_v11 = vrot.slane %v299_v56, 2 }
  0x75   : > { %v338_v62 = vsel %vm332_vm3, %v336_v59, %v337_v60  ;;  %v363_v12 = vsel %vm357_vm2, %v361_v10, %v362_v11  ;;  %v665_v59 = vld [vmem:[%s2324_s1 + $0x20] sm:$0xff]  ;;  %v664_v60 = vld [vmem:[%s2324_s1 + $0x18] sm:$0xff] }
  0x7a   : > { %v1608_v29 = vld [vmem:[#allocation2 + $0x20] sm:$0xff]  ;;  %v301_v13 = vld [vmem:[#allocation2 + $0x28] sm:$0x3]  ;;  %v399_v18 = vpop.permute.xlu2 %398 }
  0x7b   : > { %v364_v14 = vrot.slane %v1608_v29, 2  ;;  %v365_v15 = vrot.slane %v301_v13, 2  ;;  %v339_v16 = vrot.slane %v1608_v29, 1  ;;  %v340_v17 = vrot.slane %v301_v13, 1 }
  0x81   : > { %v272_v19 = vpop.permute.xlu1 %271  ;;  %v268_v20 = vpop.permute.xlu0 %267 }
  0x82   : > { %292 = vst.msk [vmem:[#allocation2 + $0x51] sm:$0xff] %vm233_vm0, %v272_v19  ;;  %v590_v19 = vsel %vm233_vm0, %v1569_v9, %v399_v18 }
  0x83   : > { %290 = vst.msk [vmem:[#allocation2 + $0x31] sm:$0xff] %vm233_vm0, %v268_v20 }
  0x89   : > { %v274_v21 = vpop.permute.xlu1 %273  ;;  %v270_v22 = vpop.permute.xlu0 %269  ;;  %v1581_v23 = vld [vmem:[#allocation2 + $0x50] sm:$0xff]  ;;  %v307_v45 = vld [vmem:[#allocation2 + $0x58] sm:$0x3] }
  0x8a   : > { %293 = vst.msk [vmem:[#allocation2 + $0x61] sm:$0xff] %vm233_vm0, %v274_v21  ;;  %454 = vrot.lane.b32.xlu0 %v1581_v23, %s1437_s27  ;;  %v1610_v30 = vld [vmem:[#allocation2 + $0x30] sm:$0xff]  ;;  %v303_v31 = vld [vmem:[#allocation2 + $0x38] sm:$0x3]  ;;  %v348_v46 = vrot.slane %v1581_v23, 1  ;;  %v349_v47 = vrot.slane %v307_v45, 1  ;;  %v366_v21 = vsel %vm357_vm2, %v364_v14, %v365_v15 }
  0x8b   : > { %291 = vst.msk [vmem:[#allocation2 + $0x41] sm:$0xff] %vm233_vm0, %v270_v22  ;;  %v342_v32 = vrot.slane %v1610_v30, 1  ;;  %v343_v33 = vrot.slane %v303_v31, 1  ;;  %v367_v34 = vrot.slane %v1610_v30, 2  ;;  %v368_v35 = vrot.slane %v303_v31, 2  ;;  %v661_v15 = vld [vmem:[%s2324_s1] sm:$0xff] }
  0x8c   : > { %v373_v48 = vrot.slane %v1581_v23, 2  ;;  %v374_v49 = vrot.slane %v307_v45, 2  ;;  %v350_v50 = vsel %vm332_vm3, %v348_v46, %v349_v47  ;;  %v341_v22 = vsel %vm332_vm3, %v339_v16, %v340_v17  ;;  %v669_v47 = vld [vmem:[%s2324_s1 + $0x40] sm:$0xff] }
  0x8d   : > { %v1621_v36 = vsel %vm332_vm3, %v342_v32, %v343_v33  ;;  %v1624_v37 = vsel %vm357_vm2, %v367_v34, %v368_v35 }
  0x8e   : > { %v375_v51 = vsel %vm357_vm2, %v373_v48, %v374_v49  ;;  %v668_v48 = vld [vmem:[%s2324_s1 + $0x38] sm:$0xff]  ;;  %v667_v49 = vld [vmem:[%s2324_s1 + $0x30] sm:$0xff] }
  0x91   : > { %v276_v25 = vpop.permute.xlu0 %275  ;;  %v1589_v26 = vld [vmem:[#allocation2 + $0x60] sm:$0xff]  ;;  %v309_v52 = vld [vmem:[#allocation2 + $0x68] sm:$0x3]  ;;  %v278_v63 = vpop.permute.xlu1 %277 }
  0x92   : > { %294 = vst.msk [vmem:[#allocation2 + $0x71] sm:$0xff] %vm233_vm0, %v276_v25  ;;  %v1592_v27 = vld [vmem:[#allocation2 + $0x40] sm:$0xff]  ;;  %526 = vrot.lane.b32.xlu2 %v1589_v26, %s1438_s28  ;;  %446 = vrot.lane.b32.xlu0 %v1587_v24, %s1437_s27  ;;  %v305_v38 = vld [vmem:[#allocation2 + $0x48] sm:$0x3]  ;;  %v351_v53 = vrot.slane %v1589_v26, 1  ;;  %v352_v54 = vrot.slane %v309_v52, 1 }
  0x93   : > { %452 = vrot.lane.b32.xlu1 %v1592_v27, %s1437_s27  ;;  %v345_v39 = vrot.slane %v1592_v27, 1  ;;  %v346_v40 = vrot.slane %v305_v38, 1  ;;  %v370_v41 = vrot.slane %v1592_v27, 2  ;;  %v371_v42 = vrot.slane %v305_v38, 2  ;;  %295 = vst.msk [vmem:[#allocation2 + $0x81] sm:$0xff] %vm233_vm0, %v278_v63  ;;  %v662_v63 = vld [vmem:[%s2324_s1 + $0x8] sm:$0xff] }
  0x94   : > { %v353_v55 = vsel %vm332_vm3, %v351_v53, %v352_v54  ;;  %v376_v57 = vrot.slane %v1589_v26, 2  ;;  %v377_v58 = vrot.slane %v309_v52, 2  ;;  %v666_v52 = vld [vmem:[%s2324_s1 + $0x28] sm:$0xff] }
  0x95   : > { %v1635_v43 = vsel %vm332_vm3, %v345_v39, %v346_v40  ;;  %v1638_v44 = vsel %vm357_vm2, %v370_v41, %v371_v42  ;;  %v671_v41 = vld [vmem:[%s2324_s1 + $0x50] sm:$0x1]  ;;  %v670_v42 = vld [vmem:[%s2324_s1 + $0x48] sm:$0xff] }
  0x96   : > { %v378_v61 = vsel %vm357_vm2, %v376_v57, %v377_v58  ;;  %1365 = vmatpush.msk.msra.mxu2 %vm701_vm5, %v671_v41  ;;  %1343 = vmatpush.msk.msra.mxu0 %vm701_vm5, %v671_v41 }
  0x97   : > { %1366 = vmatpush.msk.msra.mxu3 %vm701_vm5, %v671_v41  ;;  %vm1128_vm5 = vcmask 171008  }
  0x98   : > { %1367 = vmatpush.msra.mxu2 %v670_v42  ;;  %711 = vmatpush.msra.mxu0 %v670_v42 }
  0x99   : > { %v1600_v28 = vld [vmem:[#allocation2 + $0x70] sm:$0xff]  ;;  %v423_v20 = vpop.permute.xlu1 %422  ;;  %v311_v31 = vld [vmem:[#allocation2 + $0x78] sm:$0x3]  ;;  %1368 = vmatpush.msra.mxu3 %v670_v42 }
  0x9a   : > { %456 = vrot.lane.b32.xlu2 %v1589_v26, %s1437_s27  ;;  %528 = vrot.lane.b32.xlu0 %v1600_v28, %s1438_s28  ;;  %v599_v25 = vsel %vm598_vm4, %v590_v19, %v423_v20  ;;  %v379_v32 = vrot.slane %v1600_v28, 2  ;;  %v380_v33 = vrot.slane %v311_v31, 2  ;;  %v354_v34 = vrot.slane %v1600_v28, 1 }
  0x9b   : > { %524 = vrot.lane.b32.xlu1 %v1581_v23, %s1438_s28  ;;  %v355_v35 = vrot.slane %v311_v31, 1  ;;  %1369 = vmatpush.msra.mxu2 %v669_v47  ;;  %v315_v31 = vld [vmem:[#allocation2 + $0x98] sm:$0x3] }
  0x9c   : > { %v1684_v9 = vsel %vm357_vm2, %v379_v32, %v380_v33  ;;  %712 = vmatpush.msra.mxu0 %v669_v47  ;;  %1370 = vmatpush.msra.mxu3 %v669_v47  ;;  %v396_v47 = vrot.slane %v315_v31, 2 }
  0x9d   : > { %v1692_v38 = vsel %vm332_vm3, %v354_v34, %v355_v35  ;;  %1371 = vmatpush.msra.mxu2 %v668_v48 }
  0x9e   : > { %713 = vmatpush.msra.mxu0 %v668_v48  ;;  %1372 = vmatpush.msra.mxu3 %v668_v48 }
  0x9f   : > { %1373 = vmatpush.msra.mxu2 %v667_v49 }
  0xa0   : > { %714 = vmatpush.msra.mxu0 %v667_v49  ;;  %1374 = vmatpush.msra.mxu3 %v667_v49 }
  0xa1   : > { %1375 = vmatpush.msra.mxu2 %v666_v52 }
  0xa2   : > { %520 = vrot.lane.b32.xlu2 %v1610_v30, %s1438_s28  ;;  %458 = vrot.lane.b32.xlu0 %v1600_v28, %s1437_s27 }
  0xa3   : > { %518 = vrot.lane.b32.xlu1 %v1608_v29, %s1438_s28  ;;  %715 = vmatpush.msra.mxu0 %v666_v52 }
  0xa4   : > { %1377 = vmatpush.msra.mxu2 %v665_v59  ;;  %1376 = vmatpush.msra.mxu3 %v666_v52 }
  0xa5   : > { %716 = vmatpush.msra.mxu0 %v665_v59 }
  0xa6   : > { %1379 = vmatpush.msra.mxu2 %v664_v60  ;;  %1378 = vmatpush.msra.mxu3 %v665_v59 }
  0xa7   : > { %717 = vmatpush.msra.mxu0 %v664_v60 }
  0xa8   : > { %1380 = vmatpush.msra.mxu3 %v664_v60 }
  0xaa   : > { %404 = vrot.lane.b32.xlu2 %v1621_v36, %s1436_s26  ;;  %428 = vrot.lane.b32.xlu0 %v1624_v37, %s1435_s25 }
  0xab   : > { %448 = vrot.lane.b32.xlu1 %v1608_v29, %s1437_s27 }
  0xb2   : > { %476 = vrot.lane.b32.xlu2 %v1635_v43, %s1439_s29  ;;  %500 = vrot.lane.b32.xlu0 %v1638_v44, %s1440_s30 }
  0xb3   : > { %406 = vrot.lane.b32.xlu1 %v1635_v43, %s1436_s26 }
  0xba   : > { %548 = vrot.lane.b32.xlu2 %v350_v50, %s1441_s6  ;;  %572 = vrot.lane.b32.xlu0 %v375_v51, %s1442_s7 }
  0xbb   : > { %478 = vrot.lane.b32.xlu1 %v350_v50, %s1439_s29 }
  0xc2   : > { %430 = vrot.lane.b32.xlu2 %v1638_v44, %s1435_s25  ;;  %502 = vrot.lane.b32.xlu0 %v375_v51, %s1440_s30 }
  0xc3   : > { %550 = vrot.lane.b32.xlu1 %v353_v55, %s1441_s6 }
  0xca   : > { %574 = vrot.lane.b32.xlu0 %v378_v61, %s1442_s7  ;;  %470 = vrot.lane.b32.xlu2 %v338_v62, %s1439_s29 }
  0xcb   : > { %408 = vrot.lane.b32.xlu1 %v350_v50, %s1436_s26  ;;  %v312_v50 = vld [vmem:[#allocation2 + $0x80] sm:$0xff] }
  0xcc   : > { %v384_v57 = vrot.slane %v312_v50, 1  ;;  %v387_v13 = vrot.slane %v312_v50, 2 }
  0xd2   : > { %432 = vrot.lane.b32.xlu0 %v375_v51, %s1435_s25  ;;  %494 = vrot.lane.b32.xlu2 %v363_v12, %s1440_s30  ;;  %v313_v51 = vld [vmem:[#allocation2 + $0x88] sm:$0x3] }
  0xd3   : > { %480 = vrot.lane.b32.xlu1 %v353_v55, %s1439_s29  ;;  %v385_v58 = vrot.slane %v313_v51, 1  ;;  %v388_v14 = vrot.slane %v313_v51, 2 }
  0xda   : > { %566 = vrot.lane.b32.xlu2 %v366_v21, %s1442_s7  ;;  %542 = vrot.lane.b32.xlu0 %v341_v22, %s1441_s6 }
  0xdb   : > { %504 = vrot.lane.b32.xlu1 %v378_v61, %s1440_s30 }
  0xe2   : > { %424 = vrot.lane.b32.xlu2 %v363_v12, %s1435_s25  ;;  %400 = vrot.lane.b32.xlu0 %v338_v62, %s1436_s26  ;;  %v386_v62 = vsel %vm332_vm3, %v384_v57, %v385_v58 }
  0xe3   : > { %576 = vrot.lane.b32.xlu1 %v1684_v9, %s1442_s7 }
  0xea   : > { %552 = vrot.lane.b32.xlu2 %v1692_v38, %s1441_s6  ;;  %472 = vrot.lane.b32.xlu0 %v341_v22, %s1439_s29 }
  0xeb   : > { %434 = vrot.lane.b32.xlu1 %v378_v61, %s1435_s25  ;;  %v663_v61 = vld [vmem:[%s2324_s1 + $0x10] sm:$0xff] }
  0xec   : > { %v1698_v39 = vpop.permute.xlu2 %526  ;;  %1381 = vmatpush.msra.mxu2 %v663_v61  ;;  %718 = vmatpush.msra.mxu0 %v663_v61 }
  0xed   : > { %1382 = vmatpush.msra.mxu3 %v663_v61 }
  0xee   : > { %1383 = vmatpush.msra.mxu2 %v662_v63  ;;  %719 = vmatpush.msra.mxu0 %v662_v63 }
  0xef   : > { %1384 = vmatpush.msra.mxu3 %v662_v63 }
  0xf0   : > { %1385 = vmatpush.msra.mxu2 %v661_v15  ;;  %720 = vmatpush.msra.mxu0 %v661_v15 }
  0xf1   : > { %1386 = vmatpush.msra.mxu3 %v661_v15 }
  0xf2   : > { %410 = vrot.lane.b32.xlu2 %v353_v55, %s1436_s26  ;;  %496 = vrot.lane.b32.xlu0 %v366_v21, %s1440_s30 }
  0xf3   : > { %544 = vrot.lane.b32.xlu1 %v1621_v36, %s1441_s6 }
  0xf4   : > { %v1704_v40 = vpop.permute.xlu2 %456 }
  0xfa   : > { %482 = vrot.lane.b32.xlu2 %v1692_v38, %s1439_s29  ;;  %568 = vrot.lane.b32.xlu0 %v1624_v37, %s1442_s7 }
  0xfb   : > { %402 = vrot.lane.b32.xlu1 %v341_v22, %s1436_s26 }
  0xfc   : > { %v1717_v45 = vpop.permute.xlu0 %454  ;;  %v1719_v46 = vpop.permute.xlu2 %520 }
 0x102   : > { %506 = vrot.lane.b32.xlu2 %v1684_v9, %s1440_s30  ;;  %426 = vrot.lane.b32.xlu0 %v366_v21, %s1435_s25 }
 0x103   : > { %530 = vrot.lane.b32.xlu1 %v312_v50, %s1438_s28 }
 0x104   : > { %v447_v53 = vpop.permute.xlu0 %446  ;;  %v405_v54 = vpop.permute.xlu2 %404 }
 0x105   : > { %v453_v55 = vpop.permute.xlu1 %452  ;;  %v1738_v56 = vsel %vm607_vm6, %v599_v25, %v447_v53  ;;  %v314_v25 = vld [vmem:[#allocation2 + $0x90] sm:$0xff] }
 0x106   : > { %v392_v34 = vrot.slane %v314_v25, 1 }
 0x10a   : > { %450 = vrot.lane.b32.xlu2 %v1610_v30, %s1437_s27  ;;  %554 = vrot.lane.b32.xlu0 %v386_v62, %s1441_s6 }
 0x10b   : > { %474 = vrot.lane.b32.xlu1 %v1621_v36, %s1439_s29  ;;  %v389_v36 = vsel %vm357_vm2, %v387_v13, %v388_v14 }
 0x10c   : > { %v1758_v10 = vpop.permute.xlu0 %528  ;;  %v477_v11 = vpop.permute.xlu2 %476 }
 0x10d   : > { %v525_v12 = vpop.permute.xlu1 %524 }
 0x112   : > { %578 = vrot.lane.b32.xlu2 %v389_v36, %s1442_s7  ;;  %412 = vrot.lane.b32.xlu0 %v1692_v38, %s1436_s26 }
 0x113   : > { %498 = vrot.lane.b32.xlu1 %v1624_v37, %s1440_s30  ;;  %v593_v37 = vsel %vm233_vm0, %v1610_v30, %v405_v54  ;;  %v393_v30 = vrot.slane %v315_v31, 1 }
 0x114   : > { %v1769_v16 = vpop.permute.xlu0 %458  ;;  %v549_v17 = vpop.permute.xlu2 %548 }
 0x115   : > { %v1771_v18 = vpop.permute.xlu1 %518  ;;  %v394_v42 = vsel %vm332_vm3, %v392_v34, %v393_v30 }
 0x11a   : > { %436 = vrot.lane.b32.xlu2 %v1684_v9, %s1435_s25  ;;  %522 = vrot.lane.b32.xlu0 %v1592_v27, %s1438_s28 }
 0x11b   : > { %460 = vrot.lane.b32.xlu1 %v312_v50, %s1437_s27  ;;  %s1443_s27 = smov 3  }
 0x11c   : > { %v429_v19 = vpop.permute.xlu0 %428  ;;  %v431_v20 = vpop.permute.xlu2 %430 }
 0x11d   : > { %v1778_v21 = vpop.permute.xlu1 %448  ;;  %v602_v22 = vsel %vm598_vm4, %v593_v37, %v429_v19 }
 0x11e   : > { %v611_v32 = vsel %vm607_vm6, %v602_v22, %v453_v55 }
 0x11f   : > { %v620_v35 = vsel %vm616_vm7, %v611_v32, %v477_v11 }
 0x122   : > { %546 = vrot.lane.b32.xlu2 %v1635_v43, %s1441_s6  ;;  %484 = vrot.lane.b32.xlu0 %v386_v62, %s1439_s29 }
 0x123   : > { %570 = vrot.lane.b32.xlu1 %v1638_v44, %s1442_s7  ;;  %v395_v44 = vrot.slane %v314_v25, 2 }
 0x124   : > { %v501_v33 = vpop.permute.xlu0 %500  ;;  %v471_v9 = vpop.permute.xlu2 %470 }
 0x125   : > { %v407_v38 = vpop.permute.xlu1 %406  ;;  %v629_v41 = vsel %vm625_vm8, %v620_v35, %v501_v33  ;;  %v397_v54 = vsel %vm357_vm2, %v395_v44, %v396_v47  ;;  %v617_v19 = vsel %vm616_vm7, %v1738_v56, %v471_v9 }
 0x126   : > { %v638_v43 = vsel %vm634_vm9, %v629_v41, %v525_v12  ;;  %v594_v53 = vsel %vm233_vm0, %v1592_v27, %v407_v38 }
 0x127   : > { %v647_v50 = vsel %vm643_vm10, %v638_v43, %v549_v17  ;;  %v603_v55 = vsel %vm598_vm4, %v594_v53, %v431_v20 }
 0x128   : > { %v612_v57 = vsel %vm607_vm6, %v603_v55, %v1717_v45 }
 0x12a   : > { %508 = vrot.lane.b32.xlu2 %v389_v36, %s1440_s30  ;;  %532 = vrot.lane.b32.xlu0 %v314_v25, %s1438_s28  ;;  %s1444_s28 = smov 6  }
 0x12b   : > { %556 = vrot.lane.b32.xlu1 %v394_v42, %s1441_s6  ;;  %s1445_s6 = smov 24  }
 0x12c   : > { %v573_v48 = vpop.permute.xlu0 %572  ;;  %v495_v49 = vpop.permute.xlu2 %494 }
 0x12d   : > { %v479_v51 = vpop.permute.xlu1 %478  ;;  %v656_v52 = vsel %vm652_vm11, %v647_v50, %v573_v48  ;;  %v626_v20 = vsel %vm625_vm8, %v617_v19, %v495_v49 }
 0x12e   : > { %1347 = vmatmul.msk.f32.vlgmr.msra.gmra.mxu2 %vm676_vm12, %v656_v52  ;;  %v621_v60 = vsel %vm616_vm7, %v612_v57, %v479_v51  ;;  %v635_v25 = vsel %vm634_vm9, %v626_v20, %v1771_v18 }
 0x132   : > { %580 = vrot.lane.b32.xlu2 %v397_v54, %s1442_s7  ;;  %s1446_s7 = smov 21  }
 0x134   : > { %v503_v58 = vpop.permute.xlu0 %502  ;;  %v567_v59 = vpop.permute.xlu2 %566 }
 0x135   : > { %v551_v61 = vpop.permute.xlu1 %550  ;;  %v630_v62 = vsel %vm625_vm8, %v621_v60, %v503_v58 }
 0x136   : > { %v639_v27 = vsel %vm634_vm9, %v630_v62, %v1698_v39 }
 0x137   : > { %v648_v63 = vsel %vm643_vm10, %v639_v27, %v551_v61 }
 0x13c   : > { %v575_v11 = vpop.permute.xlu0 %574  ;;  %v425_v12 = vpop.permute.xlu2 %424 }
 0x13d   : > { %v409_v13 = vpop.permute.xlu1 %408  ;;  %v657_v14 = vsel %vm652_vm11, %v648_v63, %v575_v11 }
 0x13e   : > { %1348 = vmatmul.msk.f32.gmra.mxu2 %vm676_vm12, %v657_v14  ;;  %v595_v17 = vsel %vm233_vm0, %v1581_v23, %v409_v13 }
 0x144   : > { %v433_v45 = vpop.permute.xlu0 %432  ;;  %v553_v15 = vpop.permute.xlu2 %552 }
 0x145   : > { %v481_v36 = vpop.permute.xlu1 %480  ;;  %v604_v39 = vsel %vm598_vm4, %v595_v17, %v433_v45 }
 0x146   : > { %v613_v37 = vsel %vm607_vm6, %v604_v39, %v1704_v40 }
 0x147   : > { %v622_v33 = vsel %vm616_vm7, %v613_v37, %v481_v36 }
 0x14c   : > { %v543_v22 = vpop.permute.xlu0 %542  ;;  %v411_v23 = vpop.permute.xlu2 %410 }
 0x14d   : > { %v505_v31 = vpop.permute.xlu1 %504  ;;  %v644_v32 = vsel %vm643_vm10, %v635_v25, %v543_v22 }
 0x14e   : > { %v653_v34 = vsel %vm652_vm11, %v644_v32, %v567_v59  ;;  %v631_v56 = vsel %vm625_vm8, %v622_v33, %v505_v31 }
 0x14f   : > { %1344 = vmatmul.msk.f32.vlgmr.msra.gmra.mxu0 %vm676_vm12, %v653_v34  ;;  %v640_v9 = vsel %vm634_vm9, %v631_v56, %v1758_v10 }
 0x150   : > { %v649_v35 = vsel %vm643_vm10, %v640_v9, %v553_v15 }
 0x154   : > { %v401_v40 = vpop.permute.xlu0 %400  ;;  %v483_v38 = vpop.permute.xlu2 %482 }
 0x155   : > { %v577_v30 = vpop.permute.xlu1 %576  ;;  %v591_v43 = vsel %vm233_vm0, %v1587_v24, %v401_v40 }
 0x156   : > { %v658_v18 = vsel %vm652_vm11, %v649_v35, %v577_v30  ;;  %v600_v44 = vsel %vm598_vm4, %v591_v43, %v425_v12 }
 0x157   : > { %1349 = vmatmul.msk.f32.gmra.mxu2 %vm676_vm12, %v658_v18  ;;  %v609_v10 = vsel %vm607_vm6, %v600_v44, %v1778_v21  ;;  %v596_v21 = vsel %vm233_vm0, %v1589_v26, %v411_v23  ;;  %v786_v44 = vld [vmem:[#allocation3 + $0x8] sm:$0x3] }
 0x15c   : > { %v473_v41 = vpop.permute.xlu0 %472  ;;  %v507_v47 = vpop.permute.xlu2 %506 }
 0x15d   : > { %v435_v42 = vpop.permute.xlu1 %434  ;;  %v618_v49 = vsel %vm616_vm7, %v609_v10, %v473_v41 }
 0x15e   : > { %v605_v58 = vsel %vm598_vm4, %v596_v21, %v435_v42  ;;  %v1894_v42 = vld [vmem:[#allocation3] sm:$0xff] }
 0x15f   : > { %v614_v60 = vsel %vm607_vm6, %v605_v58, %v1769_v16  ;;  %v845_v10 = vrot.slane %v1894_v42, 2 }
 0x160   : > { %v623_v62 = vsel %vm616_vm7, %v614_v60, %v483_v38 }
 0x161   : > { %v632_v27 = vsel %vm625_vm8, %v623_v62, %v507_v47  ;;  %v821_v47 = vrot.slane %v1894_v42, 1 }
 0x164   : > { %v497_v48 = vpop.permute.xlu0 %496  ;;  %v451_v53 = vpop.permute.xlu2 %450 }
 0x165   : > { %v545_v50 = vpop.permute.xlu1 %544  ;;  %v627_v51 = vsel %vm625_vm8, %v618_v49, %v497_v48  ;;  %v822_v48 = vrot.slane %v786_v44, 1  ;;  %v846_v49 = vrot.slane %v786_v44, 2 }
 0x166   : > { %v636_v52 = vsel %vm634_vm9, %v627_v51, %v1719_v46 }
 0x167   : > { %v645_v55 = vsel %vm643_vm10, %v636_v52, %v545_v50  ;;  %v823_v50 = vsel %vm332_vm3, %v821_v47, %v822_v48  ;;  %v847_v51 = vsel %vm357_vm2, %v845_v10, %v846_v49  ;;  %v1927_v52 = vld [vmem:[%s2325_s2] ss:$0 sm:$0xff] }
 0x168   : > { %885 = vrot.lane.b32.xlu0 %v823_v50, %s1443_s27  ;;  %909 = vrot.lane.b32.xlu1 %v847_v51, %s1444_s28 }
 0x16c   : > { %v569_v54 = vpop.permute.xlu0 %568  ;;  %v579_v46 = vpop.permute.xlu2 %578 }
 0x16d   : > { %v403_v24 = vpop.permute.xlu1 %402  ;;  %v654_v57 = vsel %vm652_vm11, %v645_v55, %v569_v54 }
 0x16e   : > { %1345 = vmatmul.msk.f32.gmra.mxu0 %vm676_vm12, %v654_v57  ;;  %v592_v36 = vsel %vm233_vm0, %v1608_v29, %v403_v24  ;;  %v804_v57 = vld [vmem:[#allocation3 + $0x98] sm:$0x3] }
 0x16f   : > { %v880_v58 = vrot.slane %v804_v57, 1 }
 0x174   : > { %v427_v59 = vpop.permute.xlu0 %426  ;;  %v437_v14 = vpop.permute.xlu2 %436 }
 0x175   : > { %v531_v61 = vpop.permute.xlu1 %530  ;;  %v601_v17 = vsel %vm598_vm4, %v592_v36, %v427_v59  ;;  %v883_v59 = vrot.slane %v804_v57, 2 }
 0x176   : > { %v641_v63 = vsel %vm634_vm9, %v632_v27, %v531_v61  ;;  %v610_v20 = vsel %vm607_vm6, %v601_v17, %v451_v53  ;;  %v803_v53 = vld [vmem:[#allocation3 + $0x90] sm:$0xff] }
 0x177   : > { %1019 = vrot.lane.b32.xlu1 %v803_v53, %s1435_s25  ;;  %v879_v54 = vrot.slane %v803_v53, 1  ;;  %v882_v55 = vrot.slane %v803_v53, 2 }
 0x179   : > { %v881_v0 = vsel %vm332_vm3, %v879_v54, %v880_v58  ;;  %v884_v61 = vsel %vm357_vm2, %v882_v55, %v883_v59 }
 0x17a   : > { %1067 = vrot.lane.b32.xlu0 %v884_v61, %s1445_s6 }
 0x17c   : > { %v555_v11 = vpop.permute.xlu0 %554  ;;  %v547_v16 = vpop.permute.xlu2 %546 }
 0x17d   : > { %v475_v12 = vpop.permute.xlu1 %474  ;;  %v650_v13 = vsel %vm643_vm10, %v641_v63, %v555_v11 }
 0x17e   : > { %v659_v26 = vsel %vm652_vm11, %v650_v13, %v579_v46  ;;  %v619_v37 = vsel %vm616_vm7, %v610_v20, %v475_v12 }
 0x17f   : > { %1350 = vmatmul.msk.f32.gmra.mxu2 %vm676_vm12, %v659_v26  ;;  %1043 = vrot.lane.b32.xlu1 %v881_v0, %s1446_s7 }
 0x184   : > { %v413_v45 = vpop.permute.xlu0 %412  ;;  %v509_v32 = vpop.permute.xlu2 %508 }
 0x185   : > { %v499_v15 = vpop.permute.xlu1 %498  ;;  %v597_v31 = vsel %vm233_vm0, %v1600_v28, %v413_v45 }
 0x186   : > { %v628_v22 = vsel %vm625_vm8, %v619_v37, %v499_v15  ;;  %v606_v56 = vsel %vm598_vm4, %v597_v31, %v437_v14 }
 0x18c   : > { %v523_v19 = vpop.permute.xlu0 %522  ;;  %v581_v35 = vpop.permute.xlu2 %580 }
 0x18d   : > { %v461_v39 = vpop.permute.xlu1 %460  ;;  %v637_v25 = vsel %vm634_vm9, %v628_v22, %v523_v19 }
 0x18e   : > { %v646_v23 = vsel %vm643_vm10, %v637_v25, %v547_v16  ;;  %v615_v28 = vsel %vm607_vm6, %v606_v56, %v461_v39 }
 0x194   : > { %v485_v33 = vpop.permute.xlu0 %484 }
 0x195   : > { %v571_v29 = vpop.permute.xlu1 %570  ;;  %v624_v9 = vsel %vm616_vm7, %v615_v28, %v485_v33  ;;  %vm1137_vm7 = vcmask 195584  }
 0x196   : > { %v655_v34 = vsel %vm652_vm11, %v646_v23, %v571_v29  ;;  %v633_v30 = vsel %vm625_vm8, %v624_v9, %v509_v32 }
 0x197   : > { %1346 = vmatmul.msk.f32.gmra.mxu0 %vm676_vm12, %v655_v34 }
 0x19c   : > { %v533_v40 = vpop.permute.xlu0 %532 }
 0x19d   : > { %v642_v18 = vsel %vm634_vm9, %v633_v30, %v533_v40  ;;  %v557_v38 = vpop.permute.xlu1 %556 }
 0x19e   : > { %v651_v41 = vsel %vm643_vm10, %v642_v18, %v557_v38 }
 0x19f   : > { %v660_v43 = vsel %vm652_vm11, %v651_v41, %v581_v35 }
 0x1a0   : > { %1351 = vmatmul.msk.f32.vlgmr.msra.gmra.mxu3 %vm676_vm12, %v660_v43 }
 0x1b1   : > { %v731_v24 = vpop.f32.mrf.mxu2 }
 0x1b2   : > { %v732_v21 = vadd.f32 %v1927_v52, %v731_v24 }
 0x1b4   : > { %v1932_v60 = vadd.f32 %v732_v21, %v1535_v5 }
 0x1b6   : > { %780 = vst.msk [vmem:[#allocation3 + $0x41] sm:$0xff] %vm754_vm13, %v1932_v60 }
 0x1bd   : > { %v1969_v19 = vld [vmem:[#allocation3 + $0x40] sm:$0xff]  ;;  %v794_v22 = vld [vmem:[#allocation3 + $0x48] sm:$0x3] }
 0x1be   : > { %v833_v32 = vrot.slane %v1969_v19, 1  ;;  %v834_v33 = vrot.slane %v794_v22, 1  ;;  %v857_v47 = vrot.slane %v1969_v19, 2  ;;  %v858_v10 = vrot.slane %v794_v22, 2 }
 0x1c0   : > { %v1996_v29 = vsel %vm332_vm3, %v833_v32, %v834_v33  ;;  %v859_v50 = vsel %vm357_vm2, %v857_v47, %v858_v10  ;;  %v1147_v47 = vld [vmem:[%s2326_s3 + $0x8] sm:$0xff] }
 0x1c1   : > { %v734_v46 = vpop.f32.mrf.mxu2 }
 0x1c2   : > { %v735_v62 = vadd.f32 %v1927_v52, %v734_v46 }
 0x1c4   : > { %v1942_v27 = vadd.f32 %v735_v62, %v1508_v1 }
 0x1c6   : > { %781 = vst.msk [vmem:[#allocation3 + $0x51] sm:$0xff] %vm754_vm13, %v1942_v27 }
 0x1cc   : > { %v722_v5 = vpop.f32.mrf.mxu0 }
 0x1cd   : > { %v723_v63 = vadd.f32 %v1927_v52, %v722_v5 }
 0x1cf   : > { %v1948_v11 = vadd.f32 %v723_v63, %v1520_v3 }
 0x1d1   : > { %777 = vst.msk [vmem:[#allocation3 + $0x11] sm:$0xff] %vm754_vm13, %v1948_v11 }
 0x1d8   : > { %v1952_v12 = vld [vmem:[#allocation3 + $0x10] sm:$0xff]  ;;  %v788_v13 = vld [vmem:[#allocation3 + $0x18] sm:$0x3] }
 0x1d9   : > { %933 = vrot.lane.b32.xlu2 %v1952_v12, %s1436_s26  ;;  %v848_v1 = vrot.slane %v1952_v12, 2  ;;  %v849_v26 = vrot.slane %v788_v13, 2  ;;  %v824_v14 = vrot.slane %v1952_v12, 1  ;;  %v825_v45 = vrot.slane %v788_v13, 1  ;;  %v2052_v13 = vld [vmem:[#allocation3 + $0x50] sm:$0xff] }
 0x1da   : > { %v737_v15 = vpop.f32.mrf.mxu2  ;;  %v2025_v51 = vpop.permute.xlu0 %885  ;;  %v836_v22 = vrot.slane %v2052_v13, 1 }
 0x1db   : > { %v738_v16 = vadd.f32 %v1927_v52, %v737_v15  ;;  %v850_v3 = vsel %vm357_vm2, %v848_v1, %v849_v26  ;;  %v826_v36 = vsel %vm332_vm3, %v824_v14, %v825_v45  ;;  %v796_v15 = vld [vmem:[#allocation3 + $0x58] sm:$0x3]  ;;  %v910_v32 = vpop.permute.xlu1 %909 }
 0x1dc   : > { %981 = vrot.lane.b32.xlu1 %v850_v3, %s1447_s17  ;;  %957 = vrot.lane.b32.xlu0 %v826_v36, %s1448_s21 }
 0x1dd   : > { %v1964_v17 = vadd.f32 %v738_v16, %v1532_v4  ;;  %v860_v16 = vrot.slane %v2052_v13, 2 }
 0x1df   : > { %782 = vst.msk [vmem:[#allocation3 + $0x61] sm:$0xff] %vm754_vm13, %v1964_v17 }
 0x1e1   : > { %887 = vrot.lane.b32.xlu2 %v826_v36, %s1443_s27 }
 0x1e4   : > { %939 = vrot.lane.b32.xlu1 %v1969_v19, %s1436_s26  ;;  %911 = vrot.lane.b32.xlu0 %v850_v3, %s1444_s28  ;;  %v861_v3 = vrot.slane %v796_v15, 2 }
 0x1eb   : > { %v725_v39 = vpop.f32.mrf.mxu0 }
 0x1ec   : > { %v726_v20 = vadd.f32 %v1927_v52, %v725_v39  ;;  %1009 = vrot.lane.b32.xlu0 %v1969_v19, %s1435_s25  ;;  %v2032_v53 = vpop.permute.xlu0 %1067  ;;  %v2073_v39 = vsel %vm357_vm2, %v860_v16, %v861_v3 }
 0x1ee   : > { %v1978_v4 = vadd.f32 %v726_v20, %v1542_v6  ;;  %v2080_v20 = vld [vmem:[#allocation3 + $0x60] sm:$0xff] }
 0x1ef   : > { %v839_v33 = vrot.slane %v2080_v20, 1 }
 0x1f0   : > { %778 = vst.msk [vmem:[#allocation3 + $0x21] sm:$0xff] %vm754_vm13, %v1978_v4 }
 0x1f7   : > { %v1982_v37 = vld [vmem:[#allocation3 + $0x20] sm:$0xff]  ;;  %v790_v18 = vld [vmem:[#allocation3 + $0x28] sm:$0x3] }
 0x1f8   : > { %1005 = vrot.lane.b32.xlu2 %v1982_v37, %s1435_s25  ;;  %v851_v41 = vrot.slane %v1982_v37, 2  ;;  %v827_v43 = vrot.slane %v1982_v37, 1  ;;  %v828_v44 = vrot.slane %v790_v18, 1 }
 0x1fa   : > { %v829_v49 = vsel %vm332_vm3, %v827_v43, %v828_v44  ;;  %v1148_v43 = vld [vmem:[%s2326_s3 + $0x10] sm:$0xff] }
 0x200   : > { %935 = vrot.lane.b32.xlu2 %v1982_v37, %s1436_s26 }
 0x202   : > { %v740_v25 = vpop.f32.mrf.mxu2 }
 0x203   : > { %v741_v31 = vadd.f32 %v1927_v52, %v740_v25  ;;  %v837_v25 = vrot.slane %v796_v15, 1 }
 0x205   : > { %v1991_v6 = vadd.f32 %v741_v31, %v1560_v7  ;;  %v798_v31 = vld [vmem:[#allocation3 + $0x68] sm:$0x3] }
 0x207   : > { %783 = vst.msk [vmem:[#allocation3 + $0x71] sm:$0xff] %vm754_vm13, %v1991_v6 }
 0x208   : > { %1033 = vrot.lane.b32.xlu2 %v1996_v29, %s1446_s7 }
 0x214   : > { %v728_v23 = vpop.f32.mrf.mxu0 }
 0x215   : > { %v729_v34 = vadd.f32 %v1927_v52, %v728_v23  ;;  %v838_v23 = vsel %vm332_vm3, %v836_v22, %v837_v25 }
 0x217   : > { %v2002_v56 = vadd.f32 %v729_v34, %v1511_v2 }
 0x219   : > { %779 = vst.msk [vmem:[#allocation3 + $0x31] sm:$0xff] %vm754_vm13, %v2002_v56 }
 0x220   : > { %v2044_v59 = vld [vmem:[#allocation3 + $0x30] sm:$0xff]  ;;  %v792_v0 = vld [vmem:[#allocation3 + $0x38] sm:$0x3] }
 0x221   : > { %v830_v62 = vrot.slane %v2044_v59, 1  ;;  %v831_v5 = vrot.slane %v792_v0, 1  ;;  %v855_v45 = vrot.slane %v792_v0, 2 }
 0x223   : > { %v743_v7 = vpop.f32.mrf.mxu3  ;;  %v832_v26 = vsel %vm332_vm3, %v830_v62, %v831_v5 }
 0x224   : > { %v744_v28 = vadd.f32 %v1927_v52, %v743_v7  ;;  %v2094_v7 = vpop.permute.xlu1 %1019 }
 0x226   : > { %v2008_v9 = vadd.f32 %v744_v28, %v1563_v8  ;;  %v852_v8 = vrot.slane %v790_v18, 2  ;;  %v2100_v28 = vld [vmem:[#allocation3 + $0x70] sm:$0xff]  ;;  %v1149_v18 = vld [vmem:[%s2326_s3 + $0x18] sm:$0x7] }
 0x227   : > { %1352 = vmatpush.msk.msra.mxu1 %vm1178_vm1, %v1149_v18  ;;  %1387 = vmatpush.msk.msrb.mxu3 %vm1178_vm1, %v1149_v18 }
 0x228   : > { %784 = vst.msk [vmem:[#allocation3 + $0x81] sm:$0xff] %vm754_vm13, %v2008_v9  ;;  %v853_v48 = vsel %vm357_vm2, %v851_v41, %v852_v8  ;;  %v842_v41 = vrot.slane %v2100_v28, 1 }
 0x229   : > { %1195 = vmatpush.msra.mxu1 %v1148_v43  ;;  %1388 = vmatpush.msrb.mxu3 %v1148_v43 }
 0x22b   : > { %1196 = vmatpush.msra.mxu1 %v1147_v47  ;;  %1389 = vmatpush.msrb.mxu3 %v1147_v47 }
 0x22f   : > { %v801_v40 = vld [vmem:[#allocation3 + $0x80] sm:$0xff]  ;;  %v802_v30 = vld [vmem:[#allocation3 + $0x88] sm:$0x3] }
 0x230   : > { %947 = vrot.lane.b32.xlu1 %v801_v40, %s1436_s26  ;;  %1017 = vrot.lane.b32.xlu0 %v801_v40, %s1435_s25  ;;  %v874_v2 = vrot.slane %v801_v40, 2  ;;  %v875_v35 = vrot.slane %v802_v30, 2  ;;  %v871_v55 = vrot.slane %v801_v40, 1  ;;  %v872_v24 = vrot.slane %v802_v30, 1 }
 0x231   : > { %v863_v40 = vrot.slane %v2080_v20, 2  ;;  %v864_v30 = vrot.slane %v798_v31, 2 }
 0x232   : > { %v876_v38 = vsel %vm357_vm2, %v874_v2, %v875_v35  ;;  %v873_v21 = vsel %vm332_vm3, %v871_v55, %v872_v24  ;;  %v800_v2 = vld [vmem:[#allocation3 + $0x78] sm:$0x3] }
 0x233   : > { %1065 = vrot.lane.b32.xlu2 %v876_v38, %s1445_s6  ;;  %v2027_v52 = vpop.permute.xlu2 %933  ;;  %v843_v8 = vrot.slane %v800_v2, 1  ;;  %v865_v44 = vsel %vm357_vm2, %v863_v40, %v864_v30 }
 0x235   : > { %v844_v10 = vsel %vm332_vm3, %v842_v41, %v843_v8 }
 0x238   : > { %1053 = vrot.lane.b32.xlu1 %v853_v48, %s1445_s6  ;;  %1029 = vrot.lane.b32.xlu0 %v829_v49, %s1446_s7 }
 0x23b   : > { %987 = vrot.lane.b32.xlu2 %v859_v50, %s1447_s17  ;;  %v888_v54 = vpop.permute.xlu2 %887 }
 0x23c   : > { %v1078_v61 = vsel %vm754_vm13, %v1952_v12, %v888_v54  ;;  %v854_v12 = vrot.slane %v2044_v59, 2 }
 0x23e   : > { %v856_v36 = vsel %vm357_vm2, %v854_v12, %v855_v45 }
 0x240   : > { %959 = vrot.lane.b32.xlu1 %v829_v49, %s1448_s21  ;;  %983 = vrot.lane.b32.xlu0 %v853_v48, %s1447_s17 }
 0x243   : > { %995 = vrot.lane.b32.xlu2 %v876_v38, %s1447_s17  ;;  %v2110_v38 = vpop.permute.xlu1 %1043 }
 0x248   : > { %889 = vrot.lane.b32.xlu1 %v829_v49, %s1443_s27  ;;  %913 = vrot.lane.b32.xlu0 %v853_v48, %s1444_s28  ;;  %v866_v48 = vrot.slane %v2100_v28, 2  ;;  %v867_v49 = vrot.slane %v800_v2, 2 }
 0x24a   : > { %v868_v55 = vsel %vm357_vm2, %v866_v48, %v867_v49  ;;  %vm1102_vm2 = vcmask 97280  }
 0x24b   : > { %917 = vrot.lane.b32.xlu2 %v859_v50, %s1444_s28 }
 0x24e   : > { %v2037_v57 = vpop.permute.xlu0 %957  ;;  %v982_v24 = vpop.permute.xlu1 %981 }
 0x250   : > { %1057 = vrot.lane.b32.xlu1 %v859_v50, %s1445_s6  ;;  %1041 = vrot.lane.b32.xlu0 %v873_v21, %s1446_s7  ;;  %v1146_v50 = vld [vmem:[%s2326_s3] sm:$0xff] }
 0x251   : > { %1197 = vmatpush.msra.mxu1 %v1146_v50  ;;  %1390 = vmatpush.msrb.mxu3 %v1146_v50 }
 0x252   : > { %v2042_v58 = vpop.permute.xlu2 %1005 }
 0x253   : > { %1007 = vrot.lane.b32.xlu2 %v2044_v59, %s1435_s25 }
 0x256   : > { %v912_v46 = vpop.permute.xlu0 %911  ;;  %v2139_v0 = vpop.permute.xlu1 %939 }
 0x257   : > { %v1087_v63 = vsel %vm1085_vm15, %v1078_v61, %v912_v46  ;;  %v1077_v46 = vsel %vm754_vm13, %v1894_v42, %v2025_v51 }
 0x258   : > { %1011 = vrot.lane.b32.xlu1 %v2052_v13, %s1435_s25  ;;  %963 = vrot.lane.b32.xlu0 %v1996_v29, %s1448_s21  ;;  %v1086_v5 = vsel %vm1085_vm15, %v1077_v46, %v910_v32 }
 0x25a   : > { %v936_v1 = vpop.permute.xlu2 %935 }
 0x25b   : > { %v2060_v14 = vsel %vm233_vm0, %v1087_v63, %v936_v1  ;;  %961 = vrot.lane.b32.xlu2 %v832_v26, %s1448_s21 }
 0x25e   : > { %v2141_v61 = vpop.permute.xlu0 %1009 }
 0x260   : > { %1031 = vrot.lane.b32.xlu1 %v832_v26, %s1446_s7  ;;  %971 = vrot.lane.b32.xlu0 %v873_v21, %s1448_s21 }
 0x262   : > { %v2105_v35 = vpop.permute.xlu2 %1033 }
 0x263   : > { %891 = vrot.lane.b32.xlu2 %v832_v26, %s1443_s27  ;;  %v1094_v26 = vsel %vm233_vm0, %v1086_v5, %v2027_v52 }
 0x264   : > { %v1103_v42 = vsel %vm1102_vm2, %v1094_v26, %v2037_v57 }
 0x268   : > { %985 = vrot.lane.b32.xlu1 %v856_v36, %s1447_s17  ;;  %893 = vrot.lane.b32.xlu0 %v1996_v29, %s1443_s27  ;;  %v840_v29 = vrot.slane %v798_v31, 1 }
 0x26a   : > { %v2090_v34 = vsel %vm332_vm3, %v839_v33, %v840_v29  ;;  %vm1111_vm3 = vcmask 121856  }
 0x26b   : > { %1059 = vrot.lane.b32.xlu2 %v2073_v39, %s1445_s6  ;;  %v1112_v51 = vsel %vm1111_vm3, %v1103_v42, %v982_v24 }
 0x26c   : > { %v1120_v45 = vsel %vm598_vm4, %v1112_v51, %v2042_v58 }
 0x270   : > { %915 = vrot.lane.b32.xlu1 %v856_v36, %s1444_s28  ;;  %937 = vrot.lane.b32.xlu0 %v2044_v59, %s1436_s26 }
 0x273   : > { %943 = vrot.lane.b32.xlu2 %v2080_v20, %s1436_s26 }
 0x278   : > { %895 = vrot.lane.b32.xlu1 %v838_v23, %s1443_s27  ;;  %1055 = vrot.lane.b32.xlu0 %v856_v36, %s1445_s6 }
 0x27b   : > { %897 = vrot.lane.b32.xlu2 %v2090_v34, %s1443_s27 }
 0x280   : > { %967 = vrot.lane.b32.xlu1 %v2090_v34, %s1448_s21  ;;  %919 = vrot.lane.b32.xlu0 %v2073_v39, %s1444_s28 }
 0x283   : > { %1015 = vrot.lane.b32.xlu2 %v2100_v28, %s1435_s25 }
 0x288   : > { %921 = vrot.lane.b32.xlu1 %v865_v44, %s1444_s28  ;;  %1035 = vrot.lane.b32.xlu0 %v838_v23, %s1446_s7 }
 0x28b   : > { %1039 = vrot.lane.b32.xlu2 %v844_v10, %s1446_s7 }
 0x28d   : > { %v2128_v54 = vpop.permute.xlu2 %1065 }
 0x290   : > { %1063 = vrot.lane.b32.xlu1 %v868_v55, %s1445_s6  ;;  %991 = vrot.lane.b32.xlu0 %v865_v44, %s1447_s17 }
 0x293   : > { %969 = vrot.lane.b32.xlu2 %v844_v10, %s1448_s21 }
 0x295   : > { %v2134_v21 = vpop.permute.xlu2 %987 }
 0x298   : > { %993 = vrot.lane.b32.xlu1 %v868_v55, %s1447_s17  ;;  %945 = vrot.lane.b32.xlu0 %v2100_v28, %s1436_s26 }
 0x29b   : > { %923 = vrot.lane.b32.xlu2 %v868_v55, %s1444_s28 }
 0x29d   : > { %v2147_v62 = vpop.permute.xlu2 %995 }
 0x2a0   : > { %941 = vrot.lane.b32.xlu1 %v2052_v13, %s1436_s26  ;;  %899 = vrot.lane.b32.xlu0 %v844_v10, %s1443_s27 }
 0x2a2   : > { %v2153_v63 = vpop.permute.xlu1 %947  ;;  %v2155_v1 = vpop.permute.xlu0 %1017 }
 0x2a3   : > { %965 = vrot.lane.b32.xlu2 %v838_v23, %s1448_s21 }
 0x2a5   : > { %v918_v12 = vpop.permute.xlu2 %917 }
 0x2a8   : > { %1013 = vrot.lane.b32.xlu1 %v2080_v20, %s1435_s25  ;;  %989 = vrot.lane.b32.xlu0 %v2073_v39, %s1447_s17 }
 0x2aa   : > { %v1054_v15 = vpop.permute.xlu1 %1053  ;;  %v1030_v52 = vpop.permute.xlu0 %1029 }
 0x2ab   : > { %v1129_v16 = vsel %vm1128_vm5, %v1120_v45, %v1030_v52  ;;  %1037 = vrot.lane.b32.xlu2 %v2090_v34, %s1446_s7 }
 0x2ac   : > { %v1138_v57 = vsel %vm1137_vm7, %v1129_v16, %v1054_v15 }
 0x2ad   : > { %1353 = vmatmul.msk.f32.vlgmr.msra.gmra.mxu1 %vm607_vm6, %v1138_v57  ;;  %v1008_v39 = vpop.permute.xlu2 %1007 }
 0x2b0   : > { %1061 = vrot.lane.b32.xlu0 %v865_v44, %s1445_s6 }
 0x2b2   : > { %v960_v3 = vpop.permute.xlu1 %959  ;;  %v984_v36 = vpop.permute.xlu0 %983 }
 0x2b3   : > { %v1104_v48 = vsel %vm1102_vm2, %v2060_v14, %v960_v3 }
 0x2b4   : > { %v1113_v24 = vsel %vm1111_vm3, %v1104_v48, %v984_v36 }
 0x2b5   : > { %v962_v31 = vpop.permute.xlu2 %961  ;;  %v1121_v46 = vsel %vm598_vm4, %v1113_v24, %v1008_v39 }
 0x2ba   : > { %v890_v22 = vpop.permute.xlu1 %889  ;;  %v914_v25 = vpop.permute.xlu0 %913 }
 0x2bb   : > { %v1079_v44 = vsel %vm754_vm13, %v1982_v37, %v890_v22 }
 0x2bc   : > { %v1088_v49 = vsel %vm1085_vm15, %v1079_v44, %v914_v25 }
 0x2bd   : > { %v892_v33 = vpop.permute.xlu2 %891 }
 0x2be   : > { %v1080_v14 = vsel %vm754_vm13, %v2044_v59, %v892_v33 }
 0x2c2   : > { %v1058_v58 = vpop.permute.xlu1 %1057  ;;  %v2175_v32 = vpop.permute.xlu0 %1041 }
 0x2c5   : > { %v1060_v40 = vpop.permute.xlu2 %1059 }
 0x2ca   : > { %v1012_v29 = vpop.permute.xlu1 %1011  ;;  %v964_v23 = vpop.permute.xlu0 %963 }
 0x2cd   : > { %v944_v41 = vpop.permute.xlu2 %943 }
 0x2d2   : > { %v1032_v34 = vpop.permute.xlu1 %1031  ;;  %v2177_v30 = vpop.permute.xlu0 %971 }
 0x2d3   : > { %v1130_v5 = vsel %vm1128_vm5, %v1121_v46, %v1032_v34 }
 0x2d5   : > { %v898_v55 = vpop.permute.xlu2 %897 }
 0x2da   : > { %v986_v2 = vpop.permute.xlu1 %985  ;;  %v894_v18 = vpop.permute.xlu0 %893 }
 0x2db   : > { %v1081_v8 = vsel %vm754_vm13, %v1969_v19, %v894_v18 }
 0x2dc   : > { %v2182_v43 = vsel %vm1085_vm15, %v1081_v8, %v918_v12 }
 0x2dd   : > { %v1016_v15 = vpop.permute.xlu2 %1015 }
 0x2e2   : > { %v916_v47 = vpop.permute.xlu1 %915  ;;  %v938_v10 = vpop.permute.xlu0 %937 }
 0x2e3   : > { %v1096_v50 = vsel %vm233_vm0, %v1088_v49, %v938_v10  ;;  %v1089_v45 = vsel %vm1085_vm15, %v1080_v14, %v916_v47 }
 0x2e4   : > { %v1105_v19 = vsel %vm1102_vm2, %v1096_v50, %v962_v31  ;;  %v1097_v16 = vsel %vm233_vm0, %v1089_v45, %v2139_v0 }
 0x2e5   : > { %v1114_v37 = vsel %vm1111_vm3, %v1105_v19, %v986_v2  ;;  %v1106_v39 = vsel %vm1102_vm2, %v1097_v16, %v964_v23 }
 0x2e6   : > { %v1122_v12 = vsel %vm598_vm4, %v1114_v37, %v2141_v61  ;;  %v1115_v59 = vsel %vm1111_vm3, %v1106_v39, %v2134_v21  ;;  %v1040_v61 = vpop.permute.xlu2 %1039 }
 0x2e7   : > { %v1131_v52 = vsel %vm1128_vm5, %v1122_v12, %v2105_v35  ;;  %v1123_v31 = vsel %vm598_vm4, %v1115_v59, %v1012_v29 }
 0x2e8   : > { %v1140_v36 = vsel %vm1137_vm7, %v1131_v52, %v1058_v58 }
 0x2ea   : > { %v896_v26 = vpop.permute.xlu1 %895  ;;  %v1056_v42 = vpop.permute.xlu0 %1055 }
 0x2eb   : > { %v1139_v51 = vsel %vm1137_vm7, %v1130_v5, %v1056_v42  ;;  %v1082_v35 = vsel %vm754_vm13, %v2052_v13, %v896_v26 }
 0x2ec   : > { %1354 = vmatmul.msk.f32.gmra.mxu1 %vm607_vm6, %v1139_v51 }
 0x2ee   : > { %v970_v18 = vpop.permute.xlu2 %969 }
 0x2f2   : > { %v968_v57 = vpop.permute.xlu1 %967  ;;  %v920_v3 = vpop.permute.xlu0 %919 }
 0x2f3   : > { %v1091_v33 = vsel %vm1085_vm15, %v1082_v35, %v920_v3 }
 0x2f4   : > { %1355 = vmatmul.msk.f32.gmra.mxu1 %vm607_vm6, %v1140_v36  ;;  %v1099_v23 = vsel %vm233_vm0, %v1091_v33, %v944_v41 }
 0x2f5   : > { %v1108_v2 = vsel %vm1102_vm2, %v1099_v23, %v968_v57 }
 0x2f6   : > { %v924_v50 = vpop.permute.xlu2 %923 }
 0x2fa   : > { %v922_v22 = vpop.permute.xlu1 %921  ;;  %v1036_v25 = vpop.permute.xlu0 %1035 }
 0x2fb   : > { %v1132_v0 = vsel %vm1128_vm5, %v1123_v31, %v1036_v25 }
 0x2fc   : > { %v1141_v58 = vsel %vm1137_vm7, %v1132_v0, %v1060_v40  ;;  %v1083_v40 = vsel %vm754_vm13, %v2080_v20, %v898_v55 }
 0x2fd   : > { %1356 = vmatmul.msk.f32.gmra.mxu1 %vm607_vm6, %v1141_v58  ;;  %v1092_v41 = vsel %vm1085_vm15, %v1083_v40, %v922_v22  ;;  %v1417_v58 = vld [vmem:[%s1503_s23] sm:$0xff] }
 0x2fe   : > { %v966_v51 = vpop.permute.xlu2 %965 }
 0x302   : > { %v1064_v34 = vpop.permute.xlu1 %1063  ;;  %v992_v21 = vpop.permute.xlu0 %991 }
 0x303   : > { %v1117_v29 = vsel %vm1111_vm3, %v1108_v2, %v992_v21 }
 0x304   : > { %v1125_v8 = vsel %vm598_vm4, %v1117_v29, %v1016_v15 }
 0x305   : > { %v1134_v13 = vsel %vm1128_vm5, %v1125_v8, %v1040_v61 }
 0x306   : > { %v1143_v44 = vsel %vm1137_vm7, %v1134_v13, %v1064_v34  ;;  %v1418_v13 = vld [vmem:[%s1503_s23 + $0x8] sm:$0xff] }
 0x307   : > { %1358 = vmatmul.msk.f32.vlgmr.msrb.gmra.mxu3 %vm607_vm6, %v1143_v44 }
 0x30a   : > { %v994_v47 = vpop.permute.xlu1 %993  ;;  %v946_v10 = vpop.permute.xlu0 %945 }
 0x30b   : > { %v1100_v48 = vsel %vm233_vm0, %v1092_v41, %v946_v10  ;;  %v1419_v41 = vld [vmem:[%s1503_s23 + $0x10] sm:$0xff] }
 0x30c   : > { %v1109_v49 = vsel %vm1102_vm2, %v1100_v48, %v970_v18 }
 0x30d   : > { %v1118_v24 = vsel %vm1111_vm3, %v1109_v49, %v994_v47  ;;  %v1420_v49 = vld [vmem:[%s1503_s23 + $0x18] sm:$0xff] }
 0x30e   : > { %v1126_v19 = vsel %vm598_vm4, %v1118_v24, %v2155_v1 }
 0x30f   : > { %v1135_v46 = vsel %vm1128_vm5, %v1126_v19, %v2175_v32  ;;  %v1421_v19 = vld [vmem:[%s1503_s23 + $0x20] sm:$0xff] }
 0x310   : > { %v1144_v20 = vsel %vm1137_vm7, %v1135_v46, %v2128_v54 }
 0x311   : > { %1359 = vmatmul.msk.f32.gmra.mxu3 %vm607_vm6, %v1144_v20 }
 0x312   : > { %v942_v55 = vpop.permute.xlu1 %941  ;;  %v900_v5 = vpop.permute.xlu0 %899 }
 0x313   : > { %v1084_v37 = vsel %vm754_vm13, %v2100_v28, %v900_v5  ;;  %v1098_v54 = vsel %vm233_vm0, %v2182_v43, %v942_v55  ;;  %v1038_v43 = vpop.permute.xlu2 %1037 }
 0x314   : > { %v1093_v26 = vsel %vm1085_vm15, %v1084_v37, %v924_v50  ;;  %v1107_v45 = vsel %vm1102_vm2, %v1098_v54, %v966_v51 }
 0x315   : > { %v1101_v42 = vsel %vm233_vm0, %v1093_v26, %v2153_v63  ;;  %v1423_v26 = vld [vmem:[%s1503_s23 + $0x38] sm:$0xff] }
 0x316   : > { %v1110_v1 = vsel %vm1102_vm2, %v1101_v42, %v2177_v30 }
 0x317   : > { %v1119_v32 = vsel %vm1111_vm3, %v1110_v1, %v2147_v62 }
 0x318   : > { %v1127_v14 = vsel %vm598_vm4, %v1119_v32, %v2094_v7  ;;  %v1424_v32 = vld [vmem:[%s1503_s23 + $0x30] sm:$0xff] }
 0x319   : > { %v1136_v28 = vsel %vm1128_vm5, %v1127_v14, %v2110_v38 }
 0x31a   : > { %v990_v12 = vpop.permute.xlu0 %989  ;;  %v1145_v63 = vsel %vm1137_vm7, %v1136_v28, %v2032_v53  ;;  %v1014_v30 = vpop.permute.xlu1 %1013  ;;  %v1416_v53 = vld [vmem:[%s2327_s4] ss:$0 sm:$0xff] }
 0x31b   : > { %1360 = vmatmul.msk.f32.gmra.mxu3 %vm607_vm6, %v1145_v63  ;;  %v1116_v62 = vsel %vm1111_vm3, %v1107_v45, %v990_v12 }
 0x31c   : > { %v1124_v15 = vsel %vm598_vm4, %v1116_v62, %v1014_v30 }
 0x31d   : > { %v1133_v7 = vsel %vm1128_vm5, %v1124_v15, %v1038_v43 }
 0x322   : > { %v1062_v52 = vpop.permute.xlu0 %1061 }
 0x323   : > { %v1142_v16 = vsel %vm1137_vm7, %v1133_v7, %v1062_v52 }
 0x324   : > { %1357 = vmatmul.msk.f32.gmra.mxu1 %vm607_vm6, %v1142_v16 }
 0x32a   : > { %v1199_v38 = vpop.f32.mrf.mxu1 }
 0x32b   : > { %v1200_v57 = vadd.f32 %v1416_v53, %v1199_v38 }
 0x32d   : > { %1231 = vrot.lane.b32.xlu1 %v1200_v57, %s1443_s27 }
 0x369   : > { %v1202_v3 = vpop.f32.mrf.mxu1 }
 0x36a   : > { %v1203_v36 = vadd.f32 %v1416_v53, %v1202_v3 }
 0x36c   : > { %1233 = vrot.lane.b32.xlu2 %v1203_v36, %s1443_s27 }
 0x371   : > { %v1205_v39 = vpop.f32.mrf.mxu1 }
 0x372   : > { %v1206_v59 = vadd.f32 %v1416_v53, %v1205_v39 }
 0x374   : > { %1235 = vrot.lane.b32.xlu0 %v1206_v59, %s1443_s27 }
 0x37a   : > { %v1208_v61 = vpop.f32.mrf.mxu1 }
 0x37b   : > { %v1209_v22 = vadd.f32 %v1416_v53, %v1208_v61 }
 0x37d   : > { %1237 = vrot.lane.b32.xlu1 %v1209_v22, %s1443_s27 }
 0x38a   : > { %v1214_v25 = vpop.f32.mrf.mxu3 }
 0x38b   : > { %v1215_v31 = vadd.f32 %v1416_v53, %v1214_v25 }
 0x38d   : > { %1241 = vrot.lane.b32.xlu0 %v1215_v31, %s1443_s27 }
 0x394   : > { %v1217_v35 = vpop.f32.mrf.mxu3 }
 0x395   : > { %v1218_v0 = vadd.f32 %v1416_v53, %v1217_v35 }
 0x397   : > { %1243 = vrot.lane.b32.xlu1 %v1218_v0, %s1443_s27 }
 0x39e   : > { %v1220_v18 = vpop.f32.mrf.mxu3 }
 0x39f   : > { %v1232_v33 = vpop.permute.xlu1 %1231  ;;  %v1221_v29 = vadd.f32 %v1416_v53, %v1220_v18 }
 0x3a0   : > { %v1255_v23 = vadd.f32 %v1417_v58, %v1232_v33 }
 0x3a1   : > { %v1211_v34 = vpop.f32.mrf.mxu1 }
 0x3a2   : > { %v1263_v21 = vsel %vm754_vm13, %v1948_v11, %v1255_v23  ;;  %v1212_v2 = vadd.f32 %v1416_v53, %v1211_v34 }
 0x3a3   : > { %1271 = vst.msk [vmem:[%s2276_s16] sm:$0xff] %vm1102_vm2, %v1263_v21 }
 0x3a4   : > { %1239 = vrot.lane.b32.xlu2 %v1212_v2, %s1443_s27 }
 0x3ac   : > { %1245 = vrot.lane.b32.xlu2 %v1221_v29, %s1443_s27 }
 0x3c6   : > { %v1234_v8 = vpop.permute.xlu2 %1233 }
 0x3c7   : > { %v1256_v44 = vadd.f32 %v1418_v13, %v1234_v8 }
 0x3c9   : > { %v1264_v40 = vsel %vm754_vm13, %v1978_v4, %v1256_v44 }
 0x3ca   : > { %1272 = vst.msk [vmem:[%s2276_s16 + $0x8] sm:$0xff] %vm1102_vm2, %v1264_v40 }
 0x3e6   : > { %v1236_v11 = vpop.permute.xlu0 %1235 }
 0x3e7   : > { %v1257_v47 = vadd.f32 %v1419_v41, %v1236_v11 }
 0x3e9   : > { %v1265_v10 = vsel %vm754_vm13, %v2002_v56, %v1257_v47  ;;  %v1422_v56 = vld [vmem:[%s1503_s23 + $0x28] sm:$0xff] }
 0x3ea   : > { %1273 = vst.msk [vmem:[%s2276_s16 + $0x10] sm:$0xff] %vm1102_vm2, %v1265_v10 }
 0x3ef   : > { %v1238_v48 = vpop.permute.xlu1 %1237 }
 0x3f0   : > { %v1258_v50 = vadd.f32 %v1420_v49, %v1238_v48 }
 0x3f2   : > { %v1266_v4 = vsel %vm754_vm13, %v1932_v60, %v1258_v50 }
 0x3f3   : > { %1274 = vst.msk [vmem:[%s2276_s16 + $0x18] sm:$0xff] %vm1102_vm2, %v1266_v4 }
 0x3fe   : > { %v1240_v24 = vpop.permute.xlu2 %1239 }
 0x3ff   : > { %v1259_v46 = vadd.f32 %v1421_v19, %v1240_v24  ;;  %v1242_v20 = vpop.permute.xlu0 %1241 }
 0x400   : > { %v1260_v55 = vadd.f32 %v1422_v56, %v1242_v20 }
 0x401   : > { %v1267_v5 = vsel %vm754_vm13, %v1942_v27, %v1259_v46 }
 0x402   : > { %1275 = vst.msk [vmem:[%s2276_s16 + $0x20] sm:$0xff] %vm1102_vm2, %v1267_v5  ;;  %v1268_v37 = vsel %vm754_vm13, %v1964_v17, %v1260_v55 }
 0x403   : > { %1276 = vst.msk [vmem:[%s2276_s16 + $0x28] sm:$0xff] %vm1102_vm2, %v1268_v37 }
 0x406   : > { %v1246_v60 = vpop.permute.xlu2 %1245 }
 0x407   : > { %v1262_v42 = vadd.f32 %v1423_v26, %v1246_v60 }
 0x409   : > { %v1270_v1 = vsel %vm754_vm13, %v2008_v9, %v1262_v42  ;;  %v1244_v51 = vpop.permute.xlu1 %1243 }
 0x40a   : > { %1278 = vst.msk [vmem:[%s2276_s16 + $0x38] sm:$0xff] %vm1102_vm2, %v1270_v1  ;;  %v1261_v54 = vadd.f32 %v1424_v32, %v1244_v51 }
 0x40c   : > { %v1269_v27 = vsel %vm754_vm13, %v1991_v6, %v1261_v54 }
 0x40d   : > { %1277 = vst.msk [vmem:[%s2276_s16 + $0x30] sm:$0xff] %vm1102_vm2, %v1269_v27 }
 0x40e PF: > { %s15_s18 = sadd.s32 1, %s1431_s18  }
 0x40f   : > { %p12_p4 = scmp.ge.s32.totalorder %s15_s18, 4  }
 0x411   :  { %14 = sbr.rel (!%p12_p4) target bundleno = 1 (0x1), region = 72 }

// kernel: _lambda_.5
= control target key start
LH: loop header
LB: loop body
LE: loop exit
PB: predicated region body
PF: predicated region fallthrough
CT: control target
= control target key end

     0   :  { %10 = vsyncpa [#allocation5], 0  ;;  %s2502_s0 = inlined_call_operand.vmem [shape: f32[2,8,8,12], index: 0, kind: input, shape index: {}]   ;;  %s2503_s1 = inlined_call_operand.vmem [shape: f32[81,3], index: 1, kind: input, shape index: {}]   ;;  %s2504_s2 = inlined_call_operand.vmem [shape: f32[1,3], index: 2, kind: input, shape index: {}]   ;;  %s2505_s3 = inlined_call_operand.vmem [shape: f32[27,9], index: 3, kind: input, shape index: {}]   ;;  %s2506_s4 = inlined_call_operand.vmem [shape: f32[1,9], index: 4, kind: input, shape index: {}]   ;;  %s2507_s5 = inlined_call_operand.hbm [shape: f32[2,8,8,12], index: 5, kind: output, shape index: {}]  }
   0x1   :  { %12 = vsyncpa [#allocation5 + $0x1], 0  ;;  %s1592_s18 = smov 0   ;;  %s1594_s19 = smov 0  }
   0x2   :  { %s1596_s20 = smov 0   ;;  %s1598_s21 = smov 0  }
   0x3 LB: > { %s1613_s22 = sadd.s32 4294967295, %s1542_s21   ;;  %s1355_s23 = sadd.s32 4294967294, %s1542_s21   ;;  %s1542_s21 = sphi %s1598_s21, %s2513_s21   ;;  %s1538_s20 = sphi %s1596_s20, %s2512_s20   ;;  %s1534_s19 = sphi %s1594_s19, %s2511_s19   ;;  %s1530_s18 = sphi %s1592_s18, %s2510_s18  }
   0x4   : > { %s1617_s24 = sadd.s32 1, %s1542_s21   ;;  %s135_s25 = sadd.s32 1, %s1538_s20 }
   0x5   : > { %s132_s26 = ssub.s32 %s1542_s21, %s1617_s24  ;;  %p145_p0 = scmp.ne.s32.totalorder %s1538_s20, %s1534_s19 }
   0x6   : > { %p133_p1 = scmp.eq.s32.totalorder %s132_s26, 0  ;;  %p146_p2 = scmp.eq.s32.totalorder %s1613_s22, 1 }
   0x7   : > { %p151_p3 = scmp.ne.s32.totalorder %s1534_s19, %s1530_s18  ;;  %p152_p4 = scmp.eq.s32.totalorder %s1355_s23, 1 }
   0x8   : > { %s1628_s27 = scalar_select %p133_p1, %s1538_s20, %s135_s25  }
   0x9   : > { %p1630_p5 = por %p146_p2, %p145_p0  ;;  %p1634_p6 = por %p152_p4, %p151_p3 }
   0xa   : > { %p1358_p7 = scmp.ge.s32.totalorder %s1542_s21, 1  ;;  %p190_p8 = scmp.lt.s32.totalorder %s1542_s21, 3 }
   0xc   : > { %p191_p9 = pnand %p1358_p7, %p190_p8 }
   0xd   : > { %p218_p10 = scmp.lt.s32.totalorder (!%p191_p9), %s1613_s22, 1  ;;  %s1545_s10 = smov (!%p191_p9), 125  }
   0xe   : > { %194 = sbr.rel (%p191_p9) target bundleno = 1050 (0x41a), region = 40  ;;  %s1546_s11 = smov (!%p191_p9), 18  }
   0xf   : > { %s1547_s12 = smov (!%p191_p9), 9   ;;  %s1548_s13 = smov (!%p191_p9), 27  }
  0x10   : > { %s1549_s14 = smov (!%p191_p9), 54   ;;  %s1550_s15 = smov (!%p191_p9), 36  }
  0x11   : > { %s1551_s16 = smov (!%p191_p9), 45   ;;  %s1552_s17 = smov (!%p191_p9), 63  }
  0x12   : > { %s1553_s23 = smov (!%p191_p9), 72   ;;  %s1558_s26 = smov (!%p191_p9), 15  }
  0x13   : > { %vm231_vm0 = vcmask 72704   ;;  %vm233_vm1 = vcmask 66560   ;;  %v1544_v0 = vmov 0.0   ;;  %s219_s30 = scalar_select %p218_p10, %s1613_s22, 1  ;;  %vm355_vm2 = vcmask 1045504  }
  0x14   : > { %243 = vst.msk [vmem:[#allocation2 + $0x50] sm:$0xff] %vm231_vm0, %v1544_v0  ;;  %vm330_vm3 = vcmask 1046528   ;;  %vm596_vm4 = vcmask 146432   ;;  %vm699_vm5 = vcmask 1040384   ;;  %vm605_vm6 = vcmask 220160  }
  0x15   : > { %244 = vst.msk [vmem:[#allocation2 + $0x58] sm:$0x3] %vm233_vm1, %v1544_v0  ;;  %s1385_s6 = sshll.u32 %s219_s30, 6  ;;  %vm614_vm7 = vcmask 293888   ;;  %vm623_vm8 = vcmask 367616   ;;  %vm632_vm9 = vcmask 441344  }
  0x16   : > { %232 = vst.msk [vmem:[#allocation2] sm:$0xff] %vm231_vm0, %v1544_v0  ;;  %s1653_s9 = scalar_lea.vmem %s2502_s0, %s1385_s6  ;;  %vm641_vm10 = vcmask 515072   ;;  %vm650_vm11 = vcmask 588800   ;;  %vm674_vm12 = vcmask 662528   ;;  %vm752_vm13 = vcmask 23552   ;;  %s1559_s30 = smov 12  }
  0x17   : > { %234 = vst.msk [vmem:[#allocation2 + $0x8] sm:$0x3] %vm233_vm1, %v1544_v0  ;;  %v1658_v1 = vld [vmem:[%s1653_s9 + $0x20] sm:$0xff]  ;;  %v1661_v2 = vld [vmem:[%s1653_s9 + $0x10] sm:$0xff]  ;;  %v1682_v4 = vld [vmem:[%s1653_s9 + $0x28] sm:$0xff]  ;;  %vm754_vm14 = vcmask 17408  }
  0x18   : > { %235 = vst.msk [vmem:[#allocation2 + $0x10] sm:$0xff] %vm231_vm0, %v1544_v0  ;;  %269 = vrot.lane.b32.xlu1 %v1658_v1, %s1545_s10  ;;  %265 = vrot.lane.b32.xlu0 %v1661_v2, %s1545_s10  ;;  %v1670_v3 = vld [vmem:[%s1653_s9] sm:$0xff]  ;;  %v1685_v5 = vld [vmem:[%s1653_s9 + $0x18] sm:$0xff]  ;;  %vm1083_vm15 = vcmask 48128  }
  0x19   : > { %236 = vst.msk [vmem:[#allocation2 + $0x18] sm:$0x3] %vm233_vm1, %v1544_v0  ;;  %261 = vrot.lane.b32.xlu2 %v1670_v3, %s1545_s10  ;;  %v1692_v6 = vld [vmem:[%s1653_s9 + $0x8] sm:$0xff]  ;;  %v1710_v7 = vld [vmem:[%s1653_s9 + $0x30] sm:$0xff]  ;;  %v1713_v8 = vld [vmem:[%s1653_s9 + $0x38] sm:$0xff] }
  0x1a   : > { %237 = vst.msk [vmem:[#allocation2 + $0x20] sm:$0xff] %vm231_vm0, %v1544_v0 }
  0x1b   : > { %238 = vst.msk [vmem:[#allocation2 + $0x28] sm:$0x3] %vm233_vm1, %v1544_v0 }
  0x1c   : > { %239 = vst.msk [vmem:[#allocation2 + $0x30] sm:$0xff] %vm231_vm0, %v1544_v0 }
  0x1d   : > { %240 = vst.msk [vmem:[#allocation2 + $0x38] sm:$0x3] %vm233_vm1, %v1544_v0  ;;  %v1719_v9 = vld [vmem:[#allocation2] sm:$0xff] }
  0x1e   : > { %241 = vst.msk [vmem:[#allocation2 + $0x40] sm:$0xff] %vm231_vm0, %v1544_v0  ;;  %v295_v10 = vld [vmem:[#allocation2 + $0x8] sm:$0x3]  ;;  %v356_v11 = vrot.slane %v1719_v9, 2  ;;  %v331_v14 = vrot.slane %v1719_v9, 1 }
  0x1f   : > { %242 = vst.msk [vmem:[#allocation2 + $0x48] sm:$0x3] %vm233_vm1, %v1544_v0  ;;  %v357_v12 = vrot.slane %v295_v10, 2  ;;  %v332_v15 = vrot.slane %v295_v10, 1 }
  0x20   : > { %245 = vst.msk [vmem:[#allocation2 + $0x60] sm:$0xff] %vm231_vm0, %v1544_v0  ;;  %271 = vrot.lane.b32.xlu1 %v1682_v4, %s1545_s10  ;;  %267 = vrot.lane.b32.xlu0 %v1685_v5, %s1545_s10 }
  0x21   : > { %246 = vst.msk [vmem:[#allocation2 + $0x68] sm:$0x3] %vm233_vm1, %v1544_v0  ;;  %263 = vrot.lane.b32.xlu2 %v1692_v6, %s1545_s10  ;;  %v358_v13 = vsel %vm355_vm2, %v356_v11, %v357_v12  ;;  %v333_v16 = vsel %vm330_vm3, %v331_v14, %v332_v15 }
  0x22   : > { %247 = vst.msk [vmem:[#allocation2 + $0x70] sm:$0xff] %vm231_vm0, %v1544_v0 }
  0x23   : > { %248 = vst.msk [vmem:[#allocation2 + $0x78] sm:$0x3] %vm233_vm1, %v1544_v0 }
  0x24   : > { %249 = vst.msk [vmem:[#allocation2 + $0x80] sm:$0xff] %vm231_vm0, %v1544_v0 }
  0x25   : > { %250 = vst.msk [vmem:[#allocation2 + $0x88] sm:$0x3] %vm233_vm1, %v1544_v0 }
  0x26   : > { %251 = vst.msk [vmem:[#allocation2 + $0x90] sm:$0xff] %vm231_vm0, %v1544_v0 }
  0x27   : > { %252 = vst.msk [vmem:[#allocation2 + $0x98] sm:$0x3] %vm233_vm1, %v1544_v0  ;;  %vm1176_vm1 = vcmask 1042432  }
  0x28   : > { %273 = vrot.lane.b32.xlu0 %v1710_v7, %s1545_s10  ;;  %275 = vrot.lane.b32.xlu1 %v1713_v8, %s1545_s10  ;;  %762 = vst.msk [vmem:[#allocation3 + $0x40] sm:$0xff] %vm752_vm13, %v1544_v0 }
  0x29   : > { %396 = vrot.lane.b32.xlu2 %v333_v16, %s1547_s12  ;;  %763 = vst.msk [vmem:[#allocation3 + $0x48] sm:$0x3] %vm754_vm14, %v1544_v0 }
  0x2a   : > { %753 = vst.msk [vmem:[#allocation3] sm:$0xff] %vm752_vm13, %v1544_v0 }
  0x2b   : > { %755 = vst.msk [vmem:[#allocation3 + $0x8] sm:$0x3] %vm754_vm14, %v1544_v0 }
  0x2c   : > { %756 = vst.msk [vmem:[#allocation3 + $0x10] sm:$0xff] %vm752_vm13, %v1544_v0 }
  0x2d   : > { %757 = vst.msk [vmem:[#allocation3 + $0x18] sm:$0x3] %vm754_vm14, %v1544_v0 }
  0x2e   : > { %758 = vst.msk [vmem:[#allocation3 + $0x20] sm:$0xff] %vm752_vm13, %v1544_v0 }
  0x2f   : > { %759 = vst.msk [vmem:[#allocation3 + $0x28] sm:$0x3] %vm754_vm14, %v1544_v0 }
  0x30   : > { %420 = vrot.lane.b32.xlu1 %v358_v13, %s1546_s11  ;;  %760 = vst.msk [vmem:[#allocation3 + $0x30] sm:$0xff] %vm752_vm13, %v1544_v0 }
  0x31   : > { %761 = vst.msk [vmem:[#allocation3 + $0x38] sm:$0x3] %vm754_vm14, %v1544_v0 }
  0x32   : > { %764 = vst.msk [vmem:[#allocation3 + $0x50] sm:$0xff] %vm752_vm13, %v1544_v0 }
  0x33   : > { %765 = vst.msk [vmem:[#allocation3 + $0x58] sm:$0x3] %vm754_vm14, %v1544_v0 }
  0x34   : > { %766 = vst.msk [vmem:[#allocation3 + $0x60] sm:$0xff] %vm752_vm13, %v1544_v0 }
  0x35   : > { %767 = vst.msk [vmem:[#allocation3 + $0x68] sm:$0x3] %vm754_vm14, %v1544_v0 }
  0x36   : > { %768 = vst.msk [vmem:[#allocation3 + $0x70] sm:$0xff] %vm752_vm13, %v1544_v0 }
  0x37   : > { %769 = vst.msk [vmem:[#allocation3 + $0x78] sm:$0x3] %vm754_vm14, %v1544_v0 }
  0x38   : > { %770 = vst.msk [vmem:[#allocation3 + $0x80] sm:$0xff] %vm752_vm13, %v1544_v0 }
  0x39   : > { %771 = vst.msk [vmem:[#allocation3 + $0x88] sm:$0x3] %vm754_vm14, %v1544_v0 }
  0x3a   : > { %772 = vst.msk [vmem:[#allocation3 + $0x90] sm:$0xff] %vm752_vm13, %v1544_v0 }
  0x3b   : > { %773 = vst.msk [vmem:[#allocation3 + $0x98] sm:$0x3] %vm754_vm14, %v1544_v0 }
  0x73   : > { %v262_v17 = vpop.permute.xlu2 %261 }
  0x74   : > { %286 = vst.msk [vmem:[#allocation2 + $0x11] sm:$0xff] %vm231_vm0, %v262_v17 }
  0x7b   : > { %v264_v18 = vpop.permute.xlu2 %263  ;;  %v1737_v24 = vld [vmem:[#allocation2 + $0x10] sm:$0xff]  ;;  %v297_v56 = vld [vmem:[#allocation2 + $0x18] sm:$0x3] }
  0x7c   : > { %287 = vst.msk [vmem:[#allocation2 + $0x21] sm:$0xff] %vm231_vm0, %v264_v18  ;;  %v334_v59 = vrot.slane %v1737_v24, 1  ;;  %v335_v60 = vrot.slane %v297_v56, 1  ;;  %v359_v10 = vrot.slane %v1737_v24, 2  ;;  %v360_v11 = vrot.slane %v297_v56, 2 }
  0x7e   : > { %v336_v62 = vsel %vm330_vm3, %v334_v59, %v335_v60  ;;  %v361_v12 = vsel %vm355_vm2, %v359_v10, %v360_v11  ;;  %v663_v59 = vld [vmem:[%s2503_s1 + $0x20] sm:$0xff]  ;;  %v662_v60 = vld [vmem:[%s2503_s1 + $0x18] sm:$0xff] }
  0x83   : > { %v1758_v29 = vld [vmem:[#allocation2 + $0x20] sm:$0xff]  ;;  %v299_v13 = vld [vmem:[#allocation2 + $0x28] sm:$0x3]  ;;  %v397_v18 = vpop.permute.xlu2 %396 }
  0x84   : > { %v362_v14 = vrot.slane %v1758_v29, 2  ;;  %v363_v15 = vrot.slane %v299_v13, 2  ;;  %v337_v16 = vrot.slane %v1758_v29, 1  ;;  %v338_v17 = vrot.slane %v299_v13, 1 }
  0x8a   : > { %v270_v19 = vpop.permute.xlu1 %269  ;;  %v266_v20 = vpop.permute.xlu0 %265 }
  0x8b   : > { %290 = vst.msk [vmem:[#allocation2 + $0x51] sm:$0xff] %vm231_vm0, %v270_v19  ;;  %v588_v19 = vsel %vm231_vm0, %v1719_v9, %v397_v18 }
  0x8c   : > { %288 = vst.msk [vmem:[#allocation2 + $0x31] sm:$0xff] %vm231_vm0, %v266_v20 }
  0x92   : > { %v272_v21 = vpop.permute.xlu1 %271  ;;  %v268_v22 = vpop.permute.xlu0 %267  ;;  %v1731_v23 = vld [vmem:[#allocation2 + $0x50] sm:$0xff]  ;;  %v305_v45 = vld [vmem:[#allocation2 + $0x58] sm:$0x3] }
  0x93   : > { %291 = vst.msk [vmem:[#allocation2 + $0x61] sm:$0xff] %vm231_vm0, %v272_v21  ;;  %452 = vrot.lane.b32.xlu0 %v1731_v23, %s1548_s13  ;;  %v1760_v30 = vld [vmem:[#allocation2 + $0x30] sm:$0xff]  ;;  %v301_v31 = vld [vmem:[#allocation2 + $0x38] sm:$0x3]  ;;  %v346_v46 = vrot.slane %v1731_v23, 1  ;;  %v347_v47 = vrot.slane %v305_v45, 1  ;;  %v364_v21 = vsel %vm355_vm2, %v362_v14, %v363_v15 }
  0x94   : > { %289 = vst.msk [vmem:[#allocation2 + $0x41] sm:$0xff] %vm231_vm0, %v268_v22  ;;  %v340_v32 = vrot.slane %v1760_v30, 1  ;;  %v341_v33 = vrot.slane %v301_v31, 1  ;;  %v365_v34 = vrot.slane %v1760_v30, 2  ;;  %v366_v35 = vrot.slane %v301_v31, 2  ;;  %v659_v15 = vld [vmem:[%s2503_s1] sm:$0xff] }
  0x95   : > { %v371_v48 = vrot.slane %v1731_v23, 2  ;;  %v372_v49 = vrot.slane %v305_v45, 2  ;;  %v348_v50 = vsel %vm330_vm3, %v346_v46, %v347_v47  ;;  %v339_v22 = vsel %vm330_vm3, %v337_v16, %v338_v17  ;;  %v667_v47 = vld [vmem:[%s2503_s1 + $0x40] sm:$0xff] }
  0x96   : > { %v1771_v36 = vsel %vm330_vm3, %v340_v32, %v341_v33  ;;  %v1774_v37 = vsel %vm355_vm2, %v365_v34, %v366_v35 }
  0x97   : > { %v373_v51 = vsel %vm355_vm2, %v371_v48, %v372_v49  ;;  %v666_v48 = vld [vmem:[%s2503_s1 + $0x38] sm:$0xff]  ;;  %v665_v49 = vld [vmem:[%s2503_s1 + $0x30] sm:$0xff] }
  0x9a   : > { %v274_v25 = vpop.permute.xlu0 %273  ;;  %v1739_v26 = vld [vmem:[#allocation2 + $0x60] sm:$0xff]  ;;  %v307_v52 = vld [vmem:[#allocation2 + $0x68] sm:$0x3]  ;;  %v276_v63 = vpop.permute.xlu1 %275 }
  0x9b   : > { %292 = vst.msk [vmem:[#allocation2 + $0x71] sm:$0xff] %vm231_vm0, %v274_v25  ;;  %v1742_v27 = vld [vmem:[#allocation2 + $0x40] sm:$0xff]  ;;  %524 = vrot.lane.b32.xlu2 %v1739_v26, %s1549_s14  ;;  %444 = vrot.lane.b32.xlu0 %v1737_v24, %s1548_s13  ;;  %v303_v38 = vld [vmem:[#allocation2 + $0x48] sm:$0x3]  ;;  %v349_v53 = vrot.slane %v1739_v26, 1  ;;  %v350_v54 = vrot.slane %v307_v52, 1 }
  0x9c   : > { %450 = vrot.lane.b32.xlu1 %v1742_v27, %s1548_s13  ;;  %v343_v39 = vrot.slane %v1742_v27, 1  ;;  %v344_v40 = vrot.slane %v303_v38, 1  ;;  %v368_v41 = vrot.slane %v1742_v27, 2  ;;  %v369_v42 = vrot.slane %v303_v38, 2  ;;  %293 = vst.msk [vmem:[#allocation2 + $0x81] sm:$0xff] %vm231_vm0, %v276_v63  ;;  %v660_v63 = vld [vmem:[%s2503_s1 + $0x8] sm:$0xff] }
  0x9d   : > { %v351_v55 = vsel %vm330_vm3, %v349_v53, %v350_v54  ;;  %v374_v57 = vrot.slane %v1739_v26, 2  ;;  %v375_v58 = vrot.slane %v307_v52, 2  ;;  %v664_v52 = vld [vmem:[%s2503_s1 + $0x28] sm:$0xff] }
  0x9e   : > { %v1785_v43 = vsel %vm330_vm3, %v343_v39, %v344_v40  ;;  %v1788_v44 = vsel %vm355_vm2, %v368_v41, %v369_v42  ;;  %v669_v41 = vld [vmem:[%s2503_s1 + $0x50] sm:$0x1]  ;;  %v668_v42 = vld [vmem:[%s2503_s1 + $0x48] sm:$0xff] }
  0x9f   : > { %v376_v61 = vsel %vm355_vm2, %v374_v57, %v375_v58  ;;  %1387 = vmatpush.msk.msra.mxu2 %vm699_vm5, %v669_v41  ;;  %1362 = vmatpush.msk.msra.mxu0 %vm699_vm5, %v669_v41 }
  0xa0   : > { %1388 = vmatpush.msk.msra.mxu3 %vm699_vm5, %v669_v41  ;;  %vm1126_vm5 = vcmask 171008  }
  0xa1   : > { %1389 = vmatpush.msra.mxu2 %v668_v42  ;;  %709 = vmatpush.msra.mxu0 %v668_v42 }
  0xa2   : > { %v1750_v28 = vld [vmem:[#allocation2 + $0x70] sm:$0xff]  ;;  %v421_v20 = vpop.permute.xlu1 %420  ;;  %v309_v31 = vld [vmem:[#allocation2 + $0x78] sm:$0x3]  ;;  %1390 = vmatpush.msra.mxu3 %v668_v42 }
  0xa3   : > { %454 = vrot.lane.b32.xlu2 %v1739_v26, %s1548_s13  ;;  %526 = vrot.lane.b32.xlu0 %v1750_v28, %s1549_s14  ;;  %v597_v25 = vsel %vm596_vm4, %v588_v19, %v421_v20  ;;  %v377_v32 = vrot.slane %v1750_v28, 2  ;;  %v378_v33 = vrot.slane %v309_v31, 2  ;;  %v352_v34 = vrot.slane %v1750_v28, 1 }
  0xa4   : > { %522 = vrot.lane.b32.xlu1 %v1731_v23, %s1549_s14  ;;  %v353_v35 = vrot.slane %v309_v31, 1  ;;  %1391 = vmatpush.msra.mxu2 %v667_v47  ;;  %v313_v31 = vld [vmem:[#allocation2 + $0x98] sm:$0x3] }
  0xa5   : > { %v1834_v9 = vsel %vm355_vm2, %v377_v32, %v378_v33  ;;  %710 = vmatpush.msra.mxu0 %v667_v47  ;;  %1392 = vmatpush.msra.mxu3 %v667_v47  ;;  %v394_v47 = vrot.slane %v313_v31, 2 }
  0xa6   : > { %v1842_v38 = vsel %vm330_vm3, %v352_v34, %v353_v35  ;;  %1393 = vmatpush.msra.mxu2 %v666_v48 }
  0xa7   : > { %711 = vmatpush.msra.mxu0 %v666_v48  ;;  %1394 = vmatpush.msra.mxu3 %v666_v48 }
  0xa8   : > { %1395 = vmatpush.msra.mxu2 %v665_v49 }
  0xa9   : > { %712 = vmatpush.msra.mxu0 %v665_v49  ;;  %1396 = vmatpush.msra.mxu3 %v665_v49 }
  0xaa   : > { %1397 = vmatpush.msra.mxu2 %v664_v52 }
  0xab   : > { %518 = vrot.lane.b32.xlu2 %v1760_v30, %s1549_s14  ;;  %456 = vrot.lane.b32.xlu0 %v1750_v28, %s1548_s13 }
  0xac   : > { %516 = vrot.lane.b32.xlu1 %v1758_v29, %s1549_s14  ;;  %713 = vmatpush.msra.mxu0 %v664_v52 }
  0xad   : > { %1399 = vmatpush.msra.mxu2 %v663_v59  ;;  %1398 = vmatpush.msra.mxu3 %v664_v52 }
  0xae   : > { %714 = vmatpush.msra.mxu0 %v663_v59 }
  0xaf   : > { %1401 = vmatpush.msra.mxu2 %v662_v60  ;;  %1400 = vmatpush.msra.mxu3 %v663_v59 }
  0xb0   : > { %715 = vmatpush.msra.mxu0 %v662_v60 }
  0xb1   : > { %1402 = vmatpush.msra.mxu3 %v662_v60 }
  0xb3   : > { %402 = vrot.lane.b32.xlu2 %v1771_v36, %s1547_s12  ;;  %426 = vrot.lane.b32.xlu0 %v1774_v37, %s1546_s11 }
  0xb4   : > { %446 = vrot.lane.b32.xlu1 %v1758_v29, %s1548_s13 }
  0xbb   : > { %474 = vrot.lane.b32.xlu2 %v1785_v43, %s1550_s15  ;;  %498 = vrot.lane.b32.xlu0 %v1788_v44, %s1551_s16 }
  0xbc   : > { %404 = vrot.lane.b32.xlu1 %v1785_v43, %s1547_s12 }
  0xc3   : > { %546 = vrot.lane.b32.xlu2 %v348_v50, %s1552_s17  ;;  %570 = vrot.lane.b32.xlu0 %v373_v51, %s1553_s23 }
  0xc4   : > { %476 = vrot.lane.b32.xlu1 %v348_v50, %s1550_s15 }
  0xcb   : > { %428 = vrot.lane.b32.xlu2 %v1788_v44, %s1546_s11  ;;  %500 = vrot.lane.b32.xlu0 %v373_v51, %s1551_s16 }
  0xcc   : > { %548 = vrot.lane.b32.xlu1 %v351_v55, %s1552_s17 }
  0xd3   : > { %572 = vrot.lane.b32.xlu0 %v376_v61, %s1553_s23  ;;  %468 = vrot.lane.b32.xlu2 %v336_v62, %s1550_s15 }
  0xd4   : > { %406 = vrot.lane.b32.xlu1 %v348_v50, %s1547_s12  ;;  %v310_v50 = vld [vmem:[#allocation2 + $0x80] sm:$0xff] }
  0xd5   : > { %v382_v57 = vrot.slane %v310_v50, 1  ;;  %v385_v13 = vrot.slane %v310_v50, 2 }
  0xdb   : > { %430 = vrot.lane.b32.xlu0 %v373_v51, %s1546_s11  ;;  %492 = vrot.lane.b32.xlu2 %v361_v12, %s1551_s16  ;;  %v311_v51 = vld [vmem:[#allocation2 + $0x88] sm:$0x3] }
  0xdc   : > { %478 = vrot.lane.b32.xlu1 %v351_v55, %s1550_s15  ;;  %v383_v58 = vrot.slane %v311_v51, 1  ;;  %v386_v14 = vrot.slane %v311_v51, 2 }
  0xe3   : > { %564 = vrot.lane.b32.xlu2 %v364_v21, %s1553_s23  ;;  %540 = vrot.lane.b32.xlu0 %v339_v22, %s1552_s17 }
  0xe4   : > { %502 = vrot.lane.b32.xlu1 %v376_v61, %s1551_s16 }
  0xeb   : > { %422 = vrot.lane.b32.xlu2 %v361_v12, %s1546_s11  ;;  %398 = vrot.lane.b32.xlu0 %v336_v62, %s1547_s12  ;;  %v384_v62 = vsel %vm330_vm3, %v382_v57, %v383_v58 }
  0xec   : > { %574 = vrot.lane.b32.xlu1 %v1834_v9, %s1553_s23 }
  0xf3   : > { %550 = vrot.lane.b32.xlu2 %v1842_v38, %s1552_s17  ;;  %470 = vrot.lane.b32.xlu0 %v339_v22, %s1550_s15 }
  0xf4   : > { %432 = vrot.lane.b32.xlu1 %v376_v61, %s1546_s11  ;;  %v661_v61 = vld [vmem:[%s2503_s1 + $0x10] sm:$0xff] }
  0xf5   : > { %v1848_v39 = vpop.permute.xlu2 %524  ;;  %1403 = vmatpush.msra.mxu2 %v661_v61  ;;  %716 = vmatpush.msra.mxu0 %v661_v61 }
  0xf6   : > { %1404 = vmatpush.msra.mxu3 %v661_v61 }
  0xf7   : > { %1405 = vmatpush.msra.mxu2 %v660_v63  ;;  %717 = vmatpush.msra.mxu0 %v660_v63 }
  0xf8   : > { %1406 = vmatpush.msra.mxu3 %v660_v63 }
  0xf9   : > { %1407 = vmatpush.msra.mxu2 %v659_v15  ;;  %718 = vmatpush.msra.mxu0 %v659_v15 }
  0xfa   : > { %1408 = vmatpush.msra.mxu3 %v659_v15 }
  0xfb   : > { %408 = vrot.lane.b32.xlu2 %v351_v55, %s1547_s12  ;;  %494 = vrot.lane.b32.xlu0 %v364_v21, %s1551_s16 }
  0xfc   : > { %542 = vrot.lane.b32.xlu1 %v1771_v36, %s1552_s17 }
  0xfd   : > { %v1854_v40 = vpop.permute.xlu2 %454 }
 0x103   : > { %480 = vrot.lane.b32.xlu2 %v1842_v38, %s1550_s15  ;;  %566 = vrot.lane.b32.xlu0 %v1774_v37, %s1553_s23 }
 0x104   : > { %400 = vrot.lane.b32.xlu1 %v339_v22, %s1547_s12 }
 0x105   : > { %v1867_v45 = vpop.permute.xlu0 %452  ;;  %v1869_v46 = vpop.permute.xlu2 %518 }
 0x10b   : > { %504 = vrot.lane.b32.xlu2 %v1834_v9, %s1551_s16  ;;  %424 = vrot.lane.b32.xlu0 %v364_v21, %s1546_s11 }
 0x10c   : > { %528 = vrot.lane.b32.xlu1 %v310_v50, %s1549_s14 }
 0x10d   : > { %v445_v53 = vpop.permute.xlu0 %444  ;;  %v403_v54 = vpop.permute.xlu2 %402 }
 0x10e   : > { %v451_v55 = vpop.permute.xlu1 %450  ;;  %v1888_v56 = vsel %vm605_vm6, %v597_v25, %v445_v53  ;;  %v312_v25 = vld [vmem:[#allocation2 + $0x90] sm:$0xff] }
 0x10f   : > { %v390_v34 = vrot.slane %v312_v25, 1 }
 0x113   : > { %448 = vrot.lane.b32.xlu2 %v1760_v30, %s1548_s13  ;;  %552 = vrot.lane.b32.xlu0 %v384_v62, %s1552_s17 }
 0x114   : > { %472 = vrot.lane.b32.xlu1 %v1771_v36, %s1550_s15  ;;  %v387_v36 = vsel %vm355_vm2, %v385_v13, %v386_v14 }
 0x115   : > { %v1908_v10 = vpop.permute.xlu0 %526  ;;  %v475_v11 = vpop.permute.xlu2 %474 }
 0x116   : > { %v523_v12 = vpop.permute.xlu1 %522 }
 0x11b   : > { %576 = vrot.lane.b32.xlu2 %v387_v36, %s1553_s23  ;;  %410 = vrot.lane.b32.xlu0 %v1842_v38, %s1547_s12 }
 0x11c   : > { %496 = vrot.lane.b32.xlu1 %v1774_v37, %s1551_s16  ;;  %v591_v37 = vsel %vm231_vm0, %v1760_v30, %v403_v54  ;;  %v391_v30 = vrot.slane %v313_v31, 1 }
 0x11d   : > { %v1919_v16 = vpop.permute.xlu0 %456  ;;  %v547_v17 = vpop.permute.xlu2 %546 }
 0x11e   : > { %v1921_v18 = vpop.permute.xlu1 %516  ;;  %v392_v42 = vsel %vm330_vm3, %v390_v34, %v391_v30 }
 0x123   : > { %434 = vrot.lane.b32.xlu2 %v1834_v9, %s1546_s11  ;;  %520 = vrot.lane.b32.xlu0 %v1742_v27, %s1549_s14 }
 0x124   : > { %458 = vrot.lane.b32.xlu1 %v310_v50, %s1548_s13  ;;  %s1554_s13 = smov 3  }
 0x125   : > { %v427_v19 = vpop.permute.xlu0 %426  ;;  %v429_v20 = vpop.permute.xlu2 %428 }
 0x126   : > { %v1928_v21 = vpop.permute.xlu1 %446  ;;  %v600_v22 = vsel %vm596_vm4, %v591_v37, %v427_v19 }
 0x127   : > { %v609_v32 = vsel %vm605_vm6, %v600_v22, %v451_v55 }
 0x128   : > { %v618_v35 = vsel %vm614_vm7, %v609_v32, %v475_v11 }
 0x12b   : > { %544 = vrot.lane.b32.xlu2 %v1785_v43, %s1552_s17  ;;  %482 = vrot.lane.b32.xlu0 %v384_v62, %s1550_s15 }
 0x12c   : > { %568 = vrot.lane.b32.xlu1 %v1788_v44, %s1553_s23  ;;  %v393_v44 = vrot.slane %v312_v25, 2 }
 0x12d   : > { %v499_v33 = vpop.permute.xlu0 %498  ;;  %v469_v9 = vpop.permute.xlu2 %468 }
 0x12e   : > { %v405_v38 = vpop.permute.xlu1 %404  ;;  %v627_v41 = vsel %vm623_vm8, %v618_v35, %v499_v33  ;;  %v395_v54 = vsel %vm355_vm2, %v393_v44, %v394_v47  ;;  %v615_v19 = vsel %vm614_vm7, %v1888_v56, %v469_v9 }
 0x12f   : > { %v636_v43 = vsel %vm632_vm9, %v627_v41, %v523_v12  ;;  %v592_v53 = vsel %vm231_vm0, %v1742_v27, %v405_v38 }
 0x130   : > { %v645_v50 = vsel %vm641_vm10, %v636_v43, %v547_v17  ;;  %v601_v55 = vsel %vm596_vm4, %v592_v53, %v429_v20 }
 0x131   : > { %v610_v57 = vsel %vm605_vm6, %v601_v55, %v1867_v45 }
 0x133   : > { %506 = vrot.lane.b32.xlu2 %v387_v36, %s1551_s16  ;;  %530 = vrot.lane.b32.xlu0 %v312_v25, %s1549_s14  ;;  %s1555_s14 = smov 6  }
 0x134   : > { %554 = vrot.lane.b32.xlu1 %v392_v42, %s1552_s17  ;;  %s1556_s17 = smov 24  }
 0x135   : > { %v571_v48 = vpop.permute.xlu0 %570  ;;  %v493_v49 = vpop.permute.xlu2 %492 }
 0x136   : > { %v477_v51 = vpop.permute.xlu1 %476  ;;  %v654_v52 = vsel %vm650_vm11, %v645_v50, %v571_v48  ;;  %v624_v20 = vsel %vm623_vm8, %v615_v19, %v493_v49 }
 0x137   : > { %1366 = vmatmul.msk.f32.vlgmr.msra.gmra.mxu2 %vm674_vm12, %v654_v52  ;;  %v619_v60 = vsel %vm614_vm7, %v610_v57, %v477_v51  ;;  %v633_v25 = vsel %vm632_vm9, %v624_v20, %v1921_v18 }
 0x13b   : > { %578 = vrot.lane.b32.xlu2 %v395_v54, %s1553_s23  ;;  %s1557_s23 = smov 21  }
 0x13d   : > { %v501_v58 = vpop.permute.xlu0 %500  ;;  %v565_v59 = vpop.permute.xlu2 %564 }
 0x13e   : > { %v549_v61 = vpop.permute.xlu1 %548  ;;  %v628_v62 = vsel %vm623_vm8, %v619_v60, %v501_v58 }
 0x13f   : > { %v637_v27 = vsel %vm632_vm9, %v628_v62, %v1848_v39 }
 0x140   : > { %v646_v63 = vsel %vm641_vm10, %v637_v27, %v549_v61 }
 0x145   : > { %v573_v11 = vpop.permute.xlu0 %572  ;;  %v423_v12 = vpop.permute.xlu2 %422 }
 0x146   : > { %v407_v13 = vpop.permute.xlu1 %406  ;;  %v655_v14 = vsel %vm650_vm11, %v646_v63, %v573_v11 }
 0x147   : > { %1367 = vmatmul.msk.f32.gmra.mxu2 %vm674_vm12, %v655_v14  ;;  %v593_v17 = vsel %vm231_vm0, %v1731_v23, %v407_v13 }
 0x14d   : > { %v431_v45 = vpop.permute.xlu0 %430  ;;  %v551_v15 = vpop.permute.xlu2 %550 }
 0x14e   : > { %v479_v36 = vpop.permute.xlu1 %478  ;;  %v602_v39 = vsel %vm596_vm4, %v593_v17, %v431_v45 }
 0x14f   : > { %v611_v37 = vsel %vm605_vm6, %v602_v39, %v1854_v40 }
 0x150   : > { %v620_v33 = vsel %vm614_vm7, %v611_v37, %v479_v36 }
 0x155   : > { %v541_v22 = vpop.permute.xlu0 %540  ;;  %v409_v23 = vpop.permute.xlu2 %408 }
 0x156   : > { %v503_v31 = vpop.permute.xlu1 %502  ;;  %v642_v32 = vsel %vm641_vm10, %v633_v25, %v541_v22 }
 0x157   : > { %v651_v34 = vsel %vm650_vm11, %v642_v32, %v565_v59  ;;  %v629_v56 = vsel %vm623_vm8, %v620_v33, %v503_v31 }
 0x158   : > { %1363 = vmatmul.msk.f32.vlgmr.msra.gmra.mxu0 %vm674_vm12, %v651_v34  ;;  %v638_v9 = vsel %vm632_vm9, %v629_v56, %v1908_v10 }
 0x159   : > { %v647_v35 = vsel %vm641_vm10, %v638_v9, %v551_v15 }
 0x15d   : > { %v399_v40 = vpop.permute.xlu0 %398  ;;  %v481_v38 = vpop.permute.xlu2 %480 }
 0x15e   : > { %v575_v30 = vpop.permute.xlu1 %574  ;;  %v589_v43 = vsel %vm231_vm0, %v1737_v24, %v399_v40 }
 0x15f   : > { %v656_v18 = vsel %vm650_vm11, %v647_v35, %v575_v30  ;;  %v598_v44 = vsel %vm596_vm4, %v589_v43, %v423_v12 }
 0x160   : > { %1368 = vmatmul.msk.f32.gmra.mxu2 %vm674_vm12, %v656_v18  ;;  %v607_v10 = vsel %vm605_vm6, %v598_v44, %v1928_v21  ;;  %v594_v21 = vsel %vm231_vm0, %v1739_v26, %v409_v23  ;;  %v784_v44 = vld [vmem:[#allocation3 + $0x8] sm:$0x3] }
 0x165   : > { %v471_v41 = vpop.permute.xlu0 %470  ;;  %v505_v47 = vpop.permute.xlu2 %504 }
 0x166   : > { %v433_v42 = vpop.permute.xlu1 %432  ;;  %v616_v49 = vsel %vm614_vm7, %v607_v10, %v471_v41 }
 0x167   : > { %v603_v58 = vsel %vm596_vm4, %v594_v21, %v433_v42  ;;  %v2044_v42 = vld [vmem:[#allocation3] sm:$0xff] }
 0x168   : > { %v612_v60 = vsel %vm605_vm6, %v603_v58, %v1919_v16  ;;  %v843_v10 = vrot.slane %v2044_v42, 2 }
 0x169   : > { %v621_v62 = vsel %vm614_vm7, %v612_v60, %v481_v38 }
 0x16a   : > { %v630_v27 = vsel %vm623_vm8, %v621_v62, %v505_v47  ;;  %v819_v47 = vrot.slane %v2044_v42, 1 }
 0x16d   : > { %v495_v48 = vpop.permute.xlu0 %494  ;;  %v449_v53 = vpop.permute.xlu2 %448 }
 0x16e   : > { %v543_v50 = vpop.permute.xlu1 %542  ;;  %v625_v51 = vsel %vm623_vm8, %v616_v49, %v495_v48  ;;  %v820_v48 = vrot.slane %v784_v44, 1  ;;  %v844_v49 = vrot.slane %v784_v44, 2 }
 0x16f   : > { %v634_v52 = vsel %vm632_vm9, %v625_v51, %v1869_v46 }
 0x170   : > { %v643_v55 = vsel %vm641_vm10, %v634_v52, %v543_v50  ;;  %v821_v50 = vsel %vm330_vm3, %v819_v47, %v820_v48  ;;  %v845_v51 = vsel %vm355_vm2, %v843_v10, %v844_v49  ;;  %v2077_v52 = vld [vmem:[%s2504_s2] ss:$0 sm:$0xff] }
 0x171   : > { %883 = vrot.lane.b32.xlu0 %v821_v50, %s1554_s13  ;;  %907 = vrot.lane.b32.xlu1 %v845_v51, %s1555_s14 }
 0x175   : > { %v567_v54 = vpop.permute.xlu0 %566  ;;  %v577_v46 = vpop.permute.xlu2 %576 }
 0x176   : > { %v401_v24 = vpop.permute.xlu1 %400  ;;  %v652_v57 = vsel %vm650_vm11, %v643_v55, %v567_v54 }
 0x177   : > { %1364 = vmatmul.msk.f32.gmra.mxu0 %vm674_vm12, %v652_v57  ;;  %v590_v36 = vsel %vm231_vm0, %v1758_v29, %v401_v24  ;;  %v802_v57 = vld [vmem:[#allocation3 + $0x98] sm:$0x3] }
 0x178   : > { %v878_v58 = vrot.slane %v802_v57, 1 }
 0x17d   : > { %v425_v59 = vpop.permute.xlu0 %424  ;;  %v435_v14 = vpop.permute.xlu2 %434 }
 0x17e   : > { %v529_v61 = vpop.permute.xlu1 %528  ;;  %v599_v17 = vsel %vm596_vm4, %v590_v36, %v425_v59  ;;  %v881_v59 = vrot.slane %v802_v57, 2 }
 0x17f   : > { %v639_v63 = vsel %vm632_vm9, %v630_v27, %v529_v61  ;;  %v608_v20 = vsel %vm605_vm6, %v599_v17, %v449_v53  ;;  %v801_v53 = vld [vmem:[#allocation3 + $0x90] sm:$0xff] }
 0x180   : > { %1017 = vrot.lane.b32.xlu1 %v801_v53, %s1546_s11  ;;  %v877_v54 = vrot.slane %v801_v53, 1  ;;  %v880_v55 = vrot.slane %v801_v53, 2 }
 0x182   : > { %v879_v0 = vsel %vm330_vm3, %v877_v54, %v878_v58  ;;  %v882_v61 = vsel %vm355_vm2, %v880_v55, %v881_v59 }
 0x183   : > { %1065 = vrot.lane.b32.xlu0 %v882_v61, %s1556_s17 }
 0x185   : > { %v553_v11 = vpop.permute.xlu0 %552  ;;  %v545_v16 = vpop.permute.xlu2 %544 }
 0x186   : > { %v473_v12 = vpop.permute.xlu1 %472  ;;  %v648_v13 = vsel %vm641_vm10, %v639_v63, %v553_v11 }
 0x187   : > { %v657_v26 = vsel %vm650_vm11, %v648_v13, %v577_v46  ;;  %v617_v37 = vsel %vm614_vm7, %v608_v20, %v473_v12 }
 0x188   : > { %1369 = vmatmul.msk.f32.gmra.mxu2 %vm674_vm12, %v657_v26  ;;  %1041 = vrot.lane.b32.xlu1 %v879_v0, %s1557_s23 }
 0x18d   : > { %v411_v45 = vpop.permute.xlu0 %410  ;;  %v507_v32 = vpop.permute.xlu2 %506 }
 0x18e   : > { %v497_v15 = vpop.permute.xlu1 %496  ;;  %v595_v31 = vsel %vm231_vm0, %v1750_v28, %v411_v45 }
 0x18f   : > { %v626_v22 = vsel %vm623_vm8, %v617_v37, %v497_v15  ;;  %v604_v56 = vsel %vm596_vm4, %v595_v31, %v435_v14 }
 0x195   : > { %v521_v19 = vpop.permute.xlu0 %520  ;;  %v579_v35 = vpop.permute.xlu2 %578 }
 0x196   : > { %v459_v39 = vpop.permute.xlu1 %458  ;;  %v635_v25 = vsel %vm632_vm9, %v626_v22, %v521_v19 }
 0x197   : > { %v644_v23 = vsel %vm641_vm10, %v635_v25, %v545_v16  ;;  %v613_v28 = vsel %vm605_vm6, %v604_v56, %v459_v39 }
 0x19d   : > { %v483_v33 = vpop.permute.xlu0 %482 }
 0x19e   : > { %v569_v29 = vpop.permute.xlu1 %568  ;;  %v622_v9 = vsel %vm614_vm7, %v613_v28, %v483_v33  ;;  %vm1135_vm7 = vcmask 195584  }
 0x19f   : > { %v653_v34 = vsel %vm650_vm11, %v644_v23, %v569_v29  ;;  %v631_v30 = vsel %vm623_vm8, %v622_v9, %v507_v32 }
 0x1a0   : > { %1365 = vmatmul.msk.f32.gmra.mxu0 %vm674_vm12, %v653_v34 }
 0x1a5   : > { %v531_v40 = vpop.permute.xlu0 %530 }
 0x1a6   : > { %v640_v18 = vsel %vm632_vm9, %v631_v30, %v531_v40  ;;  %v555_v38 = vpop.permute.xlu1 %554 }
 0x1a7   : > { %v649_v41 = vsel %vm641_vm10, %v640_v18, %v555_v38 }
 0x1a8   : > { %v658_v43 = vsel %vm650_vm11, %v649_v41, %v579_v35 }
 0x1a9   : > { %1370 = vmatmul.msk.f32.vlgmr.msra.gmra.mxu3 %vm674_vm12, %v658_v43 }
 0x1ba   : > { %v729_v24 = vpop.f32.mrf.mxu2 }
 0x1bb   : > { %v730_v21 = vadd.f32 %v2077_v52, %v729_v24 }
 0x1bd   : > { %v2082_v60 = vadd.f32 %v730_v21, %v1685_v5 }
 0x1bf   : > { %778 = vst.msk [vmem:[#allocation3 + $0x41] sm:$0xff] %vm752_vm13, %v2082_v60 }
 0x1c6   : > { %v2119_v19 = vld [vmem:[#allocation3 + $0x40] sm:$0xff]  ;;  %v792_v22 = vld [vmem:[#allocation3 + $0x48] sm:$0x3] }
 0x1c7   : > { %v831_v32 = vrot.slane %v2119_v19, 1  ;;  %v832_v33 = vrot.slane %v792_v22, 1  ;;  %v855_v47 = vrot.slane %v2119_v19, 2  ;;  %v856_v10 = vrot.slane %v792_v22, 2 }
 0x1c9   : > { %v2146_v29 = vsel %vm330_vm3, %v831_v32, %v832_v33  ;;  %v857_v50 = vsel %vm355_vm2, %v855_v47, %v856_v10  ;;  %v1145_v47 = vld [vmem:[%s2505_s3 + $0x8] sm:$0xff] }
 0x1ca   : > { %v732_v46 = vpop.f32.mrf.mxu2 }
 0x1cb   : > { %v733_v62 = vadd.f32 %v2077_v52, %v732_v46 }
 0x1cd   : > { %v2092_v27 = vadd.f32 %v733_v62, %v1658_v1 }
 0x1cf   : > { %779 = vst.msk [vmem:[#allocation3 + $0x51] sm:$0xff] %vm752_vm13, %v2092_v27 }
 0x1d5   : > { %v720_v5 = vpop.f32.mrf.mxu0 }
 0x1d6   : > { %v721_v63 = vadd.f32 %v2077_v52, %v720_v5 }
 0x1d8   : > { %v2098_v11 = vadd.f32 %v721_v63, %v1670_v3 }
 0x1da   : > { %775 = vst.msk [vmem:[#allocation3 + $0x11] sm:$0xff] %vm752_vm13, %v2098_v11 }
 0x1e1   : > { %v2102_v12 = vld [vmem:[#allocation3 + $0x10] sm:$0xff]  ;;  %v786_v13 = vld [vmem:[#allocation3 + $0x18] sm:$0x3] }
 0x1e2   : > { %931 = vrot.lane.b32.xlu2 %v2102_v12, %s1547_s12  ;;  %v846_v1 = vrot.slane %v2102_v12, 2  ;;  %v847_v26 = vrot.slane %v786_v13, 2  ;;  %v822_v14 = vrot.slane %v2102_v12, 1  ;;  %v823_v45 = vrot.slane %v786_v13, 1  ;;  %v2202_v13 = vld [vmem:[#allocation3 + $0x50] sm:$0xff] }
 0x1e3   : > { %v735_v15 = vpop.f32.mrf.mxu2  ;;  %v2175_v51 = vpop.permute.xlu0 %883  ;;  %v834_v22 = vrot.slane %v2202_v13, 1 }
 0x1e4   : > { %v736_v16 = vadd.f32 %v2077_v52, %v735_v15  ;;  %v848_v3 = vsel %vm355_vm2, %v846_v1, %v847_v26  ;;  %v824_v36 = vsel %vm330_vm3, %v822_v14, %v823_v45  ;;  %v794_v15 = vld [vmem:[#allocation3 + $0x58] sm:$0x3]  ;;  %v908_v32 = vpop.permute.xlu1 %907 }
 0x1e5   : > { %979 = vrot.lane.b32.xlu1 %v848_v3, %s1558_s26  ;;  %955 = vrot.lane.b32.xlu0 %v824_v36, %s1559_s30 }
 0x1e6   : > { %v2114_v17 = vadd.f32 %v736_v16, %v1682_v4  ;;  %v858_v16 = vrot.slane %v2202_v13, 2 }
 0x1e8   : > { %780 = vst.msk [vmem:[#allocation3 + $0x61] sm:$0xff] %vm752_vm13, %v2114_v17 }
 0x1ea   : > { %885 = vrot.lane.b32.xlu2 %v824_v36, %s1554_s13 }
 0x1ed   : > { %937 = vrot.lane.b32.xlu1 %v2119_v19, %s1547_s12  ;;  %909 = vrot.lane.b32.xlu0 %v848_v3, %s1555_s14  ;;  %v859_v3 = vrot.slane %v794_v15, 2 }
 0x1f4   : > { %v723_v39 = vpop.f32.mrf.mxu0 }
 0x1f5   : > { %v724_v20 = vadd.f32 %v2077_v52, %v723_v39  ;;  %1007 = vrot.lane.b32.xlu0 %v2119_v19, %s1546_s11  ;;  %v2182_v53 = vpop.permute.xlu0 %1065  ;;  %v2223_v39 = vsel %vm355_vm2, %v858_v16, %v859_v3 }
 0x1f7   : > { %v2128_v4 = vadd.f32 %v724_v20, %v1692_v6  ;;  %v2230_v20 = vld [vmem:[#allocation3 + $0x60] sm:$0xff] }
 0x1f8   : > { %v837_v33 = vrot.slane %v2230_v20, 1 }
 0x1f9   : > { %776 = vst.msk [vmem:[#allocation3 + $0x21] sm:$0xff] %vm752_vm13, %v2128_v4 }
 0x200   : > { %v2132_v37 = vld [vmem:[#allocation3 + $0x20] sm:$0xff]  ;;  %v788_v18 = vld [vmem:[#allocation3 + $0x28] sm:$0x3] }
 0x201   : > { %1003 = vrot.lane.b32.xlu2 %v2132_v37, %s1546_s11  ;;  %v849_v41 = vrot.slane %v2132_v37, 2  ;;  %v825_v43 = vrot.slane %v2132_v37, 1  ;;  %v826_v44 = vrot.slane %v788_v18, 1 }
 0x203   : > { %v827_v49 = vsel %vm330_vm3, %v825_v43, %v826_v44  ;;  %v1146_v43 = vld [vmem:[%s2505_s3 + $0x10] sm:$0xff] }
 0x209   : > { %933 = vrot.lane.b32.xlu2 %v2132_v37, %s1547_s12 }
 0x20b   : > { %v738_v25 = vpop.f32.mrf.mxu2 }
 0x20c   : > { %v739_v31 = vadd.f32 %v2077_v52, %v738_v25  ;;  %v835_v25 = vrot.slane %v794_v15, 1 }
 0x20e   : > { %v2141_v6 = vadd.f32 %v739_v31, %v1710_v7  ;;  %v796_v31 = vld [vmem:[#allocation3 + $0x68] sm:$0x3] }
 0x210   : > { %781 = vst.msk [vmem:[#allocation3 + $0x71] sm:$0xff] %vm752_vm13, %v2141_v6 }
 0x211   : > { %1031 = vrot.lane.b32.xlu2 %v2146_v29, %s1557_s23 }
 0x21d   : > { %v726_v23 = vpop.f32.mrf.mxu0 }
 0x21e   : > { %v727_v34 = vadd.f32 %v2077_v52, %v726_v23  ;;  %v836_v23 = vsel %vm330_vm3, %v834_v22, %v835_v25 }
 0x220   : > { %v2152_v56 = vadd.f32 %v727_v34, %v1661_v2 }
 0x222   : > { %777 = vst.msk [vmem:[#allocation3 + $0x31] sm:$0xff] %vm752_vm13, %v2152_v56 }
 0x229   : > { %v2194_v59 = vld [vmem:[#allocation3 + $0x30] sm:$0xff]  ;;  %v790_v0 = vld [vmem:[#allocation3 + $0x38] sm:$0x3] }
 0x22a   : > { %v828_v62 = vrot.slane %v2194_v59, 1  ;;  %v829_v5 = vrot.slane %v790_v0, 1  ;;  %v853_v45 = vrot.slane %v790_v0, 2 }
 0x22c   : > { %v741_v7 = vpop.f32.mrf.mxu3  ;;  %v830_v26 = vsel %vm330_vm3, %v828_v62, %v829_v5 }
 0x22d   : > { %v742_v28 = vadd.f32 %v2077_v52, %v741_v7  ;;  %v2244_v7 = vpop.permute.xlu1 %1017 }
 0x22f   : > { %v2158_v9 = vadd.f32 %v742_v28, %v1713_v8  ;;  %v850_v8 = vrot.slane %v788_v18, 2  ;;  %v2250_v28 = vld [vmem:[#allocation3 + $0x70] sm:$0xff]  ;;  %v1147_v18 = vld [vmem:[%s2505_s3 + $0x18] sm:$0x7] }
 0x230   : > { %1371 = vmatpush.msk.msra.mxu1 %vm1176_vm1, %v1147_v18  ;;  %1409 = vmatpush.msk.msrb.mxu3 %vm1176_vm1, %v1147_v18 }
 0x231   : > { %782 = vst.msk [vmem:[#allocation3 + $0x81] sm:$0xff] %vm752_vm13, %v2158_v9  ;;  %v851_v48 = vsel %vm355_vm2, %v849_v41, %v850_v8  ;;  %v840_v41 = vrot.slane %v2250_v28, 1 }
 0x232   : > { %1193 = vmatpush.msra.mxu1 %v1146_v43  ;;  %1410 = vmatpush.msrb.mxu3 %v1146_v43 }
 0x234   : > { %1194 = vmatpush.msra.mxu1 %v1145_v47  ;;  %1411 = vmatpush.msrb.mxu3 %v1145_v47 }
 0x238   : > { %v799_v40 = vld [vmem:[#allocation3 + $0x80] sm:$0xff]  ;;  %v800_v30 = vld [vmem:[#allocation3 + $0x88] sm:$0x3] }
 0x239   : > { %945 = vrot.lane.b32.xlu1 %v799_v40, %s1547_s12  ;;  %1015 = vrot.lane.b32.xlu0 %v799_v40, %s1546_s11  ;;  %v872_v2 = vrot.slane %v799_v40, 2  ;;  %v873_v35 = vrot.slane %v800_v30, 2  ;;  %v869_v55 = vrot.slane %v799_v40, 1  ;;  %v870_v24 = vrot.slane %v800_v30, 1 }
 0x23a   : > { %v861_v40 = vrot.slane %v2230_v20, 2  ;;  %v862_v30 = vrot.slane %v796_v31, 2 }
 0x23b   : > { %v874_v38 = vsel %vm355_vm2, %v872_v2, %v873_v35  ;;  %v871_v21 = vsel %vm330_vm3, %v869_v55, %v870_v24  ;;  %v798_v2 = vld [vmem:[#allocation3 + $0x78] sm:$0x3] }
 0x23c   : > { %1063 = vrot.lane.b32.xlu2 %v874_v38, %s1556_s17  ;;  %v2177_v52 = vpop.permute.xlu2 %931  ;;  %v841_v8 = vrot.slane %v798_v2, 1  ;;  %v863_v44 = vsel %vm355_vm2, %v861_v40, %v862_v30 }
 0x23e   : > { %v842_v10 = vsel %vm330_vm3, %v840_v41, %v841_v8 }
 0x241   : > { %1051 = vrot.lane.b32.xlu1 %v851_v48, %s1556_s17  ;;  %1027 = vrot.lane.b32.xlu0 %v827_v49, %s1557_s23 }
 0x244   : > { %985 = vrot.lane.b32.xlu2 %v857_v50, %s1558_s26  ;;  %v886_v54 = vpop.permute.xlu2 %885 }
 0x245   : > { %v1076_v61 = vsel %vm752_vm13, %v2102_v12, %v886_v54  ;;  %v852_v12 = vrot.slane %v2194_v59, 2 }
 0x247   : > { %v854_v36 = vsel %vm355_vm2, %v852_v12, %v853_v45 }
 0x249   : > { %957 = vrot.lane.b32.xlu1 %v827_v49, %s1559_s30  ;;  %981 = vrot.lane.b32.xlu0 %v851_v48, %s1558_s26 }
 0x24c   : > { %993 = vrot.lane.b32.xlu2 %v874_v38, %s1558_s26  ;;  %v2260_v38 = vpop.permute.xlu1 %1041 }
 0x251   : > { %887 = vrot.lane.b32.xlu1 %v827_v49, %s1554_s13  ;;  %911 = vrot.lane.b32.xlu0 %v851_v48, %s1555_s14  ;;  %v864_v48 = vrot.slane %v2250_v28, 2  ;;  %v865_v49 = vrot.slane %v798_v2, 2 }
 0x253   : > { %v866_v55 = vsel %vm355_vm2, %v864_v48, %v865_v49  ;;  %vm1100_vm2 = vcmask 97280  }
 0x254   : > { %915 = vrot.lane.b32.xlu2 %v857_v50, %s1555_s14 }
 0x257   : > { %v2187_v57 = vpop.permute.xlu0 %955  ;;  %v980_v24 = vpop.permute.xlu1 %979 }
 0x259   : > { %1055 = vrot.lane.b32.xlu1 %v857_v50, %s1556_s17  ;;  %1039 = vrot.lane.b32.xlu0 %v871_v21, %s1557_s23  ;;  %v1144_v50 = vld [vmem:[%s2505_s3] sm:$0xff] }
 0x25a   : > { %1195 = vmatpush.msra.mxu1 %v1144_v50  ;;  %1412 = vmatpush.msrb.mxu3 %v1144_v50 }
 0x25b   : > { %v2192_v58 = vpop.permute.xlu2 %1003 }
 0x25c   : > { %1005 = vrot.lane.b32.xlu2 %v2194_v59, %s1546_s11 }
 0x25f   : > { %v910_v46 = vpop.permute.xlu0 %909  ;;  %v2289_v0 = vpop.permute.xlu1 %937 }
 0x260   : > { %v1085_v63 = vsel %vm1083_vm15, %v1076_v61, %v910_v46  ;;  %v1075_v46 = vsel %vm752_vm13, %v2044_v42, %v2175_v51 }
 0x261   : > { %1009 = vrot.lane.b32.xlu1 %v2202_v13, %s1546_s11  ;;  %961 = vrot.lane.b32.xlu0 %v2146_v29, %s1559_s30  ;;  %v1084_v5 = vsel %vm1083_vm15, %v1075_v46, %v908_v32 }
 0x263   : > { %v934_v1 = vpop.permute.xlu2 %933 }
 0x264   : > { %v2210_v14 = vsel %vm231_vm0, %v1085_v63, %v934_v1  ;;  %959 = vrot.lane.b32.xlu2 %v830_v26, %s1559_s30 }
 0x267   : > { %v2291_v61 = vpop.permute.xlu0 %1007 }
 0x269   : > { %1029 = vrot.lane.b32.xlu1 %v830_v26, %s1557_s23  ;;  %969 = vrot.lane.b32.xlu0 %v871_v21, %s1559_s30 }
 0x26b   : > { %v2255_v35 = vpop.permute.xlu2 %1031 }
 0x26c   : > { %889 = vrot.lane.b32.xlu2 %v830_v26, %s1554_s13  ;;  %v1092_v26 = vsel %vm231_vm0, %v1084_v5, %v2177_v52 }
 0x26d   : > { %v1101_v42 = vsel %vm1100_vm2, %v1092_v26, %v2187_v57 }
 0x271   : > { %983 = vrot.lane.b32.xlu1 %v854_v36, %s1558_s26  ;;  %891 = vrot.lane.b32.xlu0 %v2146_v29, %s1554_s13  ;;  %v838_v29 = vrot.slane %v796_v31, 1 }
 0x273   : > { %v2240_v34 = vsel %vm330_vm3, %v837_v33, %v838_v29  ;;  %vm1109_vm3 = vcmask 121856  }
 0x274   : > { %1057 = vrot.lane.b32.xlu2 %v2223_v39, %s1556_s17  ;;  %v1110_v51 = vsel %vm1109_vm3, %v1101_v42, %v980_v24 }
 0x275   : > { %v1118_v45 = vsel %vm596_vm4, %v1110_v51, %v2192_v58 }
 0x279   : > { %913 = vrot.lane.b32.xlu1 %v854_v36, %s1555_s14  ;;  %935 = vrot.lane.b32.xlu0 %v2194_v59, %s1547_s12 }
 0x27c   : > { %941 = vrot.lane.b32.xlu2 %v2230_v20, %s1547_s12 }
 0x281   : > { %893 = vrot.lane.b32.xlu1 %v836_v23, %s1554_s13  ;;  %1053 = vrot.lane.b32.xlu0 %v854_v36, %s1556_s17 }
 0x284   : > { %895 = vrot.lane.b32.xlu2 %v2240_v34, %s1554_s13 }
 0x289   : > { %965 = vrot.lane.b32.xlu1 %v2240_v34, %s1559_s30  ;;  %917 = vrot.lane.b32.xlu0 %v2223_v39, %s1555_s14 }
 0x28c   : > { %1013 = vrot.lane.b32.xlu2 %v2250_v28, %s1546_s11 }
 0x291   : > { %919 = vrot.lane.b32.xlu1 %v863_v44, %s1555_s14  ;;  %1033 = vrot.lane.b32.xlu0 %v836_v23, %s1557_s23 }
 0x294   : > { %1037 = vrot.lane.b32.xlu2 %v842_v10, %s1557_s23 }
 0x296   : > { %v2278_v54 = vpop.permute.xlu2 %1063 }
 0x299   : > { %1061 = vrot.lane.b32.xlu1 %v866_v55, %s1556_s17  ;;  %989 = vrot.lane.b32.xlu0 %v863_v44, %s1558_s26 }
 0x29c   : > { %967 = vrot.lane.b32.xlu2 %v842_v10, %s1559_s30 }
 0x29e   : > { %v2284_v21 = vpop.permute.xlu2 %985 }
 0x2a1   : > { %991 = vrot.lane.b32.xlu1 %v866_v55, %s1558_s26  ;;  %943 = vrot.lane.b32.xlu0 %v2250_v28, %s1547_s12 }
 0x2a4   : > { %921 = vrot.lane.b32.xlu2 %v866_v55, %s1555_s14  ;;  %s215_s14 = sand.u32 1, %s1534_s19  }
 0x2a6   : > { %v2297_v62 = vpop.permute.xlu2 %993 }
 0x2a9   : > { %939 = vrot.lane.b32.xlu1 %v2202_v13, %s1547_s12  ;;  %897 = vrot.lane.b32.xlu0 %v842_v10, %s1554_s13 }
 0x2ab   : > { %v2303_v63 = vpop.permute.xlu1 %945  ;;  %v2305_v1 = vpop.permute.xlu0 %1015 }
 0x2ac   : > { %963 = vrot.lane.b32.xlu2 %v836_v23, %s1559_s30 }
 0x2ae   : > { %v916_v12 = vpop.permute.xlu2 %915 }
 0x2b1   : > { %1011 = vrot.lane.b32.xlu1 %v2230_v20, %s1546_s11  ;;  %987 = vrot.lane.b32.xlu0 %v2223_v39, %s1558_s26 }
 0x2b3   : > { %v1052_v15 = vpop.permute.xlu1 %1051  ;;  %v1028_v52 = vpop.permute.xlu0 %1027 }
 0x2b4   : > { %v1127_v16 = vsel %vm1126_vm5, %v1118_v45, %v1028_v52  ;;  %1035 = vrot.lane.b32.xlu2 %v2240_v34, %s1557_s23 }
 0x2b5   : > { %v1136_v57 = vsel %vm1135_vm7, %v1127_v16, %v1052_v15 }
 0x2b6   : > { %1372 = vmatmul.msk.f32.vlgmr.msra.gmra.mxu1 %vm605_vm6, %v1136_v57  ;;  %v1006_v39 = vpop.permute.xlu2 %1005 }
 0x2b9   : > { %1059 = vrot.lane.b32.xlu0 %v863_v44, %s1556_s17  ;;  %s1359_s17 = sshll.u32 %s215_s14, 6 }
 0x2ba   : > { %s2427_s23 = scalar_lea.vmem [#allocation4], %s1359_s17 }
 0x2bb   : > { %v958_v3 = vpop.permute.xlu1 %957  ;;  %v982_v36 = vpop.permute.xlu0 %981  ;;  %s1290_s8 = sshll.u32 %s2427_s23, 4  ;;  %s1291_s8 = int_to_ptr.vmem [resolvable:$true] %s1290_s8 }
 0x2bc   : > { %v1102_v48 = vsel %vm1100_vm2, %v2210_v14, %v958_v3 }
 0x2bd   : > { %v1111_v24 = vsel %vm1109_vm3, %v1102_v48, %v982_v36 }
 0x2be   : > { %v960_v31 = vpop.permute.xlu2 %959  ;;  %v1119_v46 = vsel %vm596_vm4, %v1111_v24, %v1006_v39 }
 0x2c3   : > { %v888_v22 = vpop.permute.xlu1 %887  ;;  %v912_v25 = vpop.permute.xlu0 %911 }
 0x2c4   : > { %v1077_v44 = vsel %vm752_vm13, %v2132_v37, %v888_v22 }
 0x2c5   : > { %v1086_v49 = vsel %vm1083_vm15, %v1077_v44, %v912_v25 }
 0x2c6   : > { %v890_v33 = vpop.permute.xlu2 %889 }
 0x2c7   : > { %v1078_v14 = vsel %vm752_vm13, %v2194_v59, %v890_v33 }
 0x2cb   : > { %v1056_v58 = vpop.permute.xlu1 %1055  ;;  %v2325_v32 = vpop.permute.xlu0 %1039 }
 0x2ce   : > { %v1058_v40 = vpop.permute.xlu2 %1057 }
 0x2d3   : > { %v1010_v29 = vpop.permute.xlu1 %1009  ;;  %v962_v23 = vpop.permute.xlu0 %961 }
 0x2d6   : > { %v942_v41 = vpop.permute.xlu2 %941 }
 0x2db   : > { %v1030_v34 = vpop.permute.xlu1 %1029  ;;  %v2327_v30 = vpop.permute.xlu0 %969 }
 0x2dc   : > { %v1128_v5 = vsel %vm1126_vm5, %v1119_v46, %v1030_v34 }
 0x2de   : > { %v896_v55 = vpop.permute.xlu2 %895 }
 0x2e3   : > { %v984_v2 = vpop.permute.xlu1 %983  ;;  %v892_v18 = vpop.permute.xlu0 %891 }
 0x2e4   : > { %v1079_v8 = vsel %vm752_vm13, %v2119_v19, %v892_v18 }
 0x2e5   : > { %v2332_v43 = vsel %vm1083_vm15, %v1079_v8, %v916_v12 }
 0x2e6   : > { %v1014_v15 = vpop.permute.xlu2 %1013 }
 0x2eb   : > { %v914_v47 = vpop.permute.xlu1 %913  ;;  %v936_v10 = vpop.permute.xlu0 %935 }
 0x2ec   : > { %v1094_v50 = vsel %vm231_vm0, %v1086_v49, %v936_v10  ;;  %v1087_v45 = vsel %vm1083_vm15, %v1078_v14, %v914_v47 }
 0x2ed   : > { %v1103_v19 = vsel %vm1100_vm2, %v1094_v50, %v960_v31  ;;  %v1095_v16 = vsel %vm231_vm0, %v1087_v45, %v2289_v0 }
 0x2ee   : > { %v1112_v37 = vsel %vm1109_vm3, %v1103_v19, %v984_v2  ;;  %v1104_v39 = vsel %vm1100_vm2, %v1095_v16, %v962_v23 }
 0x2ef   : > { %v1120_v12 = vsel %vm596_vm4, %v1112_v37, %v2291_v61  ;;  %v1113_v59 = vsel %vm1109_vm3, %v1104_v39, %v2284_v21  ;;  %v1038_v61 = vpop.permute.xlu2 %1037 }
 0x2f0   : > { %v1129_v52 = vsel %vm1126_vm5, %v1120_v12, %v2255_v35  ;;  %v1121_v31 = vsel %vm596_vm4, %v1113_v59, %v1010_v29 }
 0x2f1   : > { %v1138_v36 = vsel %vm1135_vm7, %v1129_v52, %v1056_v58 }
 0x2f3   : > { %v894_v26 = vpop.permute.xlu1 %893  ;;  %v1054_v42 = vpop.permute.xlu0 %1053 }
 0x2f4   : > { %v1137_v51 = vsel %vm1135_vm7, %v1128_v5, %v1054_v42  ;;  %v1080_v35 = vsel %vm752_vm13, %v2202_v13, %v894_v26 }
 0x2f5   : > { %1373 = vmatmul.msk.f32.gmra.mxu1 %vm605_vm6, %v1137_v51 }
 0x2f7   : > { %v968_v18 = vpop.permute.xlu2 %967 }
 0x2fb   : > { %v966_v57 = vpop.permute.xlu1 %965  ;;  %v918_v3 = vpop.permute.xlu0 %917 }
 0x2fc   : > { %v1089_v33 = vsel %vm1083_vm15, %v1080_v35, %v918_v3 }
 0x2fd   : > { %1374 = vmatmul.msk.f32.gmra.mxu1 %vm605_vm6, %v1138_v36  ;;  %v1097_v23 = vsel %vm231_vm0, %v1089_v33, %v942_v41 }
 0x2fe   : > { %v1106_v2 = vsel %vm1100_vm2, %v1097_v23, %v966_v57 }
 0x2ff   : > { %v922_v50 = vpop.permute.xlu2 %921 }
 0x303   : > { %v920_v22 = vpop.permute.xlu1 %919  ;;  %v1034_v25 = vpop.permute.xlu0 %1033 }
 0x304   : > { %v1130_v0 = vsel %vm1126_vm5, %v1121_v31, %v1034_v25 }
 0x305   : > { %v1139_v58 = vsel %vm1135_vm7, %v1130_v0, %v1058_v40  ;;  %v1081_v40 = vsel %vm752_vm13, %v2230_v20, %v896_v55 }
 0x306   : > { %1375 = vmatmul.msk.f32.gmra.mxu1 %vm605_vm6, %v1139_v58  ;;  %v1090_v41 = vsel %vm1083_vm15, %v1081_v40, %v920_v22  ;;  %v1472_v58 = vld [vmem:[%s1653_s9] sm:$0xff] }
 0x307   : > { %v964_v51 = vpop.permute.xlu2 %963 }
 0x30b   : > { %v1062_v34 = vpop.permute.xlu1 %1061  ;;  %v990_v21 = vpop.permute.xlu0 %989 }
 0x30c   : > { %v1115_v29 = vsel %vm1109_vm3, %v1106_v2, %v990_v21 }
 0x30d   : > { %v1123_v8 = vsel %vm596_vm4, %v1115_v29, %v1014_v15 }
 0x30e   : > { %v1132_v13 = vsel %vm1126_vm5, %v1123_v8, %v1038_v61 }
 0x30f   : > { %v1141_v44 = vsel %vm1135_vm7, %v1132_v13, %v1062_v34  ;;  %v1473_v13 = vld [vmem:[%s1653_s9 + $0x8] sm:$0xff] }
 0x310   : > { %1377 = vmatmul.msk.f32.vlgmr.msrb.gmra.mxu3 %vm605_vm6, %v1141_v44 }
 0x313   : > { %v992_v47 = vpop.permute.xlu1 %991  ;;  %v944_v10 = vpop.permute.xlu0 %943 }
 0x314   : > { %v1098_v48 = vsel %vm231_vm0, %v1090_v41, %v944_v10  ;;  %v1474_v41 = vld [vmem:[%s1653_s9 + $0x10] sm:$0xff] }
 0x315   : > { %v1107_v49 = vsel %vm1100_vm2, %v1098_v48, %v968_v18 }
 0x316   : > { %v1116_v24 = vsel %vm1109_vm3, %v1107_v49, %v992_v47  ;;  %v1475_v49 = vld [vmem:[%s1653_s9 + $0x18] sm:$0xff] }
 0x317   : > { %v1124_v19 = vsel %vm596_vm4, %v1116_v24, %v2305_v1 }
 0x318   : > { %v1133_v46 = vsel %vm1126_vm5, %v1124_v19, %v2325_v32  ;;  %v1476_v19 = vld [vmem:[%s1653_s9 + $0x20] sm:$0xff] }
 0x319   : > { %v1142_v20 = vsel %vm1135_vm7, %v1133_v46, %v2278_v54 }
 0x31a   : > { %1378 = vmatmul.msk.f32.gmra.mxu3 %vm605_vm6, %v1142_v20 }
 0x31b   : > { %v940_v55 = vpop.permute.xlu1 %939  ;;  %v898_v5 = vpop.permute.xlu0 %897 }
 0x31c   : > { %v1082_v37 = vsel %vm752_vm13, %v2250_v28, %v898_v5  ;;  %v1096_v54 = vsel %vm231_vm0, %v2332_v43, %v940_v55  ;;  %v1036_v43 = vpop.permute.xlu2 %1035  ;;  %v1477_v55 = vld [vmem:[%s1653_s9 + $0x28] sm:$0xff] }
 0x31d   : > { %v1091_v26 = vsel %vm1083_vm15, %v1082_v37, %v922_v50  ;;  %v1105_v45 = vsel %vm1100_vm2, %v1096_v54, %v964_v51 }
 0x31e   : > { %v1099_v42 = vsel %vm231_vm0, %v1091_v26, %v2303_v63  ;;  %v1478_v26 = vld [vmem:[%s1653_s9 + $0x38] sm:$0xff] }
 0x31f   : > { %v1108_v1 = vsel %vm1100_vm2, %v1099_v42, %v2327_v30 }
 0x320   : > { %v1117_v32 = vsel %vm1109_vm3, %v1108_v1, %v2297_v62 }
 0x321   : > { %v1125_v14 = vsel %vm596_vm4, %v1117_v32, %v2244_v7 }
 0x322   : > { %v1134_v28 = vsel %vm1126_vm5, %v1125_v14, %v2260_v38 }
 0x323   : > { %v988_v12 = vpop.permute.xlu0 %987  ;;  %v1143_v63 = vsel %vm1135_vm7, %v1134_v28, %v2182_v53  ;;  %v1012_v30 = vpop.permute.xlu1 %1011  ;;  %v1471_v53 = vld [vmem:[%s2506_s4] ss:$0 sm:$0xff] }
 0x324   : > { %1379 = vmatmul.msk.f32.gmra.mxu3 %vm605_vm6, %v1143_v63  ;;  %v1114_v62 = vsel %vm1109_vm3, %v1105_v45, %v988_v12 }
 0x325   : > { %v1122_v15 = vsel %vm596_vm4, %v1114_v62, %v1012_v30 }
 0x326   : > { %v1131_v7 = vsel %vm1126_vm5, %v1122_v15, %v1036_v43 }
 0x32b   : > { %v1060_v52 = vpop.permute.xlu0 %1059 }
 0x32c   : > { %v1140_v16 = vsel %vm1135_vm7, %v1131_v7, %v1060_v52 }
 0x32d   : > { %1376 = vmatmul.msk.f32.gmra.mxu1 %vm605_vm6, %v1140_v16 }
 0x333   : > { %v1197_v38 = vpop.f32.mrf.mxu1 }
 0x334   : > { %v1198_v57 = vadd.f32 %v1471_v53, %v1197_v38 }
 0x336   : > { %1229 = vrot.lane.b32.xlu1 %v1198_v57, %s1554_s13 }
 0x372   : > { %v1200_v3 = vpop.f32.mrf.mxu1 }
 0x373   : > { %v1201_v36 = vadd.f32 %v1471_v53, %v1200_v3 }
 0x375   : > { %1231 = vrot.lane.b32.xlu2 %v1201_v36, %s1554_s13 }
 0x37a   : > { %v1203_v39 = vpop.f32.mrf.mxu1 }
 0x37b   : > { %v1204_v59 = vadd.f32 %v1471_v53, %v1203_v39 }
 0x37d   : > { %1233 = vrot.lane.b32.xlu0 %v1204_v59, %s1554_s13 }
 0x383   : > { %v1206_v61 = vpop.f32.mrf.mxu1 }
 0x384   : > { %v1207_v22 = vadd.f32 %v1471_v53, %v1206_v61 }
 0x386   : > { %1235 = vrot.lane.b32.xlu1 %v1207_v22, %s1554_s13 }
 0x393   : > { %v1212_v25 = vpop.f32.mrf.mxu3 }
 0x394   : > { %v1213_v31 = vadd.f32 %v1471_v53, %v1212_v25 }
 0x396   : > { %1239 = vrot.lane.b32.xlu0 %v1213_v31, %s1554_s13 }
 0x39d   : > { %v1215_v35 = vpop.f32.mrf.mxu3 }
 0x39e   : > { %v1216_v0 = vadd.f32 %v1471_v53, %v1215_v35 }
 0x3a0   : > { %1241 = vrot.lane.b32.xlu1 %v1216_v0, %s1554_s13 }
 0x3a7   : > { %v1218_v18 = vpop.f32.mrf.mxu3 }
 0x3a8   : > { %v1230_v33 = vpop.permute.xlu1 %1229  ;;  %v1219_v29 = vadd.f32 %v1471_v53, %v1218_v18 }
 0x3a9   : > { %v1253_v23 = vadd.f32 %v1472_v58, %v1230_v33 }
 0x3aa   : > { %v1209_v34 = vpop.f32.mrf.mxu1 }
 0x3ab   : > { %v1261_v21 = vsel %vm752_vm13, %v2098_v11, %v1253_v23  ;;  %v1210_v2 = vadd.f32 %v1471_v53, %v1209_v34 }
 0x3ac   : > { %1269 = vst.msk [vmem:[%s2427_s23] sm:$0xff] %vm1100_vm2, %v1261_v21 }
 0x3ad   : > { %1237 = vrot.lane.b32.xlu2 %v1210_v2, %s1554_s13 }
 0x3b5   : > { %1243 = vrot.lane.b32.xlu2 %v1219_v29, %s1554_s13  ;;  %s1386_s13 = sshll.u32 %s1613_s22, 6  ;;  %s1278_s22 = scalar_lea.sflag [#allocation5], %s215_s14 }
 0x3b6   : > { %s1289_s7 = scalar_lea.hbm %s2507_s5, %s1386_s13 }
 0x3b7   : > { %s1292_s10 = sshll.u32 %s1289_s7, 4  ;;  %s1293_s10 = int_to_ptr.hbm [resolvable:$true] %s1292_s10 }
 0x3b8   : > { %s1494_s25 = sshra.s32 %s1293_s10, 4  ;;  %s1495_s25 = int_to_ptr.hbm [resolvable:$true] %s1494_s25 }
 0x3b9   : > { %s1496_s15 = scalar_lea.hbm %s1495_s25, 64  ;;  %p1501_p0 = scmp.lt.s32.totalorder %s1495_s25, %s2507_s5 }
 0x3ba   : > { %p1497_p11 = scmp.ne.s32.totalorder %s1495_s25, %s1496_s15 }
 0x3bc   : > { %p1498_p12 = pnand %p1497_p11, %p1630_p5 }
 0x3be   : > { %p1499_p13 = pneg %p1498_p12 }
 0x3cf   : > { %v1232_v8 = vpop.permute.xlu2 %1231 }
 0x3d0   : > { %v1254_v11 = vadd.f32 %v1473_v13, %v1232_v8 }
 0x3d2   : > { %v1262_v44 = vsel %vm752_vm13, %v2128_v4, %v1254_v11 }
 0x3d3   : > { %1270 = vst.msk [vmem:[%s2427_s23 + $0x8] sm:$0xff] %vm1100_vm2, %v1262_v44 }
 0x3ef   : > { %v1234_v40 = vpop.permute.xlu0 %1233 }
 0x3f0   : > { %v1255_v47 = vadd.f32 %v1474_v41, %v1234_v40 }
 0x3f2   : > { %v1263_v10 = vsel %vm752_vm13, %v2152_v56, %v1255_v47 }
 0x3f3   : > { %1271 = vst.msk [vmem:[%s2427_s23 + $0x10] sm:$0xff] %vm1100_vm2, %v1263_v10 }
 0x3f8   : > { %v1236_v48 = vpop.permute.xlu1 %1235 }
 0x3f9   : > { %v1256_v50 = vadd.f32 %v1475_v49, %v1236_v48 }
 0x3fb   : > { %v1264_v4 = vsel %vm752_vm13, %v2082_v60, %v1256_v50 }
 0x3fc   : > { %1272 = vst.msk [vmem:[%s2427_s23 + $0x18] sm:$0xff] %vm1100_vm2, %v1264_v4 }
 0x407   : > { %v1238_v24 = vpop.permute.xlu2 %1237 }
 0x408   : > { %v1257_v46 = vadd.f32 %v1476_v19, %v1238_v24  ;;  %v1240_v20 = vpop.permute.xlu0 %1239 }
 0x409   : > { %v1258_v56 = vadd.f32 %v1477_v55, %v1240_v20 }
 0x40a   : > { %v1265_v5 = vsel %vm752_vm13, %v2092_v27, %v1257_v46 }
 0x40b   : > { %1273 = vst.msk [vmem:[%s2427_s23 + $0x20] sm:$0xff] %vm1100_vm2, %v1265_v5  ;;  %v1266_v60 = vsel %vm752_vm13, %v2114_v17, %v1258_v56  ;;  %v1479_v17 = vld [vmem:[%s1653_s9 + $0x30] sm:$0xff]  ;;  %s1500_s9 = scalar_lea.hbm %s2507_s5, 128 }
 0x40c   : > { %1274 = vst.msk [vmem:[%s2427_s23 + $0x28] sm:$0xff] %vm1100_vm2, %v1266_v60  ;;  %p1502_p1 = scmp.lt.s32.totalorder %s1500_s9, %s1496_s15 }
 0x40e   : > { %p1503_p2 = por %p1502_p1, %p1501_p0 }
 0x40f   : > { %v1244_v37 = vpop.permute.xlu2 %1243 }
 0x410   : > { %v1260_v42 = vadd.f32 %v1478_v26, %v1244_v37  ;;  %p1504_p3 = pnand %p1503_p2, %p1499_p13 }
 0x412   : > { %v1268_v27 = vsel %vm752_vm13, %v2158_v9, %v1260_v42  ;;  %v1242_v1 = vpop.permute.xlu1 %1241 }
 0x413   : > { %1276 = vst.msk [vmem:[%s2427_s23 + $0x38] sm:$0xff] %vm1100_vm2, %v1268_v27  ;;  %v1259_v51 = vadd.f32 %v1479_v17, %v1242_v1 }
 0x415   : > { %v1267_v32 = vsel %vm752_vm13, %v2141_v6, %v1259_v51 }
 0x416   : > { %1275 = vst.msk [vmem:[%s2427_s23 + $0x30] sm:$0xff] %vm1100_vm2, %v1267_v32 }
 0x417   : > { %1507 = shalt.err (!%p1504_p3)
}
 0x418   : > { %s1560_s14 = smov 128   ;;  %s1561_s17 = smov 8  }
 0x419   : > { %1413 = dma.vmem_to_hbm [thread:$0]  (%p1630_p5), %s1291_s8, 1024, %s1293_s10, %s1278_s22, %s1560_s14, %s1560_s14, %s1561_s17  }
 0x41a PF: > { %p1419_p4 = scmp.ge.s32.totalorder %s1542_s21, 2  ;;  %s1307_s23 = sand.u32 1, %s1530_s18  }
 0x41b   : > { %s1308_s13 = scalar_lea.sflag [#allocation5], %s1307_s23 }
 0x41c   : > { %p1416_p7 = pnand %p1419_p4, %p1634_p6 }
 0x41e   : > { %p1417_p8 = pneg %p1416_p7 }
 0x420   : > { %1525 = dma.done.wait (%p1417_p8), %s1308_s13, 1024  }
 0x421   : > { %1527 = vsyncadd (%p1417_p8), %s1308_s13, 4294966272  ;;  %p15_p9 = scmp.ge.s32.totalorder %s1617_s24, 4   ;;  %s2510_s18 = smov %s1534_s19 }
 0x422   : > { %s2511_s19 = smov %s1538_s20  ;;  %s2512_s20 = smov %s1628_s27 }
 0x423   : > { %s2513_s21 = smov %s1617_s24  ;;  %17 = sbr.rel (!%p15_p9) target bundleno = 3 (0x3), region = 77 }
 0x428   :  { %1314 = vsyncpa [#allocation5], 1 }
 0x429   :  { %1316 = vsyncpa [#allocation5 + $0x1], 1 }

</bundles_post_ra>
